<compile_context>
chip_gen: v7x
topology: tpu7x:2x2x1
jax: 0.10.0
libtpu: 0.0.40
codegen_flags: <defaults>
</compile_context>

<pallas_src>
import functools

import jax
import jax.numpy as jnp
from jax.experimental import pallas as pl
from jax.experimental.pallas import tpu as pltpu


LEAKY_SLOPE = 0.01                     # PyTorch nn.LeakyReLU default
NUM_ANCHORS = 3
NUM_CLASSES = 2
C_FEAT = 16
C_DET = NUM_ANCHORS * (5 + NUM_CLASSES)   # 21
C_SLAB = 128                            # lane-dense output: [feat | det | pad]


# ----------------------------------------------------------------------------
# In-kernel helpers
# ----------------------------------------------------------------------------
def _conv3x3(src, w_ref, H, W):
    """'same' 3x3 conv as 9 shifted MXU dots (no HBM im2col).

    src  : (H+2, W+2, Cin) spatially zero-padded array (already in VMEM).
    w_ref: (9, Cin, Cout) weight ref (bf16).
    returns (H*W, Cout) float32 accumulator.
    """
    cin = src.shape[-1]
    acc = None
    for t in range(9):
        di, dj = divmod(t, 3)
        w_t = w_ref[t]                                            # (Cin, Cout)
        p = src[di:di + H, dj:dj + W, :].reshape(H * W, cin)
        d = jnp.dot(p.astype(w_t.dtype), w_t,
                    preferred_element_type=jnp.float32)
        acc = d if acc is None else acc + d
    return acc


def _flow_yolo_kernel(*refs, H, W, use_flow, use_last, slope):
    refs = list(refs)
    if use_flow:
        h1p_ref = refs.pop()                  # VMEM scratch (H+2, W+2, 16) f32
    o_ref = refs.pop()                        # (1, H*W, 128) f32 output block
    it = iter(refs)
    xc_ref = next(it)                         # (1, H+2, W+2, Cc) f32 input
    wc1_ref = next(it)                        # (9, Cc, Co1) bf16 (block-diag)
    bc1_ref = next(it)                        # (1, Co1) f32
    if use_flow:
        w2p_ref = next(it)                    # (9, 16, 16) bf16 (conv2 . proj)
        b2p_ref = next(it)                    # (1, 16) f32
    if use_last:
        lf_ref = next(it)                     # (1, H*W, 16) f32
    wout_ref = next(it)                       # (16, 128) f32  [I | head_w | 0]
    bout_ref = next(it)                       # (1, 128) f32   [0 | head_b | 0]

    def leaky(x):
        return jnp.where(x > 0.0, x, slope * x)

    # ---- fused first layer: flow conv1 (6->16) and detect conv1 (3->16) share
    #      the same 9 shifted dots via a block-diagonal (Cc -> Co1) weight. ---
    h = leaky(_conv3x3(xc_ref[0], wc1_ref, H, W) + bc1_ref[...])   # (HW, Co1)

    if use_flow:
        h1 = h[:, :C_FEAT]                    # flow hidden        (HW, 16)
        feat = h[:, C_FEAT:]                  # detect backbone    (HW, 16)
        # flow second conv (folded with 1x1 proj): zero-padded input in scratch
        h1p_ref[...] = jnp.zeros(h1p_ref.shape, h1p_ref.dtype)
        h1p_ref[1:H + 1, 1:W + 1, :] = h1.reshape(H, W, C_FEAT)
        flow_feat = _conv3x3(h1p_ref[...], w2p_ref, H, W) + b2p_ref[...]
        feat = feat + flow_feat
    else:
        feat = h

    if use_last:
        feat = feat + lf_ref[0]

    # ---- lane-dense epilogue: single matmul emits [feat | det | 0] ----------
    slab = jnp.dot(feat, wout_ref[...],
                   preferred_element_type=jnp.float32) + bout_ref[...]
    o_ref[0] = slab                                           # unmasked stores


# ----------------------------------------------------------------------------
# BlockSpec helpers
# ----------------------------------------------------------------------------
def _bcast_spec(shape):
    """Whole-array block, identical for every grid step (weights / biases)."""
    zeros = (0,) * len(shape)
    return pl.BlockSpec(tuple(shape), lambda n: zeros)


def _batch_spec(shape):
    """One batch element per grid step, full extent on the other dims."""
    block = (1,) + tuple(shape[1:])
    rest = (0,) * (len(shape) - 1)
    return pl.BlockSpec(block, lambda n: (n,) + rest)


# ----------------------------------------------------------------------------
# Parameters (deterministic, in-script)
# ----------------------------------------------------------------------------
def init_params(key):
    def conv_w(k, kh, kw, cin, cout):
        fan_in = kh * kw * cin
        return (jax.random.normal(k, (kh, kw, cin, cout), jnp.float32)
                * (2.0 / fan_in) ** 0.5)

    ks = jax.random.split(key, 5)
    return {
        "flow_conv1_w": conv_w(ks[0], 3, 3, 6, C_FEAT),
        "flow_conv1_b": jnp.zeros((C_FEAT,), jnp.float32),
        "flow_conv2_w": conv_w(ks[1], 3, 3, C_FEAT, 2),
        "flow_conv2_b": jnp.zeros((2,), jnp.float32),
        "det_conv1_w": conv_w(ks[2], 3, 3, 3, C_FEAT),
        "det_conv1_b": jnp.zeros((C_FEAT,), jnp.float32),
        "flow_proj_w": conv_w(ks[3], 1, 1, 2, C_FEAT),
        "flow_proj_b": jnp.zeros((C_FEAT,), jnp.float32),
        "det_head_w": conv_w(ks[4], 1, 1, C_FEAT, C_DET),
        "det_head_b": jnp.zeros((C_DET,), jnp.float32),
    }


# ----------------------------------------------------------------------------
# FlowYOLO forward (inference path)
# ----------------------------------------------------------------------------
def flow_yolo_forward(params, flow_input_nchw, data_nchw, last_feature,
                      target=None):
    """FlowYOLO.forward -> (result, features); NCHW in/out at the interface."""
    # TODO(synk): the target!=None training-loss branch and the
    # result['loss'].cuda() device transfer of the original wrapper are runtime
    # plumbing with no Pallas equivalent (inference path, target=None).
    del target

    N, _, H, W = data_nchw.shape
    use_flow = flow_input_nchw is not None
    use_last = bool(last_feature)
    f32, bf16 = jnp.float32, jnp.bfloat16

    # detect input: NCHW -> NHWC once; spatial zero-pad by 1 for the 3x3 conv.
    xd = jnp.transpose(data_nchw, (0, 2, 3, 1)).astype(f32)
    xdp = jnp.pad(xd, ((0, 0), (1, 1), (1, 1), (0, 0)))
    wd1 = params["det_conv1_w"].reshape(9, 3, C_FEAT).astype(f32)
    bd1 = params["det_conv1_b"].astype(f32)

    args, in_specs = [], []

    if use_flow:
        fx = jnp.transpose(flow_input_nchw, (0, 2, 3, 1)).astype(f32)
        fxp = jnp.pad(fx, ((0, 0), (1, 1), (1, 1), (0, 0)))
        # Channel-concatenate the two padded inputs so both first-layer convs
        # run in the same 9 shifted dots with a block-diagonal weight.
        xcat = jnp.concatenate([fxp, xdp], axis=-1)            # (N,H+2,W+2,9)

        wf1 = params["flow_conv1_w"].reshape(9, 6, C_FEAT).astype(f32)
        bf1 = params["flow_conv1_b"].astype(f32)
        top = jnp.concatenate([wf1, jnp.zeros((9, 6, C_FEAT), f32)], axis=2)
        bot = jnp.concatenate([jnp.zeros((9, 3, C_FEAT), f32), wd1], axis=2)
        wc1 = jnp.concatenate([top, bot], axis=1).astype(bf16)  # (9, 9, 32)
        bc1 = jnp.concatenate([bf1, bd1]).reshape(1, 2 * C_FEAT)

        # Fold flow_conv2 (3x3, 16->2) with the 1x1 flow projection (2->16)
        # into one 3x3 (16->16) conv (both linear, leaky sits before them).
        w2 = params["flow_conv2_w"].reshape(9, C_FEAT, 2).astype(f32)
        pw = params["flow_proj_w"].reshape(2, C_FEAT).astype(f32)
        w2p = jnp.einsum("tkc,cd->tkd", w2, pw).astype(bf16)    # (9, 16, 16)
        b2p = (params["flow_conv2_b"].astype(f32) @ pw
               + params["flow_proj_b"].astype(f32)).reshape(1, C_FEAT)

        args += [xcat, wc1, bc1, w2p, b2p]
        in_specs += [_batch_spec(xcat.shape), _bcast_spec(wc1.shape),
                     _bcast_spec(bc1.shape), _bcast_spec(w2p.shape),
                     _bcast_spec(b2p.shape)]
    else:
        wc1 = wd1.astype(bf16)                                  # (9, 3, 16)
        bc1 = bd1.reshape(1, C_FEAT)
        args += [xdp, wc1, bc1]
        in_specs += [_batch_spec(xdp.shape), _bcast_spec(wc1.shape),
                     _bcast_spec(bc1.shape)]

    if use_last:
        lf = jnp.transpose(last_feature[0], (0, 2, 3, 1)).astype(f32)
        lf = lf.reshape(N, H * W, C_FEAT)      # pre-flattened: no in-kernel op
        args += [lf]
        in_specs += [_batch_spec(lf.shape)]

    # Combined lane-dense output projection: slab = feat @ [I|head_w|0] + b.
    head_w = params["det_head_w"].reshape(C_FEAT, C_DET).astype(f32)
    head_b = params["det_head_b"].astype(f32)
    pad = C_SLAB - C_FEAT - C_DET
    wout = jnp.concatenate(
        [jnp.eye(C_FEAT, dtype=f32), head_w, jnp.zeros((C_FEAT, pad), f32)],
        axis=1)
    bout = jnp.concatenate(
        [jnp.zeros((C_FEAT,), f32), head_b, jnp.zeros((pad,), f32)]
    ).reshape(1, C_SLAB)
    args += [wout, bout]
    in_specs += [_bcast_spec(wout.shape), _bcast_spec(bout.shape)]

    kernel = functools.partial(_flow_yolo_kernel, H=H, W=W,
                               use_flow=use_flow, use_last=use_last,
                               slope=LEAKY_SLOPE)
    scratch = [pltpu.VMEM((H + 2, W + 2, C_FEAT), f32)] if use_flow else []

    slab = pl.pallas_call(
        kernel,
        out_shape=jax.ShapeDtypeStruct((N, H * W, C_SLAB), f32),
        grid=(N,),
        in_specs=in_specs,
        out_specs=pl.BlockSpec((1, H * W, C_SLAB), lambda n: (n, 0, 0)),
        scratch_shapes=scratch,
        compiler_params=pltpu.CompilerParams(
            dimension_semantics=("parallel",)),   # N=2 -> both v7x TCs busy
    )(*args)

    feat = slab[..., :C_FEAT].reshape(N, H, W, C_FEAT)
    det = slab[..., C_FEAT:C_FEAT + C_DET].reshape(N, H, W, C_DET)
    result = jnp.transpose(det, (0, 3, 1, 2))        # NCHW detection map
    features = [jnp.transpose(feat, (0, 3, 1, 2))]   # NCHW feature list
    return result, features


# ----------------------------------------------------------------------------
if __name__ == "__main__":
    key = jax.random.PRNGKey(0)
    kp, k1, k2, k3 = jax.random.split(key, 4)
    params = init_params(kp)

    flow_input = jax.random.normal(k1, (2, 6, 16, 16), jnp.float32)   # frame pair
    data = jax.random.normal(k2, (2, 3, 16, 16), jnp.float32)         # current frame
    last_feature = [jax.random.normal(k3, (2, 16, 16, 16), jnp.float32)]

    fwd = jax.jit(flow_yolo_forward)
    result, features = fwd(params, flow_input, data, last_feature)
    jax.block_until_ready((result, features))

    assert result.shape == (2, C_DET, 16, 16)
    assert features[0].shape == (2, C_FEAT, 16, 16)
    print("KERNEL_OK")
</pallas_src>

<mosaic_0001>
module attributes {stable_mosaic.version = 11 : i64} {
  func.func @_flow_yolo_kernel(%arg0: i32, %arg1: memref<1x18x18x9xf32, #tpu.memory_space<vmem>>, %arg2: memref<9x9x32xbf16, #tpu.memory_space<vmem>>, %arg3: memref<1x32xf32, #tpu.memory_space<vmem>>, %arg4: memref<9x16x16xbf16, #tpu.memory_space<vmem>>, %arg5: memref<1x16xf32, #tpu.memory_space<vmem>>, %arg6: memref<1x256x16xf32, #tpu.memory_space<vmem>>, %arg7: memref<16x128xf32, #tpu.memory_space<vmem>>, %arg8: memref<1x128xf32, #tpu.memory_space<vmem>>, %arg9: memref<1x256x128xf32, #tpu.memory_space<vmem>>, %arg10: memref<18x18x16xf32, #tpu.memory_space<vmem>>) attributes {dimension_semantics = [#tpu.dimension_semantics<parallel>], iteration_bounds = array<i64: 2>, scalar_prefetch = 0 : i64, scratch_operands = 1 : i64, tpu.core_type = #tpu.core_type<tc>, window_params = [{transform_indices = @transform_0, window_bounds = array<i64: 1, 18, 18, 9>}, {pipeline_mode = #tpu.pipeline_mode<synchronous>, transform_indices = @transform_1, window_bounds = array<i64: 9, 9, 32>}, {pipeline_mode = #tpu.pipeline_mode<synchronous>, transform_indices = @transform_2, window_bounds = array<i64: 1, 32>}, {pipeline_mode = #tpu.pipeline_mode<synchronous>, transform_indices = @transform_3, window_bounds = array<i64: 9, 16, 16>}, {pipeline_mode = #tpu.pipeline_mode<synchronous>, transform_indices = @transform_4, window_bounds = array<i64: 1, 16>}, {transform_indices = @transform_5, window_bounds = array<i64: 1, 256, 16>}, {pipeline_mode = #tpu.pipeline_mode<synchronous>, transform_indices = @transform_6, window_bounds = array<i64: 16, 128>}, {pipeline_mode = #tpu.pipeline_mode<synchronous>, transform_indices = @transform_7, window_bounds = array<i64: 1, 128>}, {transform_indices = @transform_8, window_bounds = array<i64: 1, 256, 128>}]} {
    %c0 = arith.constant 0 : index
    %c0_0 = arith.constant 0 : index
    %c0_1 = arith.constant 0 : index
    %c0_2 = arith.constant 0 : index
    %0 = vector.load %arg1[%c0, %c0_0, %c0_1, %c0_2] : memref<1x18x18x9xf32, #tpu.memory_space<vmem>>, vector<1x18x18x9xf32>
    %1 = vector.shape_cast %0 : vector<1x18x18x9xf32> to vector<18x18x9xf32>
    %c0_3 = arith.constant 0 : index
    %c0_4 = arith.constant 0 : index
    %c0_5 = arith.constant 0 : index
    %2 = vector.load %arg2[%c0_3, %c0_4, %c0_5] : memref<9x9x32xbf16, #tpu.memory_space<vmem>>, vector<1x9x32xbf16>
    %3 = vector.shape_cast %2 : vector<1x9x32xbf16> to vector<9x32xbf16>
    %4 = vector.extract_strided_slice %1 {offsets = [0, 0, 0], sizes = [16, 16, 9], strides = [1, 1, 1]} : vector<18x18x9xf32> to vector<16x16x9xf32>
    %5 = vector.shape_cast %4 : vector<16x16x9xf32> to vector<256x9xf32>
    %6 = arith.truncf %5 : vector<256x9xf32> to vector<256x9xbf16>
    %cst = arith.constant dense<0.000000e+00> : vector<256x32xf32>
    %7 = tpu.matmul %6, %3, %cst {dimension_numbers = #tpu.dot_dimension_numbers<[1], [0], [0], [1], [0, 0, 1, 1], [], []>} : vector<256x9xbf16>, vector<9x32xbf16>, vector<256x32xf32> -> vector<256x32xf32>
    %c1 = arith.constant 1 : index
    %c0_6 = arith.constant 0 : index
    %c0_7 = arith.constant 0 : index
    %8 = vector.load %arg2[%c1, %c0_6, %c0_7] : memref<9x9x32xbf16, #tpu.memory_space<vmem>>, vector<1x9x32xbf16>
    %9 = vector.shape_cast %8 : vector<1x9x32xbf16> to vector<9x32xbf16>
    %10 = vector.extract_strided_slice %1 {offsets = [0, 1, 0], sizes = [16, 16, 9], strides = [1, 1, 1]} : vector<18x18x9xf32> to vector<16x16x9xf32>
    %11 = vector.shape_cast %10 : vector<16x16x9xf32> to vector<256x9xf32>
    %12 = arith.truncf %11 : vector<256x9xf32> to vector<256x9xbf16>
    %cst_8 = arith.constant dense<0.000000e+00> : vector<256x32xf32>
    %13 = tpu.matmul %12, %9, %cst_8 {dimension_numbers = #tpu.dot_dimension_numbers<[1], [0], [0], [1], [0, 0, 1, 1], [], []>} : vector<256x9xbf16>, vector<9x32xbf16>, vector<256x32xf32> -> vector<256x32xf32>
    %14 = arith.addf %7, %13 : vector<256x32xf32>
    %c2 = arith.constant 2 : index
    %c0_9 = arith.constant 0 : index
    %c0_10 = arith.constant 0 : index
    %15 = vector.load %arg2[%c2, %c0_9, %c0_10] : memref<9x9x32xbf16, #tpu.memory_space<vmem>>, vector<1x9x32xbf16>
    %16 = vector.shape_cast %15 : vector<1x9x32xbf16> to vector<9x32xbf16>
    %17 = vector.extract_strided_slice %1 {offsets = [0, 2, 0], sizes = [16, 16, 9], strides = [1, 1, 1]} : vector<18x18x9xf32> to vector<16x16x9xf32>
    %18 = vector.shape_cast %17 : vector<16x16x9xf32> to vector<256x9xf32>
    %19 = arith.truncf %18 : vector<256x9xf32> to vector<256x9xbf16>
    %cst_11 = arith.constant dense<0.000000e+00> : vector<256x32xf32>
    %20 = tpu.matmul %19, %16, %cst_11 {dimension_numbers = #tpu.dot_dimension_numbers<[1], [0], [0], [1], [0, 0, 1, 1], [], []>} : vector<256x9xbf16>, vector<9x32xbf16>, vector<256x32xf32> -> vector<256x32xf32>
    %21 = arith.addf %14, %20 : vector<256x32xf32>
    %c3 = arith.constant 3 : index
    %c0_12 = arith.constant 0 : index
    %c0_13 = arith.constant 0 : index
    %22 = vector.load %arg2[%c3, %c0_12, %c0_13] : memref<9x9x32xbf16, #tpu.memory_space<vmem>>, vector<1x9x32xbf16>
    %23 = vector.shape_cast %22 : vector<1x9x32xbf16> to vector<9x32xbf16>
    %24 = vector.extract_strided_slice %1 {offsets = [1, 0, 0], sizes = [16, 16, 9], strides = [1, 1, 1]} : vector<18x18x9xf32> to vector<16x16x9xf32>
    %25 = vector.shape_cast %24 : vector<16x16x9xf32> to vector<256x9xf32>
    %26 = arith.truncf %25 : vector<256x9xf32> to vector<256x9xbf16>
    %cst_14 = arith.constant dense<0.000000e+00> : vector<256x32xf32>
    %27 = tpu.matmul %26, %23, %cst_14 {dimension_numbers = #tpu.dot_dimension_numbers<[1], [0], [0], [1], [0, 0, 1, 1], [], []>} : vector<256x9xbf16>, vector<9x32xbf16>, vector<256x32xf32> -> vector<256x32xf32>
    %28 = arith.addf %21, %27 : vector<256x32xf32>
    %c4 = arith.constant 4 : index
    %c0_15 = arith.constant 0 : index
    %c0_16 = arith.constant 0 : index
    %29 = vector.load %arg2[%c4, %c0_15, %c0_16] : memref<9x9x32xbf16, #tpu.memory_space<vmem>>, vector<1x9x32xbf16>
    %30 = vector.shape_cast %29 : vector<1x9x32xbf16> to vector<9x32xbf16>
    %31 = vector.extract_strided_slice %1 {offsets = [1, 1, 0], sizes = [16, 16, 9], strides = [1, 1, 1]} : vector<18x18x9xf32> to vector<16x16x9xf32>
    %32 = vector.shape_cast %31 : vector<16x16x9xf32> to vector<256x9xf32>
    %33 = arith.truncf %32 : vector<256x9xf32> to vector<256x9xbf16>
    %cst_17 = arith.constant dense<0.000000e+00> : vector<256x32xf32>
    %34 = tpu.matmul %33, %30, %cst_17 {dimension_numbers = #tpu.dot_dimension_numbers<[1], [0], [0], [1], [0, 0, 1, 1], [], []>} : vector<256x9xbf16>, vector<9x32xbf16>, vector<256x32xf32> -> vector<256x32xf32>
    %35 = arith.addf %28, %34 : vector<256x32xf32>
    %c5 = arith.constant 5 : index
    %c0_18 = arith.constant 0 : index
    %c0_19 = arith.constant 0 : index
    %36 = vector.load %arg2[%c5, %c0_18, %c0_19] : memref<9x9x32xbf16, #tpu.memory_space<vmem>>, vector<1x9x32xbf16>
    %37 = vector.shape_cast %36 : vector<1x9x32xbf16> to vector<9x32xbf16>
    %38 = vector.extract_strided_slice %1 {offsets = [1, 2, 0], sizes = [16, 16, 9], strides = [1, 1, 1]} : vector<18x18x9xf32> to vector<16x16x9xf32>
    %39 = vector.shape_cast %38 : vector<16x16x9xf32> to vector<256x9xf32>
    %40 = arith.truncf %39 : vector<256x9xf32> to vector<256x9xbf16>
    %cst_20 = arith.constant dense<0.000000e+00> : vector<256x32xf32>
    %41 = tpu.matmul %40, %37, %cst_20 {dimension_numbers = #tpu.dot_dimension_numbers<[1], [0], [0], [1], [0, 0, 1, 1], [], []>} : vector<256x9xbf16>, vector<9x32xbf16>, vector<256x32xf32> -> vector<256x32xf32>
    %42 = arith.addf %35, %41 : vector<256x32xf32>
    %c6 = arith.constant 6 : index
    %c0_21 = arith.constant 0 : index
    %c0_22 = arith.constant 0 : index
    %43 = vector.load %arg2[%c6, %c0_21, %c0_22] : memref<9x9x32xbf16, #tpu.memory_space<vmem>>, vector<1x9x32xbf16>
    %44 = vector.shape_cast %43 : vector<1x9x32xbf16> to vector<9x32xbf16>
    %45 = vector.extract_strided_slice %1 {offsets = [2, 0, 0], sizes = [16, 16, 9], strides = [1, 1, 1]} : vector<18x18x9xf32> to vector<16x16x9xf32>
    %46 = vector.shape_cast %45 : vector<16x16x9xf32> to vector<256x9xf32>
    %47 = arith.truncf %46 : vector<256x9xf32> to vector<256x9xbf16>
    %cst_23 = arith.constant dense<0.000000e+00> : vector<256x32xf32>
    %48 = tpu.matmul %47, %44, %cst_23 {dimension_numbers = #tpu.dot_dimension_numbers<[1], [0], [0], [1], [0, 0, 1, 1], [], []>} : vector<256x9xbf16>, vector<9x32xbf16>, vector<256x32xf32> -> vector<256x32xf32>
    %49 = arith.addf %42, %48 : vector<256x32xf32>
    %c7 = arith.constant 7 : index
    %c0_24 = arith.constant 0 : index
    %c0_25 = arith.constant 0 : index
    %50 = vector.load %arg2[%c7, %c0_24, %c0_25] : memref<9x9x32xbf16, #tpu.memory_space<vmem>>, vector<1x9x32xbf16>
    %51 = vector.shape_cast %50 : vector<1x9x32xbf16> to vector<9x32xbf16>
    %52 = vector.extract_strided_slice %1 {offsets = [2, 1, 0], sizes = [16, 16, 9], strides = [1, 1, 1]} : vector<18x18x9xf32> to vector<16x16x9xf32>
    %53 = vector.shape_cast %52 : vector<16x16x9xf32> to vector<256x9xf32>
    %54 = arith.truncf %53 : vector<256x9xf32> to vector<256x9xbf16>
    %cst_26 = arith.constant dense<0.000000e+00> : vector<256x32xf32>
    %55 = tpu.matmul %54, %51, %cst_26 {dimension_numbers = #tpu.dot_dimension_numbers<[1], [0], [0], [1], [0, 0, 1, 1], [], []>} : vector<256x9xbf16>, vector<9x32xbf16>, vector<256x32xf32> -> vector<256x32xf32>
    %56 = arith.addf %49, %55 : vector<256x32xf32>
    %c8 = arith.constant 8 : index
    %c0_27 = arith.constant 0 : index
    %c0_28 = arith.constant 0 : index
    %57 = vector.load %arg2[%c8, %c0_27, %c0_28] : memref<9x9x32xbf16, #tpu.memory_space<vmem>>, vector<1x9x32xbf16>
    %58 = vector.shape_cast %57 : vector<1x9x32xbf16> to vector<9x32xbf16>
    %59 = vector.extract_strided_slice %1 {offsets = [2, 2, 0], sizes = [16, 16, 9], strides = [1, 1, 1]} : vector<18x18x9xf32> to vector<16x16x9xf32>
    %60 = vector.shape_cast %59 : vector<16x16x9xf32> to vector<256x9xf32>
    %61 = arith.truncf %60 : vector<256x9xf32> to vector<256x9xbf16>
    %cst_29 = arith.constant dense<0.000000e+00> : vector<256x32xf32>
    %62 = tpu.matmul %61, %58, %cst_29 {dimension_numbers = #tpu.dot_dimension_numbers<[1], [0], [0], [1], [0, 0, 1, 1], [], []>} : vector<256x9xbf16>, vector<9x32xbf16>, vector<256x32xf32> -> vector<256x32xf32>
    %63 = arith.addf %56, %62 : vector<256x32xf32>
    %c0_30 = arith.constant 0 : index
    %c0_31 = arith.constant 0 : index
    %64 = vector.load %arg3[%c0_30, %c0_31] : memref<1x32xf32, #tpu.memory_space<vmem>>, vector<1x32xf32>
    %65 = vector.broadcast %64 : vector<1x32xf32> to vector<256x32xf32>
    %66 = arith.addf %63, %65 : vector<256x32xf32>
    %cst_32 = arith.constant 0.000000e+00 : f32
    %67 = vector.broadcast %cst_32 : f32 to vector<256x32xf32>
    %68 = arith.cmpf ogt, %66, %67 : vector<256x32xf32>
    %cst_33 = arith.constant 0.00999999977 : f32
    %69 = vector.broadcast %cst_33 : f32 to vector<256x32xf32>
    %70 = arith.mulf %69, %66 : vector<256x32xf32>
    %71 = arith.select %68, %66, %70 : vector<256x32xi1>, vector<256x32xf32>
    %72 = vector.extract_strided_slice %71 {offsets = [0, 0], sizes = [256, 16], strides = [1, 1]} : vector<256x32xf32> to vector<256x16xf32>
    %73 = vector.extract_strided_slice %71 {offsets = [0, 16], sizes = [256, 16], strides = [1, 1]} : vector<256x32xf32> to vector<256x16xf32>
    %cst_34 = arith.constant 0.000000e+00 : f32
    %74 = vector.broadcast %cst_34 : f32 to vector<18x18x16xf32>
    %c0_35 = arith.constant 0 : index
    %c0_36 = arith.constant 0 : index
    %c0_37 = arith.constant 0 : index
    %75 = vector.load %arg10[%c0_35, %c0_36, %c0_37] : memref<18x18x16xf32, #tpu.memory_space<vmem>>, vector<18x18x16xf32>
    tpu.vector_store %arg10[%c0_35, %c0_36, %c0_37], %74 {strides = array<i32>} : memref<18x18x16xf32, #tpu.memory_space<vmem>>, vector<18x18x16xf32>,
    %76 = vector.shape_cast %72 : vector<256x16xf32> to vector<16x16x16xf32>
    %c1_38 = arith.constant 1 : index
    %c1_39 = arith.constant 1 : index
    %c0_40 = arith.constant 0 : index
    %77 = vector.load %arg10[%c1_38, %c1_39, %c0_40] : memref<18x18x16xf32, #tpu.memory_space<vmem>>, vector<16x16x16xf32>
    tpu.vector_store %arg10[%c1_38, %c1_39, %c0_40], %76 {strides = array<i32>} : memref<18x18x16xf32, #tpu.memory_space<vmem>>, vector<16x16x16xf32>,
    %c0_41 = arith.constant 0 : index
    %c0_42 = arith.constant 0 : index
    %c0_43 = arith.constant 0 : index
    %78 = vector.load %arg10[%c0_41, %c0_42, %c0_43] : memref<18x18x16xf32, #tpu.memory_space<vmem>>, vector<18x18x16xf32>
    %c0_44 = arith.constant 0 : index
    %c0_45 = arith.constant 0 : index
    %c0_46 = arith.constant 0 : index
    %79 = vector.load %arg4[%c0_44, %c0_45, %c0_46] : memref<9x16x16xbf16, #tpu.memory_space<vmem>>, vector<1x16x16xbf16>
    %80 = vector.shape_cast %79 : vector<1x16x16xbf16> to vector<16x16xbf16>
    %81 = vector.extract_strided_slice %78 {offsets = [0, 0, 0], sizes = [16, 16, 16], strides = [1, 1, 1]} : vector<18x18x16xf32> to vector<16x16x16xf32>
    %82 = vector.shape_cast %81 : vector<16x16x16xf32> to vector<256x16xf32>
    %83 = arith.truncf %82 : vector<256x16xf32> to vector<256x16xbf16>
    %cst_47 = arith.constant dense<0.000000e+00> : vector<256x16xf32>
    %84 = tpu.matmul %83, %80, %cst_47 {dimension_numbers = #tpu.dot_dimension_numbers<[1], [0], [0], [1], [0, 0, 1, 1], [], []>} : vector<256x16xbf16>, vector<16x16xbf16>, vector<256x16xf32> -> vector<256x16xf32>
    %c1_48 = arith.constant 1 : index
    %c0_49 = arith.constant 0 : index
    %c0_50 = arith.constant 0 : index
    %85 = vector.load %arg4[%c1_48, %c0_49, %c0_50] : memref<9x16x16xbf16, #tpu.memory_space<vmem>>, vector<1x16x16xbf16>
    %86 = vector.shape_cast %85 : vector<1x16x16xbf16> to vector<16x16xbf16>
    %87 = vector.extract_strided_slice %78 {offsets = [0, 1, 0], sizes = [16, 16, 16], strides = [1, 1, 1]} : vector<18x18x16xf32> to vector<16x16x16xf32>
    %88 = vector.shape_cast %87 : vector<16x16x16xf32> to vector<256x16xf32>
    %89 = arith.truncf %88 : vector<256x16xf32> to vector<256x16xbf16>
    %cst_51 = arith.constant dense<0.000000e+00> : vector<256x16xf32>
    %90 = tpu.matmul %89, %86, %cst_51 {dimension_numbers = #tpu.dot_dimension_numbers<[1], [0], [0], [1], [0, 0, 1, 1], [], []>} : vector<256x16xbf16>, vector<16x16xbf16>, vector<256x16xf32> -> vector<256x16xf32>
    %91 = arith.addf %84, %90 : vector<256x16xf32>
    %c2_52 = arith.constant 2 : index
    %c0_53 = arith.constant 0 : index
    %c0_54 = arith.constant 0 : index
    %92 = vector.load %arg4[%c2_52, %c0_53, %c0_54] : memref<9x16x16xbf16, #tpu.memory_space<vmem>>, vector<1x16x16xbf16>
    %93 = vector.shape_cast %92 : vector<1x16x16xbf16> to vector<16x16xbf16>
    %94 = vector.extract_strided_slice %78 {offsets = [0, 2, 0], sizes = [16, 16, 16], strides = [1, 1, 1]} : vector<18x18x16xf32> to vector<16x16x16xf32>
    %95 = vector.shape_cast %94 : vector<16x16x16xf32> to vector<256x16xf32>
    %96 = arith.truncf %95 : vector<256x16xf32> to vector<256x16xbf16>
    %cst_55 = arith.constant dense<0.000000e+00> : vector<256x16xf32>
    %97 = tpu.matmul %96, %93, %cst_55 {dimension_numbers = #tpu.dot_dimension_numbers<[1], [0], [0], [1], [0, 0, 1, 1], [], []>} : vector<256x16xbf16>, vector<16x16xbf16>, vector<256x16xf32> -> vector<256x16xf32>
    %98 = arith.addf %91, %97 : vector<256x16xf32>
    %c3_56 = arith.constant 3 : index
    %c0_57 = arith.constant 0 : index
    %c0_58 = arith.constant 0 : index
    %99 = vector.load %arg4[%c3_56, %c0_57, %c0_58] : memref<9x16x16xbf16, #tpu.memory_space<vmem>>, vector<1x16x16xbf16>
    %100 = vector.shape_cast %99 : vector<1x16x16xbf16> to vector<16x16xbf16>
    %101 = vector.extract_strided_slice %78 {offsets = [1, 0, 0], sizes = [16, 16, 16], strides = [1, 1, 1]} : vector<18x18x16xf32> to vector<16x16x16xf32>
    %102 = vector.shape_cast %101 : vector<16x16x16xf32> to vector<256x16xf32>
    %103 = arith.truncf %102 : vector<256x16xf32> to vector<256x16xbf16>
    %cst_59 = arith.constant dense<0.000000e+00> : vector<256x16xf32>
    %104 = tpu.matmul %103, %100, %cst_59 {dimension_numbers = #tpu.dot_dimension_numbers<[1], [0], [0], [1], [0, 0, 1, 1], [], []>} : vector<256x16xbf16>, vector<16x16xbf16>, vector<256x16xf32> -> vector<256x16xf32>
    %105 = arith.addf %98, %104 : vector<256x16xf32>
    %c4_60 = arith.constant 4 : index
    %c0_61 = arith.constant 0 : index
    %c0_62 = arith.constant 0 : index
    %106 = vector.load %arg4[%c4_60, %c0_61, %c0_62] : memref<9x16x16xbf16, #tpu.memory_space<vmem>>, vector<1x16x16xbf16>
    %107 = vector.shape_cast %106 : vector<1x16x16xbf16> to vector<16x16xbf16>
    %108 = vector.extract_strided_slice %78 {offsets = [1, 1, 0], sizes = [16, 16, 16], strides = [1, 1, 1]} : vector<18x18x16xf32> to vector<16x16x16xf32>
    %109 = vector.shape_cast %108 : vector<16x16x16xf32> to vector<256x16xf32>
    %110 = arith.truncf %109 : vector<256x16xf32> to vector<256x16xbf16>
    %cst_63 = arith.constant dense<0.000000e+00> : vector<256x16xf32>
    %111 = tpu.matmul %110, %107, %cst_63 {dimension_numbers = #tpu.dot_dimension_numbers<[1], [0], [0], [1], [0, 0, 1, 1], [], []>} : vector<256x16xbf16>, vector<16x16xbf16>, vector<256x16xf32> -> vector<256x16xf32>
    %112 = arith.addf %105, %111 : vector<256x16xf32>
    %c5_64 = arith.constant 5 : index
    %c0_65 = arith.constant 0 : index
    %c0_66 = arith.constant 0 : index
    %113 = vector.load %arg4[%c5_64, %c0_65, %c0_66] : memref<9x16x16xbf16, #tpu.memory_space<vmem>>, vector<1x16x16xbf16>
    %114 = vector.shape_cast %113 : vector<1x16x16xbf16> to vector<16x16xbf16>
    %115 = vector.extract_strided_slice %78 {offsets = [1, 2, 0], sizes = [16, 16, 16], strides = [1, 1, 1]} : vector<18x18x16xf32> to vector<16x16x16xf32>
    %116 = vector.shape_cast %115 : vector<16x16x16xf32> to vector<256x16xf32>
    %117 = arith.truncf %116 : vector<256x16xf32> to vector<256x16xbf16>
    %cst_67 = arith.constant dense<0.000000e+00> : vector<256x16xf32>
    %118 = tpu.matmul %117, %114, %cst_67 {dimension_numbers = #tpu.dot_dimension_numbers<[1], [0], [0], [1], [0, 0, 1, 1], [], []>} : vector<256x16xbf16>, vector<16x16xbf16>, vector<256x16xf32> -> vector<256x16xf32>
    %119 = arith.addf %112, %118 : vector<256x16xf32>
    %c6_68 = arith.constant 6 : index
    %c0_69 = arith.constant 0 : index
    %c0_70 = arith.constant 0 : index
    %120 = vector.load %arg4[%c6_68, %c0_69, %c0_70] : memref<9x16x16xbf16, #tpu.memory_space<vmem>>, vector<1x16x16xbf16>
    %121 = vector.shape_cast %120 : vector<1x16x16xbf16> to vector<16x16xbf16>
    %122 = vector.extract_strided_slice %78 {offsets = [2, 0, 0], sizes = [16, 16, 16], strides = [1, 1, 1]} : vector<18x18x16xf32> to vector<16x16x16xf32>
    %123 = vector.shape_cast %122 : vector<16x16x16xf32> to vector<256x16xf32>
    %124 = arith.truncf %123 : vector<256x16xf32> to vector<256x16xbf16>
    %cst_71 = arith.constant dense<0.000000e+00> : vector<256x16xf32>
    %125 = tpu.matmul %124, %121, %cst_71 {dimension_numbers = #tpu.dot_dimension_numbers<[1], [0], [0], [1], [0, 0, 1, 1], [], []>} : vector<256x16xbf16>, vector<16x16xbf16>, vector<256x16xf32> -> vector<256x16xf32>
    %126 = arith.addf %119, %125 : vector<256x16xf32>
    %c7_72 = arith.constant 7 : index
    %c0_73 = arith.constant 0 : index
    %c0_74 = arith.constant 0 : index
    %127 = vector.load %arg4[%c7_72, %c0_73, %c0_74] : memref<9x16x16xbf16, #tpu.memory_space<vmem>>, vector<1x16x16xbf16>
    %128 = vector.shape_cast %127 : vector<1x16x16xbf16> to vector<16x16xbf16>
    %129 = vector.extract_strided_slice %78 {offsets = [2, 1, 0], sizes = [16, 16, 16], strides = [1, 1, 1]} : vector<18x18x16xf32> to vector<16x16x16xf32>
    %130 = vector.shape_cast %129 : vector<16x16x16xf32> to vector<256x16xf32>
    %131 = arith.truncf %130 : vector<256x16xf32> to vector<256x16xbf16>
    %cst_75 = arith.constant dense<0.000000e+00> : vector<256x16xf32>
    %132 = tpu.matmul %131, %128, %cst_75 {dimension_numbers = #tpu.dot_dimension_numbers<[1], [0], [0], [1], [0, 0, 1, 1], [], []>} : vector<256x16xbf16>, vector<16x16xbf16>, vector<256x16xf32> -> vector<256x16xf32>
    %133 = arith.addf %126, %132 : vector<256x16xf32>
    %c8_76 = arith.constant 8 : index
    %c0_77 = arith.constant 0 : index
    %c0_78 = arith.constant 0 : index
    %134 = vector.load %arg4[%c8_76, %c0_77, %c0_78] : memref<9x16x16xbf16, #tpu.memory_space<vmem>>, vector<1x16x16xbf16>
    %135 = vector.shape_cast %134 : vector<1x16x16xbf16> to vector<16x16xbf16>
    %136 = vector.extract_strided_slice %78 {offsets = [2, 2, 0], sizes = [16, 16, 16], strides = [1, 1, 1]} : vector<18x18x16xf32> to vector<16x16x16xf32>
    %137 = vector.shape_cast %136 : vector<16x16x16xf32> to vector<256x16xf32>
    %138 = arith.truncf %137 : vector<256x16xf32> to vector<256x16xbf16>
    %cst_79 = arith.constant dense<0.000000e+00> : vector<256x16xf32>
    %139 = tpu.matmul %138, %135, %cst_79 {dimension_numbers = #tpu.dot_dimension_numbers<[1], [0], [0], [1], [0, 0, 1, 1], [], []>} : vector<256x16xbf16>, vector<16x16xbf16>, vector<256x16xf32> -> vector<256x16xf32>
    %140 = arith.addf %133, %139 : vector<256x16xf32>
    %c0_80 = arith.constant 0 : index
    %c0_81 = arith.constant 0 : index
    %141 = vector.load %arg5[%c0_80, %c0_81] : memref<1x16xf32, #tpu.memory_space<vmem>>, vector<1x16xf32>
    %142 = vector.broadcast %141 : vector<1x16xf32> to vector<256x16xf32>
    %143 = arith.addf %140, %142 : vector<256x16xf32>
    %144 = arith.addf %73, %143 : vector<256x16xf32>
    %c0_82 = arith.constant 0 : index
    %c0_83 = arith.constant 0 : index
    %c0_84 = arith.constant 0 : index
    %145 = vector.load %arg6[%c0_82, %c0_83, %c0_84] : memref<1x256x16xf32, #tpu.memory_space<vmem>>, vector<1x256x16xf32>
    %146 = vector.shape_cast %145 : vector<1x256x16xf32> to vector<256x16xf32>
    %147 = arith.addf %144, %146 : vector<256x16xf32>
    %c0_85 = arith.constant 0 : index
    %c0_86 = arith.constant 0 : index
    %148 = vector.load %arg7[%c0_85, %c0_86] : memref<16x128xf32, #tpu.memory_space<vmem>>, vector<16x128xf32>
    %cst_87 = arith.constant dense<0.000000e+00> : vector<256x128xf32>
    %149 = tpu.matmul %147, %148, %cst_87 {dimension_numbers = #tpu.dot_dimension_numbers<[1], [0], [0], [1], [0, 0, 1, 1], [], []>} : vector<256x16xf32>, vector<16x128xf32>, vector<256x128xf32> -> vector<256x128xf32>
    %c0_88 = arith.constant 0 : index
    %c0_89 = arith.constant 0 : index
    %150 = vector.load %arg8[%c0_88, %c0_89] : memref<1x128xf32, #tpu.memory_space<vmem>>, vector<1x128xf32>
    %151 = vector.broadcast %150 : vector<1x128xf32> to vector<256x128xf32>
    %152 = arith.addf %149, %151 : vector<256x128xf32>
    %c0_90 = arith.constant 0 : index
    %c0_91 = arith.constant 0 : index
    %c0_92 = arith.constant 0 : index
    %153 = vector.load %arg9[%c0_90, %c0_91, %c0_92] : memref<1x256x128xf32, #tpu.memory_space<vmem>>, vector<1x256x128xf32>
    %154 = vector.shape_cast %153 : vector<1x256x128xf32> to vector<256x128xf32>
    %155 = vector.shape_cast %152 : vector<256x128xf32> to vector<1x256x128xf32>
    tpu.vector_store %arg9[%c0_90, %c0_91, %c0_92], %155 {strides = array<i32>} : memref<1x256x128xf32, #tpu.memory_space<vmem>>, vector<1x256x128xf32>,
    return
  }
  func.func @transform_0(%arg0: i32) -> (i32, i32, i32, i32) {
    %c0_i32 = arith.constant 0 : i32
    %c0_i32_0 = arith.constant 0 : i32
    %c0_i32_1 = arith.constant 0 : i32
    %c0_i32_2 = arith.constant 0 : i32
    return %arg0, %c0_i32, %c0_i32_0, %c0_i32_1 : i32, i32, i32, i32
  }
  func.func @transform_1(%arg0: i32) -> (i32, i32, i32) {
    %c0_i32 = arith.constant 0 : i32
    %c0_i32_0 = arith.constant 0 : i32
    %c0_i32_1 = arith.constant 0 : i32
    %c0_i32_2 = arith.constant 0 : i32
    return %c0_i32, %c0_i32_0, %c0_i32_1 : i32, i32, i32
  }
  func.func @transform_2(%arg0: i32) -> (i32, i32) {
    %c0_i32 = arith.constant 0 : i32
    %c0_i32_0 = arith.constant 0 : i32
    %c0_i32_1 = arith.constant 0 : i32
    return %c0_i32, %c0_i32_0 : i32, i32
  }
  func.func @transform_3(%arg0: i32) -> (i32, i32, i32) {
    %c0_i32 = arith.constant 0 : i32
    %c0_i32_0 = arith.constant 0 : i32
    %c0_i32_1 = arith.constant 0 : i32
    %c0_i32_2 = arith.constant 0 : i32
    return %c0_i32, %c0_i32_0, %c0_i32_1 : i32, i32, i32
  }
  func.func @transform_4(%arg0: i32) -> (i32, i32) {
    %c0_i32 = arith.constant 0 : i32
    %c0_i32_0 = arith.constant 0 : i32
    %c0_i32_1 = arith.constant 0 : i32
    return %c0_i32, %c0_i32_0 : i32, i32
  }
  func.func @transform_5(%arg0: i32) -> (i32, i32, i32) {
    %c0_i32 = arith.constant 0 : i32
    %c0_i32_0 = arith.constant 0 : i32
    %c0_i32_1 = arith.constant 0 : i32
    return %arg0, %c0_i32, %c0_i32_0 : i32, i32, i32
  }
  func.func @transform_6(%arg0: i32) -> (i32, i32) {
    %c0_i32 = arith.constant 0 : i32
    %c0_i32_0 = arith.constant 0 : i32
    %c0_i32_1 = arith.constant 0 : i32
    return %c0_i32, %c0_i32_0 : i32, i32
  }
  func.func @transform_7(%arg0: i32) -> (i32, i32) {
    %c0_i32 = arith.constant 0 : i32
    %c0_i32_0 = arith.constant 0 : i32
    %c0_i32_1 = arith.constant 0 : i32
    return %c0_i32, %c0_i32_0 : i32, i32
  }
  func.func @transform_8(%arg0: i32) -> (i32, i32, i32) {
    %c0_i32 = arith.constant 0 : i32
    %c0_i32_0 = arith.constant 0 : i32
    %c0_i32_1 = arith.constant 0 : i32
    return %arg0, %c0_i32, %c0_i32_0 : i32, i32, i32
  }
}

</mosaic_0001>

<bundles_post_ra>
// kernel: flow_yolo_forward.1
= control target key start
LH: loop header
LB: loop body
LE: loop exit
PB: predicated region body
PF: predicated region fallthrough
CT: control target
= control target key end

     0   :  { %s8118_s27 = smov 0   ;;  %s10309_s0 = inlined_call_operand.vmem [shape: f32[2,18,18,9], index: 0, kind: input, shape index: {}]   ;;  %s10310_s1 = inlined_call_operand.vmem [shape: bf16[9,9,32], index: 1, kind: input, shape index: {}]   ;;  %s10311_s2 = inlined_call_operand.vmem [shape: f32[1,32], index: 2, kind: input, shape index: {}]   ;;  %s10312_s3 = inlined_call_operand.vmem [shape: bf16[9,16,16], index: 3, kind: input, shape index: {}]   ;;  %s10313_s4 = inlined_call_operand.vmem [shape: f32[1,16], index: 4, kind: input, shape index: {}]   ;;  %s10314_s5 = inlined_call_operand.vmem [shape: f32[2,256,16], index: 5, kind: input, shape index: {}]   ;;  %s10315_s6 = inlined_call_operand.vmem [shape: f32[16,128], index: 6, kind: input, shape index: {}]   ;;  %s10316_s7 = inlined_call_operand.vmem [shape: f32[1,128], index: 7, kind: input, shape index: {}]   ;;  %s10317_s8 = inlined_call_operand.vmem [shape: f32[2,256,128], index: 8, kind: output, shape index: {}]  }
   0x1 LB: > { %s6118_s28 = sadd.s32 4294967295, %s8067_s27   ;;  %p6122_p0 = scmp.ge.s32.totalorder %s8067_s27, 1  ;;  %s8067_s27 = sphi %s8118_s27, %s18_s27  }
   0x2   : > { %p272_p1 = scmp.lt.s32.totalorder %s8067_s27, 3 }
   0x4   : > { %p273_p2 = pnand %p6122_p0, %p272_p1 }
   0x6   : > { %276 = sbr.rel (%p273_p2) target bundleno = 1993 (0x7c9), region = 52 }
   0xd   : > { %v8040_v0 = vld [vmem:[%s10310_s1 + $0x8] sm:$0x1f]   ;;  %vm633_vm0 = vcmask 1043456   ;;  %vm634_vm1 = vcmask 1044480   ;;  %p311_p3 = scmp.lt.s32.totalorder %s6118_s28, 1  ;;  %v8069_v1 = vmov 65535  }
   0xe   : > { %v635_v2 = vsel %vm633_vm0, 4294967295, %v8069_v1  ;;  %v8041_v4 = vld [vmem:[%s10310_s1] sm:$0x1f]   ;;  %v8042_v7 = vld [vmem:[%s10310_s1 + $0x10] sm:$0x1f]   ;;  %vm450_vm2 = vcmask 1046528  }
   0xf   : > { %v8129_v3 = vsel %vm634_vm1, %v635_v2, 0  ;;  %s10509_s28 = smov (!%p311_p3, %s6118_s28), 1  ;;  %vm584_vm3 = vcmask 72704   ;;  %vm1021_vm4 = vcmask 1045504   ;;  %vm2816_vm5 = vcmask 130048   ;;  %s8071_s13 = smov 16  }
  0x10   : > { %v638_v5 = vand.u32 %v8040_v0, %v8129_v3  ;;  %s8027_s11 = smul.u32 432, %s10509_s28  ;;  %v855_v6 = vand.u32 %v8041_v4, %v8129_v3  ;;  %v8193_v30 = vand.u32 %v8042_v7, %v8129_v3  ;;  %vm2819_vm6 = vcmask 123904   ;;  %s6503_s9 = sshll.u32 %s10509_s28, 8 }
  0x11   : > { %s9835_s12 = scalar_lea.vmem %s10314_s5, %s6503_s9  ;;  %s8072_s20 = smov 112  }
  0x12   : > { %6845 = vmatprep.subr.bf16.mxu0 %v638_v5  ;;  %7513 = vmatprep.subr.bf16.mxu1 %v638_v5  ;;  %s8145_s16 = scalar_lea.vmem %s10309_s0, %s8027_s11  ;;  %s10240_s25 = scalar_lea.vmem %s10317_s8, %s6503_s9 }
  0x13   : > { %6846 = vmatpush3.bf16.msra.mxu0 %v638_v5  ;;  %7514 = vmatpush3.bf16.msra.mxu1 %v638_v5  ;;  %v8148_v8 = vld [vmem:[%s8145_s16] sm:$0xff]  ;;  %v8151_v9 = vld [vmem:[%s8145_s16 + $0x8] sm:$0xff]  ;;  %v8154_v10 = vld [vmem:[%s8145_s16 + $0x10] sm:$0x3] }
  0x14   : > { %6879 = vmatprep.subr.bf16.mxu0 %v855_v6  ;;  %v451_v11 = vrot.slane %v8148_v8, 1  ;;  %v452_v12 = vrot.slane %v8151_v9, 1  ;;  %v454_v13 = vrot.slane %v8154_v10, 1  ;;  %v8160_v14 = vld [vmem:[%s8145_s16 + $0x18] sm:$0xff]  ;;  %v8163_v15 = vld [vmem:[%s8145_s16 + $0x20] sm:$0xff]  ;;  %v8174_v22 = vld [vmem:[%s8145_s16 + $0x30] sm:$0xff] }
  0x15   : > { %v8166_v16 = vld [vmem:[%s8145_s16 + $0x28] sm:$0x3]  ;;  %v456_v17 = vrot.slane %v8160_v14, 1  ;;  %v457_v18 = vrot.slane %v8163_v15, 1  ;;  %v8177_v23 = vld [vmem:[%s8145_s16 + $0x38] sm:$0xff]  ;;  %v8187_v28 = vld [vmem:[%s8145_s16 + $0x50] sm:$0xff] }
  0x16   : > { %v453_v19 = vsel %vm450_vm2, %v451_v11, %v452_v12  ;;  %v455_v20 = vsel %vm450_vm2, %v452_v12, %v454_v13  ;;  %v459_v21 = vrot.slane %v8166_v16, 1  ;;  %v8180_v24 = vld [vmem:[%s8145_s16 + $0x40] sm:$0x3]  ;;  %v8184_v27 = vld [vmem:[%s8145_s16 + $0x48] sm:$0xff]  ;;  %v8190_v29 = vld [vmem:[%s8145_s16 + $0x58] sm:$0x3] }
  0x17   : > { %v563_v25 = vpack.c.bf16 %v455_v20, %v453_v19  ;;  %v458_v26 = vsel %vm450_vm2, %v456_v17, %v457_v18  ;;  %v461_v32 = vrot.slane %v8174_v22, 1  ;;  %v462_v33 = vrot.slane %v8177_v23, 1  ;;  %v8200_v35 = vld [vmem:[%s8145_s16 + $0x60] sm:$0xff]  ;;  %v8203_v36 = vld [vmem:[%s8145_s16 + $0x68] sm:$0xff]  ;;  %v8212_v41 = vld [vmem:[%s8145_s16 + $0x70] sm:$0x3] }
  0x18   : > { %v460_v31 = vsel %vm450_vm2, %v457_v18, %v459_v21  ;;  %v464_v34 = vrot.slane %v8180_v24, 1  ;;  %v466_v38 = vrot.slane %v8184_v27, 1  ;;  %v467_v39 = vrot.slane %v8187_v28, 1  ;;  %v8230_v52 = vld [vmem:[%s8145_s16 + $0x78] sm:$0xff]  ;;  %v8233_v53 = vld [vmem:[%s8145_s16 + $0x80] sm:$0xff]  ;;  %v8240_v55 = vld [vmem:[%s8145_s16 + $0x90] sm:$0xff] }
  0x19   : > { %6847 = vmatprep.mubr.msk.bf16.mxu0 %vm584_vm3, %v563_v25  ;;  %v8206_v37 = vpack.c.bf16 %v460_v31, %v458_v26  ;;  %v469_v40 = vrot.slane %v8190_v29, 1  ;;  %v463_v42 = vsel %vm450_vm2, %v461_v32, %v462_v33  ;;  %v471_v44 = vrot.slane %v8200_v35, 1  ;;  %v8236_v54 = vld [vmem:[%s8145_s16 + $0x88] sm:$0x3]  ;;  %v8243_v56 = vld [vmem:[%s8145_s16 + $0x98] sm:$0xff]  ;;  %v8264_v4 = vld [vmem:[%s8145_s16 + $0xb0] sm:$0xff] }
  0x1a   : > { %v465_v43 = vsel %vm450_vm2, %v462_v33, %v464_v34  ;;  %v472_v45 = vrot.slane %v8203_v36, 1  ;;  %v474_v47 = vrot.slane %v8212_v41, 1  ;;  %v468_v48 = vsel %vm450_vm2, %v466_v38, %v467_v39  ;;  %v8246_v57 = vld [vmem:[%s8145_s16 + $0xa0] sm:$0x3]  ;;  %v8259_v2 = vld [vmem:[%s8145_s16 + $0xa8] sm:$0xff] }
  0x1b   : > { %6848 = vmatmul.mubr.msk.bf16.vlgmr.msra.gmra.mrb[0].mxu0 %vm584_vm3, %v8206_v37  ;;  %v8220_v46 = vpack.c.bf16 %v465_v43, %v463_v42  ;;  %v470_v49 = vsel %vm450_vm2, %v467_v39, %v469_v40  ;;  %v476_v60 = vrot.slane %v8230_v52, 1  ;;  %v477_v61 = vrot.slane %v8233_v53, 1  ;;  %v8267_v5 = vld [vmem:[%s8145_s16 + $0xb8] sm:$0x3] }
  0x1c   : > { %6880 = vmatpush3.bf16.msra.mxu0 %v855_v6  ;;  %v473_v50 = vsel %vm450_vm2, %v471_v44, %v472_v45  ;;  %v475_v51 = vsel %vm450_vm2, %v472_v45, %v474_v47  ;;  %v8248_v58 = vpack.c.bf16 %v470_v49, %v468_v48  ;;  %v479_v62 = vrot.slane %v8236_v54, 1 }
  0x1d   : > { %6851 = vmatprep.mubr.msk.bf16.mxu0 %vm584_vm3, %v8220_v46  ;;  %6913 = vmatprep.subr.bf16.mxu0 %v8193_v30  ;;  %v8250_v59 = vpack.c.bf16 %v475_v51, %v473_v50  ;;  %v481_v63 = vrot.slane %v8240_v55, 1  ;;  %v482_v0 = vrot.slane %v8243_v56, 1  ;;  %v484_v1 = vrot.slane %v8246_v57, 1 }
  0x1e   : > { %v478_v6 = vsel %vm450_vm2, %v476_v60, %v477_v61  ;;  %v480_v7 = vsel %vm450_vm2, %v477_v61, %v479_v62  ;;  %v486_v13 = vrot.slane %v8259_v2, 1  ;;  %v487_v17 = vrot.slane %v8264_v4, 1 }
  0x1f   : > { %v483_v11 = vsel %vm450_vm2, %v481_v63, %v482_v0  ;;  %v485_v12 = vsel %vm450_vm2, %v482_v0, %v484_v1  ;;  %v489_v18 = vrot.slane %v8267_v5, 1  ;;  %v8278_v19 = vpack.c.bf16 %v480_v7, %v478_v6 }
  0x20   : > { %v8280_v20 = vpack.c.bf16 %v485_v12, %v483_v11  ;;  %v1022_v21 = vrot.slane %v8148_v8, 2  ;;  %v1023_v25 = vrot.slane %v8151_v9, 2  ;;  %v1025_v26 = vrot.slane %v8154_v10, 2 }
  0x21   : > { %v1027_v31 = vrot.slane %v8160_v14, 2  ;;  %v1028_v32 = vrot.slane %v8163_v15, 2  ;;  %v1030_v33 = vrot.slane %v8166_v16, 2  ;;  %v488_v34 = vsel %vm450_vm2, %v486_v13, %v487_v17  ;;  %v8043_v13 = vld [vmem:[%s10310_s1 + $0x18] sm:$0x1f]  }
  0x22   : > { %v490_v38 = vsel %vm450_vm2, %v487_v17, %v489_v18  ;;  %v383_v10 = vpack.c.bf16 %v8151_v9, %v8148_v8  ;;  %v8299_v40 = vsel %vm1021_vm4, %v1022_v21, %v1023_v25  ;;  %v8302_v16 = vsel %vm1021_vm4, %v1023_v25, %v1025_v26 }
  0x23   : > { %6852 = vmatmul.mubr.msk.bf16.gmra.mrb[4].mxu0 %vm584_vm3, %v8248_v58  ;;  %v8294_v39 = vpack.c.bf16 %v490_v38, %v488_v34  ;;  %v1134_v42 = vpack.c.bf16 %v8302_v16, %v8299_v40  ;;  %v1029_v43 = vsel %vm1021_vm4, %v1027_v31, %v1028_v32  ;;  %v1031_v44 = vsel %vm1021_vm4, %v1028_v32, %v1030_v33  ;;  %v353_v40 = vld [vmem:[%s8145_s16 + $0xd0] sm:$0x3] }
  0x24   : > { %6855 = vmatprep.mubr.msk.bf16.mxu0 %vm584_vm3, %v8250_v59  ;;  %v1032_v45 = vrot.slane %v8174_v22, 2  ;;  %v8309_v47 = vpack.c.bf16 %v1031_v44, %v1029_v43  ;;  %v1033_v48 = vrot.slane %v8177_v23, 2  ;;  %v1035_v8 = vrot.slane %v8180_v24, 2 }
  0x25   : > { %v1037_v9 = vrot.slane %v8184_v27, 2  ;;  %v1038_v49 = vrot.slane %v8187_v28, 2  ;;  %v1040_v50 = vrot.slane %v8190_v29, 2  ;;  %v1042_v51 = vrot.slane %v8200_v35, 2 }
  0x26   : > { %v1043_v60 = vrot.slane %v8203_v36, 2  ;;  %v1034_v61 = vsel %vm1021_vm4, %v1032_v45, %v1033_v48  ;;  %v1036_v62 = vsel %vm1021_vm4, %v1033_v48, %v1035_v8  ;;  %v1045_v63 = vrot.slane %v8212_v41, 2 }
  0x27   : > { %v1047_v0 = vrot.slane %v8230_v52, 2  ;;  %v8322_v1 = vpack.c.bf16 %v1036_v62, %v1034_v61  ;;  %v1039_v24 = vsel %vm1021_vm4, %v1037_v9, %v1038_v49  ;;  %v1041_v6 = vsel %vm1021_vm4, %v1038_v49, %v1040_v50  ;;  %v8439_v49 = vld [vmem:[%s8145_s16 + $0x120] sm:$0xff]  ;;  %v8442_v50 = vld [vmem:[%s8145_s16 + $0x128] sm:$0xff]  ;;  %v8457_v61 = vld [vmem:[%s8145_s16 + $0x138] sm:$0xff] }
  0x28   : > { %v1044_v29 = vsel %vm1021_vm4, %v1042_v51, %v1043_v60  ;;  %v8329_v7 = vpack.c.bf16 %v1041_v6, %v1039_v24  ;;  %v1046_v11 = vsel %vm1021_vm4, %v1043_v60, %v1045_v63  ;;  %v1048_v12 = vrot.slane %v8233_v53, 2  ;;  %v8460_v62 = vld [vmem:[%s8145_s16 + $0x140] sm:$0xff]  ;;  %v8463_v63 = vld [vmem:[%s8145_s16 + $0x150] sm:$0xff] }
  0x29   : > { %v1050_v41 = vrot.slane %v8236_v54, 2  ;;  %v8338_v17 = vpack.c.bf16 %v1046_v11, %v1044_v29  ;;  %v1052_v18 = vrot.slane %v8240_v55, 2  ;;  %v1053_v21 = vrot.slane %v8243_v56, 2  ;;  %v8481_v29 = vld [vmem:[%s8145_s16 + $0x168] sm:$0xff]  ;;  %v8484_v11 = vld [vmem:[%s8145_s16 + $0x170] sm:$0xff] }
  0x2a   : > { %v1055_v25 = vrot.slane %v8246_v57, 2  ;;  %v1049_v26 = vsel %vm1021_vm4, %v1047_v0, %v1048_v12  ;;  %v1057_v54 = vrot.slane %v8259_v2, 2  ;;  %v1058_v32 = vrot.slane %v8264_v4, 2  ;;  %v8466_v0 = vld [vmem:[%s8145_s16 + $0x158] sm:$0xff] }
  0x2b   : > { %6856 = vmatmul.mubr.msk.bf16.gmra.mrb[8].mxu0 %vm584_vm3, %v8278_v19  ;;  %v1051_v31 = vsel %vm1021_vm4, %v1048_v12, %v1050_v41  ;;  %v1054_v34 = vsel %vm1021_vm4, %v1052_v18, %v1053_v21  ;;  %v8354_v43 = vpack.c.bf16 %v8163_v15, %v8160_v14  ;;  %v8361_v45 = vpack.c.bf16 %v8177_v23, %v8174_v22  ;;  %v8044_v41 = vld [vmem:[%s10310_s1 + $0x20] sm:$0x1f]  }
  0x2c   : > { %6859 = vmatprep.mubr.msk.bf16.mxu0 %vm584_vm3, %v8280_v20  ;;  %v8347_v33 = vpack.c.bf16 %v1051_v31, %v1049_v26  ;;  %v1056_v38 = vsel %vm1021_vm4, %v1053_v21, %v1055_v25  ;;  %v1059_v44 = vsel %vm1021_vm4, %v1057_v54, %v1058_v32  ;;  %v1412_v8 = vand.u32 %v8043_v13, %v8129_v3 }
  0x2d   : > { %v8356_v57 = vpack.c.bf16 %v1056_v38, %v1054_v34  ;;  %v8374_v14 = vpack.c.bf16 %v8187_v28, %v8184_v27  ;;  %v8378_v15 = vpack.c.bf16 %v8203_v36, %v8200_v35  ;;  %v8386_v22 = vpack.c.bf16 %v8233_v53, %v8230_v52  ;;  %v351_v27 = vld [vmem:[%s8145_s16 + $0xc0] sm:$0xff]  ;;  %v352_v28 = vld [vmem:[%s8145_s16 + $0xc8] sm:$0xff]  ;;  %v8409_v36 = vld [vmem:[%s8145_s16 + $0xd8] sm:$0xff] }
  0x2e   : > { %v8390_v23 = vpack.c.bf16 %v8243_v56, %v8240_v55  ;;  %v8402_v35 = vpack.c.bf16 %v352_v28, %v351_v27  ;;  %v8412_v52 = vld [vmem:[%s8145_s16 + $0xe0] sm:$0xff]  ;;  %v8415_v53 = vld [vmem:[%s8145_s16 + $0xf0] sm:$0xff]  ;;  %v8418_v55 = vld [vmem:[%s8145_s16 + $0xf8] sm:$0xff]  ;;  %v8450_v60 = vpack.c.bf16 %v8442_v50, %v8439_v49  ;;  %v8470_v24 = vpack.c.bf16 %v8460_v62, %v8457_v61 }
  0x2f   : > { %10389 = vst [vmem:[#allocation3_spill] sm:$0xff] %v8356_v57  ;;  %v8422_v56 = vpack.c.bf16 %v8412_v52, %v8409_v36  ;;  %v8474_v6 = vpack.c.bf16 %v8466_v0, %v8463_v63  ;;  %v8488_v12 = vpack.c.bf16 %v8484_v11, %v8481_v29  ;;  %v8500_v13 = vand.u32 %v8044_v41, %v8129_v3  ;;  %v356_v34 = vld [vmem:[%s8145_s16 + $0xe8] sm:$0x3] }
  0x30   : > { %v491_v16 = vrot.slane %v351_v27, 1  ;;  %v1062_v18 = vrot.slane %v351_v27, 2  ;;  %v1063_v21 = vrot.slane %v352_v28, 2  ;;  %v1065_v25 = vrot.slane %v353_v40, 2 }
  0x31   : > { %v494_v31 = vrot.slane %v353_v40, 1  ;;  %v496_v38 = vrot.slane %v8409_v36, 1  ;;  %v1068_v27 = vrot.slane %v8412_v52, 2  ;;  %v501_v41 = vrot.slane %v8415_v53, 1 }
  0x32   : > { %v1064_v54 = vsel %vm1021_vm4, %v1062_v18, %v1063_v21  ;;  %v502_v40 = vrot.slane %v8418_v55, 1  ;;  %v1070_v18 = vrot.slane %v356_v34, 2 }
  0x33   : > { %6860 = vmatmul.mubr.msk.bf16.gmra.mrb[12].mxu0 %vm584_vm3, %v8294_v39 }
  0x34   : > { %6881 = vmatprep.mubr.msk.bf16.mxu0 %vm584_vm3, %v383_v10  ;;  %v1060_v10 = vrot.slane %v8267_v5, 2  ;;  %v8436_v5 = vld [vmem:[%s8145_s16 + $0x110] sm:$0xff] }
  0x36   : > { %v1061_v48 = vsel %vm1021_vm4, %v1058_v32, %v1060_v10  ;;  %v1066_v32 = vsel %vm1021_vm4, %v1063_v21, %v1065_v25  ;;  %v359_v10 = vld [vmem:[%s8145_s16 + $0x100] sm:$0x3]  ;;  %v1072_v21 = vrot.slane %v8415_v53, 2 }
  0x37   : > { %v8365_v9 = vpack.c.bf16 %v1061_v48, %v1059_v44  ;;  %v497_v48 = vrot.slane %v8412_v52, 1  ;;  %v1075_v25 = vrot.slane %v359_v10, 2  ;;  %v499_v52 = vrot.slane %v356_v34, 1 }
  0x38   : > { %v507_v34 = vrot.slane %v8436_v5, 1 }
  0x39   : > { %10390 = vst [vmem:[#allocation4_spill] sm:$0xff] %v8365_v9 }
  0x3b   : > { %6882 = vmatmul.mubr.msk.bf16.vlgmr.msra.gmra.mrb[0].mxu0 %vm584_vm3, %v8354_v43 }
  0x3c   : > { %6914 = vmatpush3.bf16.msra.mxu0 %v8193_v30  ;;  %6885 = vmatprep.mubr.msk.bf16.mxu0 %vm584_vm3, %v8361_v45  ;;  %v8400_v30 = vpack.c.bf16 %v8264_v4, %v8259_v2  ;;  %v8426_v2 = vpack.c.bf16 %v8418_v55, %v8415_v53  ;;  %v8433_v4 = vld [vmem:[%s8145_s16 + $0x108] sm:$0xff]  ;;  %v1071_v53 = vsel %vm1021_vm4, %v1068_v27, %v1070_v18 }
  0x3d   : > { %6947 = vmatprep.subr.bf16.mxu0 %v1412_v8  ;;  %v8446_v51 = vpack.c.bf16 %v8436_v5, %v8433_v4 }
  0x43   : > { %6886 = vmatmul.mubr.msk.bf16.gmra.mrb[4].mxu0 %vm584_vm3, %v8374_v14 }
  0x44   : > { %6889 = vmatprep.mubr.msk.bf16.mxu0 %vm584_vm3, %v8378_v15 }
  0x4b   : > { %6890 = vmatmul.mubr.msk.bf16.gmra.mrb[8].mxu0 %vm584_vm3, %v8386_v22 }
  0x4c   : > { %6893 = vmatprep.mubr.msk.bf16.mxu0 %vm584_vm3, %v8390_v23 }
  0x53   : > { %6894 = vmatmul.mubr.msk.bf16.gmra.mrb[12].mxu0 %vm584_vm3, %v8400_v30 }
  0x54   : > { %6897 = vmatprep.mubr.msk.bf16.mxu0 %vm584_vm3, %v8402_v35 }
  0x5b   : > { %6898 = vmatmul.mubr.msk.bf16.gmra.mrb[16].mxu0 %vm584_vm3, %v8422_v56 }
  0x5c   : > { %6901 = vmatprep.mubr.msk.bf16.mxu0 %vm584_vm3, %v8426_v2 }
  0x63   : > { %6902 = vmatmul.mubr.msk.bf16.gmra.mrb[20].mxu0 %vm584_vm3, %v8446_v51 }
  0x64   : > { %6905 = vmatprep.mubr.msk.bf16.mxu0 %vm584_vm3, %v8450_v60 }
  0x6b   : > { %6906 = vmatmul.mubr.msk.bf16.gmra.mrb[24].mxu0 %vm584_vm3, %v8470_v24 }
  0x6c   : > { %6909 = vmatprep.mubr.msk.bf16.mxu0 %vm584_vm3, %v8474_v6 }
  0x73   : > { %6910 = vmatmul.mubr.msk.bf16.gmra.mrb[28].mxu0 %vm584_vm3, %v8488_v12 }
  0x74   : > { %6915 = vmatprep.mubr.msk.bf16.mxu0 %vm584_vm3, %v1134_v42  ;;  %v492_v42 = vrot.slane %v352_v28, 1 }
  0x76   : > { %v493_v26 = vsel %vm450_vm2, %v491_v16, %v492_v42  ;;  %v495_v44 = vsel %vm450_vm2, %v492_v42, %v494_v31  ;;  %v8530_v16 = vpack.c.bf16 %v1066_v32, %v1064_v54  ;;  %v1073_v42 = vrot.slane %v8418_v55, 2 }
  0x77   : > { %v8526_v28 = vpack.c.bf16 %v495_v44, %v493_v26  ;;  %v503_v55 = vsel %vm450_vm2, %v501_v41, %v502_v40  ;;  %v504_v31 = vrot.slane %v359_v10, 1  ;;  %v362_v44 = vld [vmem:[%s8145_s16 + $0x118] sm:$0x3]  ;;  %v1078_v10 = vrot.slane %v8436_v5, 2 }
  0x78   : > { %10391 = vst [vmem:[#allocation5_spill] sm:$0xff] %v8530_v16  ;;  %v1074_v54 = vsel %vm1021_vm4, %v1072_v21, %v1073_v42  ;;  %v1076_v32 = vsel %vm1021_vm4, %v1073_v42, %v1075_v25  ;;  %v511_v21 = vrot.slane %v8439_v49, 1  ;;  %v1080_v25 = vrot.slane %v362_v44, 2 }
  0x79   : > { %6863 = vmatprep.mubr.msk.bf16.mxu1 %vm584_vm3, %v8526_v28  ;;  %v8562_v42 = vpack.c.bf16 %v1076_v32, %v1074_v54  ;;  %v516_v32 = vrot.slane %v8457_v61, 1 }
  0x7b   : > { %6916 = vmatmul.mubr.msk.bf16.vlgmr.msra.gmra.mrb[0].mxu0 %vm584_vm3, %v8309_v47 }
  0x7c   : > { %6948 = vmatpush3.bf16.msra.mxu0 %v1412_v8  ;;  %6919 = vmatprep.mubr.msk.bf16.mxu0 %vm584_vm3, %v8322_v1  ;;  %v1067_v8 = vrot.slane %v8409_v36, 2  ;;  %v498_v36 = vsel %vm450_vm2, %v496_v38, %v497_v48  ;;  %v506_v38 = vrot.slane %v8433_v4, 1 }
  0x7d   : > { %6981 = vmatprep.subr.bf16.mxu0 %v8500_v13 }
  0x7e   : > { %v1069_v26 = vsel %vm1021_vm4, %v1067_v8, %v1068_v27  ;;  %v505_v8 = vsel %vm450_vm2, %v502_v40, %v504_v31  ;;  %v1077_v27 = vrot.slane %v8433_v4, 2  ;;  %v1083_v4 = vrot.slane %v8442_v50, 2  ;;  %v368_v31 = vld [vmem:[%s8145_s16 + $0x148] sm:$0x3] }
  0x7f   : > { %v8556_v41 = vpack.c.bf16 %v1071_v53, %v1069_v26  ;;  %v8558_v18 = vpack.c.bf16 %v505_v8, %v503_v55  ;;  %v508_v40 = vsel %vm450_vm2, %v506_v38, %v507_v34  ;;  %v371_v38 = vld [vmem:[%s8145_s16 + $0x160] sm:$0x3] }
  0x83   : > { %6920 = vmatmul.mubr.msk.bf16.gmra.mrb[4].mxu0 %vm584_vm3, %v8329_v7 }
  0x84   : > { %6923 = vmatprep.mubr.msk.bf16.mxu0 %vm584_vm3, %v8338_v17 }
  0x8b   : > { %6924 = vmatmul.mubr.msk.bf16.gmra.mrb[8].mxu0 %vm584_vm3, %v8347_v33 }
  0x8c   : > { %6927 = vmatprep.mubr.msk.bf16.mxu0 %vm584_vm3, %v8356_v57  ;;  %v365_v57 = vld [vmem:[%s8145_s16 + $0x130] sm:$0x3] }
  0x8d   : > { %v1085_v5 = vrot.slane %v365_v57, 2  ;;  %v514_v26 = vrot.slane %v365_v57, 1  ;;  %v1088_v57 = vrot.slane %v8460_v62, 2 }
  0x8f   : > { %v1086_v55 = vsel %vm1021_vm4, %v1083_v4, %v1085_v5  ;;  %v1090_v5 = vrot.slane %v368_v31, 2 }
  0x93   : > { %6928 = vmatmul.mubr.msk.bf16.gmra.mrb[12].mxu0 %vm584_vm3, %v8365_v9  ;;  %v500_v9 = vsel %vm450_vm2, %v497_v48, %v499_v52  ;;  %v512_v48 = vrot.slane %v8442_v50, 1  ;;  %v1079_v52 = vsel %vm1021_vm4, %v1077_v27, %v1078_v10 }
  0x94   : > { %6931 = vmatprep.mubr.msk.bf16.mxu0 %vm584_vm3, %v8530_v16  ;;  %v8551_v16 = vpack.c.bf16 %v500_v9, %v498_v36  ;;  %v1082_v9 = vrot.slane %v8439_v49, 2  ;;  %v509_v36 = vrot.slane %v362_v44, 1  ;;  %v1081_v49 = vsel %vm1021_vm4, %v1078_v10, %v1080_v25 }
  0x95   : > { %v513_v50 = vsel %vm450_vm2, %v511_v21, %v512_v48  ;;  %v517_v44 = vrot.slane %v8460_v62, 1  ;;  %v515_v27 = vsel %vm450_vm2, %v512_v48, %v514_v26  ;;  %v1087_v10 = vrot.slane %v8457_v61, 2 }
  0x96   : > { %6864 = vmatmul.mubr.msk.bf16.vlgmr.msra.gmra.mrb[0].mxu1 %vm584_vm3, %v8551_v16  ;;  %v1084_v53 = vsel %vm1021_vm4, %v1082_v9, %v1083_v4  ;;  %v510_v54 = vsel %vm450_vm2, %v507_v34, %v509_v36  ;;  %v8590_v21 = vpack.c.bf16 %v1081_v49, %v1079_v52  ;;  %v8592_v25 = vpack.c.bf16 %v515_v27, %v513_v50 }
  0x97   : > { %6867 = vmatprep.mubr.msk.bf16.mxu1 %vm584_vm3, %v8558_v18  ;;  %v8585_v8 = vpack.c.bf16 %v510_v54, %v508_v40  ;;  %v521_v9 = vrot.slane %v8463_v63, 1  ;;  %v522_v34 = vrot.slane %v8466_v0, 1  ;;  %v8596_v4 = vpack.c.bf16 %v1086_v55, %v1084_v53  ;;  %v374_v53 = vld [vmem:[%s8145_s16 + $0x178] sm:$0x3] }
  0x98   : > { %v1092_v48 = vrot.slane %v8463_v63, 2  ;;  %v1093_v61 = vrot.slane %v8466_v0, 2  ;;  %v1095_v62 = vrot.slane %v371_v38, 2  ;;  %v518_v40 = vsel %vm450_vm2, %v516_v32, %v517_v44 }
  0x99   : > { %v519_v36 = vrot.slane %v368_v31, 1  ;;  %v1089_v52 = vsel %vm1021_vm4, %v1087_v10, %v1088_v57  ;;  %v1091_v49 = vsel %vm1021_vm4, %v1088_v57, %v1090_v5  ;;  %v523_v63 = vsel %vm450_vm2, %v521_v9, %v522_v34 }
  0x9a   : > { %v524_v0 = vrot.slane %v371_v38, 1  ;;  %v1094_v50 = vsel %vm1021_vm4, %v1092_v48, %v1093_v61  ;;  %v1096_v26 = vsel %vm1021_vm4, %v1093_v61, %v1095_v62  ;;  %v526_v32 = vrot.slane %v8481_v29, 1 }
  0x9b   : > { %6932 = vmatmul.mubr.msk.bf16.gmra.mrb[16].mxu0 %vm584_vm3, %v8556_v41  ;;  %v520_v55 = vsel %vm450_vm2, %v517_v44, %v519_v36  ;;  %v527_v27 = vrot.slane %v8484_v11, 1  ;;  %v8621_v10 = vpack.c.bf16 %v1091_v49, %v1089_v52  ;;  %v1097_v38 = vrot.slane %v8481_v29, 2  ;;  %v8045_v36 = vld [vmem:[%s10310_s1 + $0x28] sm:$0x1f]  }
  0x9c   : > { %6935 = vmatprep.mubr.msk.bf16.mxu0 %vm584_vm3, %v8562_v42  ;;  %v8616_v54 = vpack.c.bf16 %v520_v55, %v518_v40  ;;  %v525_v31 = vsel %vm450_vm2, %v522_v34, %v524_v0  ;;  %v1098_v9 = vrot.slane %v8484_v11, 2  ;;  %v8627_v5 = vpack.c.bf16 %v1096_v26, %v1094_v50  ;;  %v377_v0 = vld [vmem:[%s8145_s16 + $0x190] sm:$0x3] }
  0x9d   : > { %v8623_v57 = vpack.c.bf16 %v525_v31, %v523_v63  ;;  %v1100_v48 = vrot.slane %v374_v53, 2  ;;  %v528_v44 = vsel %vm450_vm2, %v526_v32, %v527_v27  ;;  %v529_v34 = vrot.slane %v374_v53, 1  ;;  %v8046_v32 = vld [vmem:[%s10310_s1 + $0x30] sm:$0x1f]  }
  0x9e   : > { %6868 = vmatmul.mubr.msk.bf16.gmra.mrb[4].mxu1 %vm584_vm3, %v8585_v8  ;;  %v1099_v29 = vsel %vm1021_vm4, %v1097_v38, %v1098_v9  ;;  %v1845_v52 = vand.u32 %v8045_v36, %v8129_v3  ;;  %v1831_v26 = vrot.slane %v377_v0, 2  ;;  %v10394_v36 = vld [vmem:[#allocation5_spill] sm:$0xff] }
  0x9f   : > { %6871 = vmatprep.mubr.msk.bf16.mxu1 %vm584_vm3, %v8592_v25  ;;  %v1101_v11 = vsel %vm1021_vm4, %v1098_v9, %v1100_v48  ;;  %v530_v61 = vsel %vm450_vm2, %v527_v27, %v529_v34  ;;  %v2053_v27 = vand.u32 %v8046_v32, %v8129_v3  ;;  %v1616_v9 = vrot.slane %v377_v0, 1 }
  0xa0   : > { %v8641_v62 = vpack.c.bf16 %v530_v61, %v528_v44  ;;  %v8643_v40 = vpack.c.bf16 %v1101_v11, %v1099_v29  ;;  %v8047_v29 = vld [vmem:[%s10310_s1 + $0x38] sm:$0x1f]  }
  0xa1   : > { %v2271_v11 = vand.u32 %v8047_v29, %v8129_v3  ;;  %v10393_v61 = vld [vmem:[#allocation4_spill] sm:$0xff] }
  0xa3   : > { %6936 = vmatmul.mubr.msk.bf16.gmra.mrb[20].mxu0 %vm584_vm3, %v8590_v21 }
  0xa4   : > { %6939 = vmatprep.mubr.msk.bf16.mxu0 %vm584_vm3, %v8596_v4 }
  0xa6   : > { %6872 = vmatmul.mubr.msk.bf16.gmra.mrb[8].mxu1 %vm584_vm3, %v8616_v54 }
  0xa7   : > { %6875 = vmatprep.mubr.msk.bf16.mxu1 %vm584_vm3, %v8623_v57 }
  0xab   : > { %6940 = vmatmul.mubr.msk.bf16.gmra.mrb[24].mxu0 %vm584_vm3, %v8621_v10 }
  0xac   : > { %6943 = vmatprep.mubr.msk.bf16.mxu0 %vm584_vm3, %v8627_v5 }
  0xae   : > { %6876 = vmatmul.mubr.msk.bf16.gmra.mrb[12].mxu1 %vm584_vm3, %v8641_v62 }
  0xb3   : > { %6944 = vmatmul.mubr.msk.bf16.gmra.mrb[28].mxu0 %vm584_vm3, %v8643_v40 }
  0xb4   : > { %6949 = vmatprep.mubr.msk.bf16.mxu0 %vm584_vm3, %v8354_v43  ;;  %v375_v43 = vld [vmem:[%s8145_s16 + $0x180] sm:$0xff] }
  0xb5   : > { %v1828_v49 = vrot.slane %v375_v43, 2 }
  0xbb   : > { %6950 = vmatmul.mubr.msk.bf16.vlgmr.msra.gmra.mrb[0].mxu0 %vm584_vm3, %v8361_v45 }
  0xbc   : > { %6982 = vmatpush3.bf16.msra.mxu0 %v8500_v13  ;;  %6953 = vmatprep.mubr.msk.bf16.mxu0 %vm584_vm3, %v8374_v14  ;;  %v376_v13 = vld [vmem:[%s8145_s16 + $0x188] sm:$0xff] }
  0xbd   : > { %7015 = vmatprep.subr.bf16.mxu0 %v1845_v52  ;;  %v1829_v63 = vrot.slane %v376_v13, 2  ;;  %v8689_v55 = vpack.c.bf16 %v376_v13, %v375_v43  ;;  %v1614_v38 = vrot.slane %v376_v13, 1 }
  0xbf   : > { %v1830_v50 = vsel %vm1021_vm4, %v1828_v49, %v1829_v63  ;;  %v1832_v53 = vsel %vm1021_vm4, %v1829_v63, %v1831_v26  ;;  %v1617_v44 = vsel %vm450_vm2, %v1614_v38, %v1616_v9 }
  0xc0   : > { %v8691_v31 = vpack.c.bf16 %v1832_v53, %v1830_v50  ;;  %v8982_v50 = vld [vmem:[%s10311_s2] ss:$0 sm:$0xff] }
  0xc3   : > { %6954 = vmatmul.mubr.msk.bf16.gmra.mrb[4].mxu0 %vm584_vm3, %v8378_v15 }
  0xc4   : > { %6957 = vmatprep.mubr.msk.bf16.mxu0 %vm584_vm3, %v8386_v22 }
  0xcb   : > { %6958 = vmatmul.mubr.msk.bf16.gmra.mrb[8].mxu0 %vm584_vm3, %v8390_v23 }
  0xcc   : > { %6961 = vmatprep.mubr.msk.bf16.mxu0 %vm584_vm3, %v8400_v30 }
  0xd3   : > { %6962 = vmatmul.mubr.msk.bf16.gmra.mrb[12].mxu0 %vm584_vm3, %v8402_v35 }
  0xd4   : > { %6965 = vmatprep.mubr.msk.bf16.mxu0 %vm584_vm3, %v8422_v56 }
  0xdb   : > { %6966 = vmatmul.mubr.msk.bf16.gmra.mrb[16].mxu0 %vm584_vm3, %v8426_v2 }
  0xdc   : > { %6969 = vmatprep.mubr.msk.bf16.mxu0 %vm584_vm3, %v8446_v51 }
  0xe3   : > { %6970 = vmatmul.mubr.msk.bf16.gmra.mrb[20].mxu0 %vm584_vm3, %v8450_v60 }
  0xe4   : > { %6973 = vmatprep.mubr.msk.bf16.mxu0 %vm584_vm3, %v8470_v24 }
  0xeb   : > { %6974 = vmatmul.mubr.msk.bf16.gmra.mrb[24].mxu0 %vm584_vm3, %v8474_v6 }
  0xec   : > { %6977 = vmatprep.mubr.msk.bf16.mxu0 %vm584_vm3, %v8488_v12 }
  0xf3   : > { %6978 = vmatmul.mubr.msk.bf16.gmra.mrb[28].mxu0 %vm584_vm3, %v8689_v55 }
  0xf4   : > { %6983 = vmatprep.mubr.msk.bf16.mxu0 %vm584_vm3, %v8206_v37  ;;  %v1613_v37 = vrot.slane %v375_v43, 1 }
  0xf6   : > { %v1615_v48 = vsel %vm450_vm2, %v1613_v37, %v1614_v38 }
  0xf7   : > { %v8731_v34 = vpack.c.bf16 %v1617_v44, %v1615_v48 }
  0xfb   : > { %6984 = vmatmul.mubr.msk.bf16.vlgmr.msra.gmra.mrb[0].mxu0 %vm584_vm3, %v8220_v46 }
  0xfc   : > { %7016 = vmatpush3.bf16.msra.mxu0 %v1845_v52  ;;  %6987 = vmatprep.mubr.msk.bf16.mxu0 %vm584_vm3, %v8248_v58  ;;  %v8048_v52 = vld [vmem:[%s10310_s1 + $0x40] sm:$0x1f]  }
  0xfd   : > { %7049 = vmatprep.subr.bf16.mxu0 %v2053_v27  ;;  %v2486_v43 = vand.u32 %v8048_v52, %v8129_v3  ;;  %v378_v3 = vld [vmem:[%s8145_s16 + $0x198] sm:$0xff] }
 0x103   : > { %6988 = vmatmul.mubr.msk.bf16.gmra.mrb[4].mxu0 %vm584_vm3, %v8250_v59 }
 0x104   : > { %6991 = vmatprep.mubr.msk.bf16.mxu0 %vm584_vm3, %v8278_v19 }
 0x10b   : > { %6992 = vmatmul.mubr.msk.bf16.gmra.mrb[8].mxu0 %vm584_vm3, %v8280_v20 }
 0x10c   : > { %6995 = vmatprep.mubr.msk.bf16.mxu0 %vm584_vm3, %v8294_v39 }
 0x113   : > { %6996 = vmatmul.mubr.msk.bf16.gmra.mrb[12].mxu0 %vm584_vm3, %v8526_v28 }
 0x114   : > { %6999 = vmatprep.mubr.msk.bf16.mxu0 %vm584_vm3, %v8551_v16 }
 0x11b   : > { %7000 = vmatmul.mubr.msk.bf16.gmra.mrb[16].mxu0 %vm584_vm3, %v8558_v18 }
 0x11c   : > { %7003 = vmatprep.mubr.msk.bf16.mxu0 %vm584_vm3, %v8585_v8 }
 0x123   : > { %7004 = vmatmul.mubr.msk.bf16.gmra.mrb[20].mxu0 %vm584_vm3, %v8592_v25 }
 0x124   : > { %7007 = vmatprep.mubr.msk.bf16.mxu0 %vm584_vm3, %v8616_v54 }
 0x12b   : > { %7008 = vmatmul.mubr.msk.bf16.gmra.mrb[24].mxu0 %vm584_vm3, %v8623_v57 }
 0x12c   : > { %7011 = vmatprep.mubr.msk.bf16.mxu0 %vm584_vm3, %v8641_v62 }
 0x133   : > { %7012 = vmatmul.mubr.msk.bf16.gmra.mrb[28].mxu0 %vm584_vm3, %v8731_v34 }
 0x134   : > { %7017 = vmatprep.mubr.msk.bf16.mxu0 %vm584_vm3, %v8309_v47  ;;  %v10392_v47 = vld [vmem:[#allocation3_spill] sm:$0xff] }
 0x13b   : > { %7018 = vmatmul.mubr.msk.bf16.vlgmr.msra.gmra.mrb[0].mxu0 %vm584_vm3, %v8322_v1 }
 0x13c   : > { %7050 = vmatpush3.bf16.msra.mxu0 %v2053_v27  ;;  %7021 = vmatprep.mubr.msk.bf16.mxu0 %vm584_vm3, %v8329_v7 }
 0x13d   : > { %7083 = vmatprep.subr.bf16.mxu0 %v2271_v11 }
 0x143   : > { %7022 = vmatmul.mubr.msk.bf16.gmra.mrb[4].mxu0 %vm584_vm3, %v8338_v17 }
 0x144   : > { %7025 = vmatprep.mubr.msk.bf16.mxu0 %vm584_vm3, %v8347_v33 }
 0x14b   : > { %7026 = vmatmul.mubr.msk.bf16.gmra.mrb[8].mxu0 %vm584_vm3, %v10392_v47 }
 0x14c   : > { %7029 = vmatprep.mubr.msk.bf16.mxu0 %vm584_vm3, %v10393_v61 }
 0x153   : > { %7030 = vmatmul.mubr.msk.bf16.gmra.mrb[12].mxu0 %vm584_vm3, %v10394_v36 }
 0x154   : > { %7033 = vmatprep.mubr.msk.bf16.mxu0 %vm584_vm3, %v8556_v41 }
 0x15b   : > { %7034 = vmatmul.mubr.msk.bf16.gmra.mrb[16].mxu0 %vm584_vm3, %v8562_v42 }
 0x15c   : > { %7037 = vmatprep.mubr.msk.bf16.mxu0 %vm584_vm3, %v8590_v21 }
 0x163   : > { %7038 = vmatmul.mubr.msk.bf16.gmra.mrb[20].mxu0 %vm584_vm3, %v8596_v4 }
 0x164   : > { %7041 = vmatprep.mubr.msk.bf16.mxu0 %vm584_vm3, %v8621_v10 }
 0x16b   : > { %7042 = vmatmul.mubr.msk.bf16.gmra.mrb[24].mxu0 %vm584_vm3, %v8627_v5 }
 0x16c   : > { %7045 = vmatprep.mubr.msk.bf16.mxu0 %vm584_vm3, %v8643_v40 }
 0x173   : > { %7046 = vmatmul.mubr.msk.bf16.gmra.mrb[28].mxu0 %vm584_vm3, %v8691_v31 }
 0x174   : > { %7051 = vmatprep.mubr.msk.bf16.mxu0 %vm584_vm3, %v8361_v45  ;;  %v379_v45 = vld [vmem:[%s8145_s16 + $0x1a0] sm:$0xff] }
 0x17b   : > { %7052 = vmatmul.mubr.msk.bf16.vlgmr.msra.gmra.mrb[0].mxu0 %vm584_vm3, %v8374_v14  ;;  %v2469_v14 = vrot.slane %v378_v3, 2 }
 0x17c   : > { %7084 = vmatpush3.bf16.msra.mxu0 %v2271_v11  ;;  %7055 = vmatprep.mubr.msk.bf16.mxu0 %vm584_vm3, %v8378_v15  ;;  %v2470_v15 = vrot.slane %v379_v45, 2 }
 0x17d   : > { %7117 = vmatprep.subr.bf16.mxu0 %v2486_v43 }
 0x183   : > { %7056 = vmatmul.mubr.msk.bf16.gmra.mrb[4].mxu0 %vm584_vm3, %v8386_v22  ;;  %v380_v22 = vld [vmem:[%s8145_s16 + $0x1a8] sm:$0x3] }
 0x184   : > { %7059 = vmatprep.mubr.msk.bf16.mxu0 %vm584_vm3, %v8390_v23  ;;  %v2471_v23 = vsel %vm1021_vm4, %v2469_v14, %v2470_v15 }
 0x18b   : > { %7060 = vmatmul.mubr.msk.bf16.gmra.mrb[8].mxu0 %vm584_vm3, %v8400_v30  ;;  %v2472_v30 = vrot.slane %v380_v22, 2 }
 0x18c   : > { %7063 = vmatprep.mubr.msk.bf16.mxu0 %vm584_vm3, %v8402_v35 }
 0x18d   : > { %v2473_v35 = vsel %vm1021_vm4, %v2470_v15, %v2472_v30 }
 0x193   : > { %7064 = vmatmul.mubr.msk.bf16.gmra.mrb[12].mxu0 %vm584_vm3, %v8422_v56  ;;  %v2043_v56 = vpack.c.bf16 %v379_v45, %v378_v3 }
 0x194   : > { %7067 = vmatprep.mubr.msk.bf16.mxu0 %vm584_vm3, %v8426_v2  ;;  %v2476_v2 = vpack.c.bf16 %v2473_v35, %v2471_v23 }
 0x19b   : > { %7068 = vmatmul.mubr.msk.bf16.gmra.mrb[16].mxu0 %vm584_vm3, %v8446_v51  ;;  %v8049_v51 = vld [vmem:[%s10312_s3 + $0x8] sm:$0xff]  }
 0x19c   : > { %7071 = vmatprep.mubr.msk.bf16.mxu0 %vm584_vm3, %v8450_v60  ;;  %7151 = vmatprep.subr.bf16.mxu1 %v8049_v51 }
 0x19d   : > { %7152 = vmatpush3.bf16.msra.mxu1 %v8049_v51 }
 0x1a3   : > { %7072 = vmatmul.mubr.msk.bf16.gmra.mrb[20].mxu0 %vm584_vm3, %v8470_v24 }
 0x1a4   : > { %7075 = vmatprep.mubr.msk.bf16.mxu0 %vm584_vm3, %v8474_v6 }
 0x1ab   : > { %7076 = vmatmul.mubr.msk.bf16.gmra.mrb[24].mxu0 %vm584_vm3, %v8488_v12 }
 0x1ac   : > { %7079 = vmatprep.mubr.msk.bf16.mxu0 %vm584_vm3, %v8689_v55 }
 0x1b3   : > { %7080 = vmatmul.mubr.msk.bf16.gmra.mrb[28].mxu0 %vm584_vm3, %v2043_v56 }
 0x1b4   : > { %7085 = vmatprep.mubr.msk.bf16.mxu0 %vm584_vm3, %v8220_v46  ;;  %v2254_v46 = vrot.slane %v378_v3, 1 }
 0x1bb   : > { %7086 = vmatmul.mubr.msk.bf16.vlgmr.msra.gmra.mrb[0].mxu0 %vm584_vm3, %v8248_v58  ;;  %v2255_v58 = vrot.slane %v379_v45, 1 }
 0x1bc   : > { %7118 = vmatpush3.bf16.msra.mxu0 %v2486_v43  ;;  %7089 = vmatprep.mubr.msk.bf16.mxu0 %vm584_vm3, %v8250_v59  ;;  %v2257_v59 = vrot.slane %v380_v22, 1 }
 0x1c3   : > { %7090 = vmatmul.mubr.msk.bf16.gmra.mrb[4].mxu0 %vm584_vm3, %v8278_v19  ;;  %v2256_v19 = vsel %vm450_vm2, %v2254_v46, %v2255_v58 }
 0x1c4   : > { %7093 = vmatprep.mubr.msk.bf16.mxu0 %vm584_vm3, %v8280_v20  ;;  %v2258_v20 = vsel %vm450_vm2, %v2255_v58, %v2257_v59 }
 0x1cb   : > { %7094 = vmatmul.mubr.msk.bf16.gmra.mrb[8].mxu0 %vm584_vm3, %v8294_v39  ;;  %v2261_v39 = vpack.c.bf16 %v2258_v20, %v2256_v19 }
 0x1cc   : > { %7097 = vmatprep.mubr.msk.bf16.mxu0 %vm584_vm3, %v8526_v28 }
 0x1d3   : > { %7098 = vmatmul.mubr.msk.bf16.gmra.mrb[12].mxu0 %vm584_vm3, %v8551_v16 }
 0x1d4   : > { %7101 = vmatprep.mubr.msk.bf16.mxu0 %vm584_vm3, %v8558_v18  ;;  %v8947_v18 = vpop.f32.mrb[0].mxu1 }
 0x1db   : > { %7102 = vmatmul.mubr.msk.bf16.gmra.mrb[16].mxu0 %vm584_vm3, %v8585_v8 }
 0x1dc   : > { %7105 = vmatprep.mubr.msk.bf16.mxu0 %vm584_vm3, %v8592_v25 }
 0x1e3   : > { %7106 = vmatmul.mubr.msk.bf16.gmra.mrb[20].mxu0 %vm584_vm3, %v8616_v54 }
 0x1e4   : > { %7109 = vmatprep.mubr.msk.bf16.mxu0 %vm584_vm3, %v8623_v57 }
 0x1eb   : > { %7110 = vmatmul.mubr.msk.bf16.gmra.mrb[24].mxu0 %vm584_vm3, %v8641_v62 }
 0x1ec   : > { %7113 = vmatprep.mubr.msk.bf16.mxu0 %vm584_vm3, %v8731_v34 }
 0x1f3   : > { %7114 = vmatmul.mubr.msk.bf16.gmra.mrb[28].mxu0 %vm584_vm3, %v2261_v39 }
 0x1f4   : > { %7119 = vmatprep.mubr.msk.bf16.mxu0 %vm584_vm3, %v8322_v1  ;;  %v8070_v1 = vmov 0.0  }
 0x1f5   : > { %2824 = vst.msk [vmem:[#allocation2 + $0x30] sm:$0xff] %vm2816_vm5, %v8070_v1  ;;  %2825 = vst.msk [vmem:[#allocation2 + $0x38] sm:$0xff] %vm2816_vm5, %v8070_v1 }
 0x1f6   : > { %2817 = vst.msk [vmem:[#allocation2] sm:$0xff] %vm2816_vm5, %v8070_v1  ;;  %2818 = vst.msk [vmem:[#allocation2 + $0x8] sm:$0xff] %vm2816_vm5, %v8070_v1 }
 0x1f7   : > { %2821 = vst.msk [vmem:[#allocation2 + $0x18] sm:$0xff] %vm2816_vm5, %v8070_v1  ;;  %2822 = vst.msk [vmem:[#allocation2 + $0x20] sm:$0xff] %vm2816_vm5, %v8070_v1 }
 0x1f8   : > { %2827 = vst.msk [vmem:[#allocation2 + $0x48] sm:$0xff] %vm2816_vm5, %v8070_v1  ;;  %2828 = vst.msk [vmem:[#allocation2 + $0x50] sm:$0xff] %vm2816_vm5, %v8070_v1 }
 0x1f9   : > { %2830 = vst.msk [vmem:[#allocation2 + $0x60] sm:$0xff] %vm2816_vm5, %v8070_v1  ;;  %2831 = vst.msk [vmem:[#allocation2 + $0x68] sm:$0xff] %vm2816_vm5, %v8070_v1 }
 0x1fa   : > { %2833 = vst.msk [vmem:[#allocation2 + $0x78] sm:$0xff] %vm2816_vm5, %v8070_v1  ;;  %2834 = vst.msk [vmem:[#allocation2 + $0x80] sm:$0xff] %vm2816_vm5, %v8070_v1 }
 0x1fb   : > { %7120 = vmatmul.mubr.msk.bf16.vlgmr.msra.gmra.mrb[0].mxu0 %vm584_vm3, %v8329_v7  ;;  %2836 = vst.msk [vmem:[#allocation2 + $0x90] sm:$0xff] %vm2816_vm5, %v8070_v1  ;;  %2837 = vst.msk [vmem:[#allocation2 + $0x98] sm:$0xff] %vm2816_vm5, %v8070_v1 }
 0x1fc   : > { %7123 = vmatprep.mubr.msk.bf16.mxu0 %vm584_vm3, %v8338_v17  ;;  %2839 = vst.msk [vmem:[#allocation2 + $0xa8] sm:$0xff] %vm2816_vm5, %v8070_v1  ;;  %2840 = vst.msk [vmem:[#allocation2 + $0xb0] sm:$0xff] %vm2816_vm5, %v8070_v1 }
 0x1fd   : > { %2842 = vst.msk [vmem:[#allocation2 + $0xc0] sm:$0xff] %vm2816_vm5, %v8070_v1  ;;  %2843 = vst.msk [vmem:[#allocation2 + $0xc8] sm:$0xff] %vm2816_vm5, %v8070_v1  ;;  %v8932_v7 = vld [vmem:[#allocation2] sm:$0xff]  ;;  %v8934_v17 = vld [vmem:[#allocation2 + $0x8] sm:$0xff] }
 0x1fe   : > { %2845 = vst.msk [vmem:[#allocation2 + $0xd8] sm:$0xff] %vm2816_vm5, %v8070_v1  ;;  %2846 = vst.msk [vmem:[#allocation2 + $0xe0] sm:$0xff] %vm2816_vm5, %v8070_v1  ;;  %v3028_v60 = vrot.slane %v8932_v7, 1  ;;  %v3029_v24 = vrot.slane %v8934_v17, 1 }
 0x1ff   : > { %2848 = vst.msk [vmem:[#allocation2 + $0xf0] sm:$0xff] %vm2816_vm5, %v8070_v1  ;;  %2849 = vst.msk [vmem:[#allocation2 + $0xf8] sm:$0xff] %vm2816_vm5, %v8070_v1 }
 0x200   : > { %2851 = vst.msk [vmem:[#allocation2 + $0x108] sm:$0xff] %vm2816_vm5, %v8070_v1  ;;  %2852 = vst.msk [vmem:[#allocation2 + $0x110] sm:$0xff] %vm2816_vm5, %v8070_v1  ;;  %v3030_v12 = vsel %vm450_vm2, %v3028_v60, %v3029_v24 }
 0x201   : > { %2854 = vst.msk [vmem:[#allocation2 + $0x120] sm:$0xff] %vm2816_vm5, %v8070_v1  ;;  %2855 = vst.msk [vmem:[#allocation2 + $0x128] sm:$0xff] %vm2816_vm5, %v8070_v1 }
 0x202   : > { %2857 = vst.msk [vmem:[#allocation2 + $0x138] sm:$0xff] %vm2816_vm5, %v8070_v1  ;;  %2858 = vst.msk [vmem:[#allocation2 + $0x140] sm:$0xff] %vm2816_vm5, %v8070_v1 }
 0x203   : > { %7124 = vmatmul.mubr.msk.bf16.gmra.mrb[4].mxu0 %vm584_vm3, %v8347_v33  ;;  %2860 = vst.msk [vmem:[#allocation2 + $0x150] sm:$0xff] %vm2816_vm5, %v8070_v1  ;;  %2861 = vst.msk [vmem:[#allocation2 + $0x158] sm:$0xff] %vm2816_vm5, %v8070_v1 }
 0x204   : > { %7127 = vmatprep.mubr.msk.bf16.mxu0 %vm584_vm3, %v10392_v47  ;;  %2863 = vst.msk [vmem:[#allocation2 + $0x168] sm:$0xff] %vm2816_vm5, %v8070_v1  ;;  %2864 = vst.msk [vmem:[#allocation2 + $0x170] sm:$0xff] %vm2816_vm5, %v8070_v1 }
 0x205   : > { %2866 = vst.msk [vmem:[#allocation2 + $0x180] sm:$0xff] %vm2816_vm5, %v8070_v1  ;;  %2867 = vst.msk [vmem:[#allocation2 + $0x188] sm:$0xff] %vm2816_vm5, %v8070_v1 }
 0x206   : > { %2869 = vst.msk [vmem:[#allocation2 + $0x198] sm:$0xff] %vm2816_vm5, %v8070_v1  ;;  %2870 = vst.msk [vmem:[#allocation2 + $0x1a0] sm:$0xff] %vm2816_vm5, %v8070_v1 }
 0x207   : > { %2826 = vst.msk [vmem:[#allocation2 + $0x40] sm:$0x3] %vm2819_vm6, %v8070_v1  ;;  %2820 = vst.msk [vmem:[#allocation2 + $0x10] sm:$0x3] %vm2819_vm6, %v8070_v1 }
 0x208   : > { %2823 = vst.msk [vmem:[#allocation2 + $0x28] sm:$0x3] %vm2819_vm6, %v8070_v1  ;;  %2829 = vst.msk [vmem:[#allocation2 + $0x58] sm:$0x3] %vm2819_vm6, %v8070_v1 }
 0x209   : > { %2832 = vst.msk [vmem:[#allocation2 + $0x70] sm:$0x3] %vm2819_vm6, %v8070_v1  ;;  %2835 = vst.msk [vmem:[#allocation2 + $0x88] sm:$0x3] %vm2819_vm6, %v8070_v1 }
 0x20a   : > { %2838 = vst.msk [vmem:[#allocation2 + $0xa0] sm:$0x3] %vm2819_vm6, %v8070_v1  ;;  %2841 = vst.msk [vmem:[#allocation2 + $0xb8] sm:$0x3] %vm2819_vm6, %v8070_v1 }
 0x20b   : > { %7128 = vmatmul.mubr.msk.bf16.gmra.mrb[8].mxu0 %vm584_vm3, %v10393_v61  ;;  %2844 = vst.msk [vmem:[#allocation2 + $0xd0] sm:$0x3] %vm2819_vm6, %v8070_v1  ;;  %2847 = vst.msk [vmem:[#allocation2 + $0xe8] sm:$0x3] %vm2819_vm6, %v8070_v1 }
 0x20c   : > { %7131 = vmatprep.mubr.msk.bf16.mxu0 %vm584_vm3, %v10394_v36  ;;  %2850 = vst.msk [vmem:[#allocation2 + $0x100] sm:$0x3] %vm2819_vm6, %v8070_v1  ;;  %2853 = vst.msk [vmem:[#allocation2 + $0x118] sm:$0x3] %vm2819_vm6, %v8070_v1 }
 0x20d   : > { %2856 = vst.msk [vmem:[#allocation2 + $0x130] sm:$0x3] %vm2819_vm6, %v8070_v1  ;;  %2859 = vst.msk [vmem:[#allocation2 + $0x148] sm:$0x3] %vm2819_vm6, %v8070_v1 }
 0x20e   : > { %2862 = vst.msk [vmem:[#allocation2 + $0x160] sm:$0x3] %vm2819_vm6, %v8070_v1  ;;  %2865 = vst.msk [vmem:[#allocation2 + $0x178] sm:$0x3] %vm2819_vm6, %v8070_v1  ;;  %v2907_v33 = vld [vmem:[#allocation2 + $0x10] sm:$0x3] }
 0x20f   : > { %2868 = vst.msk [vmem:[#allocation2 + $0x190] sm:$0x3] %vm2819_vm6, %v8070_v1  ;;  %2871 = vst.msk [vmem:[#allocation2 + $0x1a8] sm:$0x3] %vm2819_vm6, %v8070_v1  ;;  %v3031_v6 = vrot.slane %v2907_v33, 1 }
 0x211   : > { %v3032_v28 = vsel %vm450_vm2, %v3029_v24, %v3031_v6 }
 0x212   : > { %v3140_v16 = vpack.c.bf16 %v3032_v28, %v3030_v12 }
 0x213   : > { %7132 = vmatmul.mubr.msk.bf16.gmra.mrb[12].mxu0 %vm584_vm3, %v8556_v41  ;;  %v8944_v41 = vld [vmem:[%s10312_s3] sm:$0xff]  }
 0x214   : > { %7135 = vmatprep.mubr.msk.bf16.mxu0 %vm584_vm3, %v8562_v42  ;;  %7153 = vmatprep.mubr.msk.bf16.mxu1 %vm2816_vm5, %v3140_v16  ;;  %v8949_v42 = vpop.f32.mrb[1].mxu1 }
 0x215   : > { %7185 = vmatprep.subr.bf16.mxu1 %v8944_v41  ;;  %v8951_v8 = vpop.f32.mrb[2].mxu1 }
 0x21b   : > { %7136 = vmatmul.mubr.msk.bf16.gmra.mrb[16].mxu0 %vm584_vm3, %v8590_v21  ;;  %v8953_v21 = vpop.f32.mrb[3].mxu1 }
 0x21c   : > { %7139 = vmatprep.mubr.msk.bf16.mxu0 %vm584_vm3, %v8596_v4  ;;  %v8955_v25 = vpop.f32.mrb[4].mxu1 }
 0x21d   : > { %v8957_v4 = vpop.f32.mrb[5].mxu1 }
 0x21e   : > { %v8959_v54 = vpop.f32.mrb[6].mxu1 }
 0x223   : > { %7140 = vmatmul.mubr.msk.bf16.gmra.mrb[20].mxu0 %vm584_vm3, %v8621_v10  ;;  %v8961_v10 = vpop.f32.mrb[7].mxu1 }
 0x224   : > { %7143 = vmatprep.mubr.msk.bf16.mxu0 %vm584_vm3, %v8627_v5  ;;  %v8963_v57 = vpop.f32.mrb[8].mxu1 }
 0x225   : > { %v8965_v5 = vpop.f32.mrb[9].mxu1 }
 0x226   : > { %v8967_v62 = vpop.f32.mrb[10].mxu1 }
 0x22b   : > { %7144 = vmatmul.mubr.msk.bf16.gmra.mrb[24].mxu0 %vm584_vm3, %v8643_v40  ;;  %v8969_v40 = vpop.f32.mrb[11].mxu1 }
 0x22c   : > { %7147 = vmatprep.mubr.msk.bf16.mxu0 %vm584_vm3, %v8691_v31  ;;  %v8971_v13 = vpop.f32.mrb[12].mxu1 }
 0x22d   : > { %v8973_v49 = vpop.f32.mrb[13].mxu1 }
 0x22e   : > { %v8975_v63 = vpop.f32.mrb[14].mxu1 }
 0x22f   : > { %v8977_v0 = vpop.f32.mrb[15].mxu1 }
 0x233   : > { %7148 = vmatmul.mubr.msk.bf16.gmra.mrb[28].mxu0 %vm584_vm3, %v2476_v2 }
 0x2ce   : > { %v7121_v26 = vpop.f32.mrb[0].mxu0 }
 0x2cf   : > { %v2690_v53 = vadd.f32 %v7121_v26, %v8982_v50  ;;  %v2522_v55 = vpop.f32.mrb[1].mxu0 }
 0x2d0   : > { %v2688_v31 = vadd.f32 %v8982_v50, %v2522_v55  ;;  %v7122_v32 = vpop.f32.mrb[2].mxu0 }
 0x2d1   : > { %vm2722_vm7 = vcmp.gt.f32.partialorder %v2690_v53, 0.0  ;;  %v2754_v27 = vmul.f32 0.01, %v2690_v53  ;;  %v2691_v37 = vadd.f32 %v7122_v32, %v8982_v50  ;;  %v2525_v38 = vpop.f32.mrb[3].mxu0 }
 0x2d2   : > { %vm2720_vm8 = vcmp.gt.f32.partialorder %v2688_v31, 0.0  ;;  %v2752_v9 = vmul.f32 0.01, %v2688_v31  ;;  %v2689_v48 = vadd.f32 %v8982_v50, %v2525_v38 }
 0x2d3   : > { %v8988_v44 = vsel %vm2722_vm7, %v2690_v53, %v2754_v27  ;;  %vm2723_vm9 = vcmp.gt.f32.partialorder %v2691_v37, 0.0  ;;  %v2755_v34 = vmul.f32 0.01, %v2691_v37 }
 0x2d4   : > { %10395 = vst [vmem:[#allocation3_spill] sm:$0xff] %v8988_v44  ;;  %2875 = vst.msk [vmem:[#allocation2 + $0x31] sm:$0xff] %vm2816_vm5, %v8988_v44  ;;  %v8992_v29 = vsel %vm2720_vm8, %v2688_v31, %v2752_v9  ;;  %vm2721_vm10 = vcmp.gt.f32.partialorder %v2689_v48, 0.0  ;;  %v2753_v11 = vmul.f32 0.01, %v2689_v48 }
 0x2d5   : > { %10396 = vst [vmem:[#allocation4_spill] sm:$0xff] %v8992_v29  ;;  %2873 = vst.msk [vmem:[#allocation2 + $0x19] sm:$0xff] %vm2816_vm5, %v8992_v29  ;;  %v8996_v47 = vsel %vm2723_vm9, %v2691_v37, %v2755_v34 }
 0x2d6   : > { %10397 = vst [vmem:[#allocation5_spill] sm:$0xff] %v8996_v47  ;;  %2876 = vst.msk [vmem:[#allocation2 + $0x39] sm:$0xff] %vm2816_vm5, %v8996_v47  ;;  %v9000_v61 = vsel %vm2721_vm10, %v2689_v48, %v2753_v11  ;;  %v7125_v36 = vpop.f32.mrb[4].mxu0 }
 0x2d7   : > { %10398 = vst [vmem:[#allocation6_spill] sm:$0xff] %v9000_v61  ;;  %2874 = vst.msk [vmem:[#allocation2 + $0x21] sm:$0xff] %vm2816_vm5, %v9000_v61  ;;  %v2694_v52 = vadd.f32 %v7125_v36, %v8982_v50  ;;  %v2538_v43 = vpop.f32.mrb[5].mxu0 }
 0x2d8   : > { %v2692_v3 = vadd.f32 %v8982_v50, %v2538_v43  ;;  %v7126_v45 = vpop.f32.mrb[6].mxu0 }
 0x2d9   : > { %vm2726_vm11 = vcmp.gt.f32.partialorder %v2694_v52, 0.0  ;;  %v2758_v14 = vmul.f32 0.01, %v2694_v52  ;;  %v2695_v15 = vadd.f32 %v7126_v45, %v8982_v50  ;;  %v2541_v22 = vpop.f32.mrb[7].mxu0 }
 0x2da   : > { %vm2724_vm12 = vcmp.gt.f32.partialorder %v2692_v3, 0.0  ;;  %v2756_v23 = vmul.f32 0.01, %v2692_v3  ;;  %v2693_v30 = vadd.f32 %v8982_v50, %v2541_v22 }
 0x2db   : > { %v9008_v35 = vsel %vm2726_vm11, %v2694_v52, %v2758_v14  ;;  %vm2727_vm13 = vcmp.gt.f32.partialorder %v2695_v15, 0.0  ;;  %v2759_v56 = vmul.f32 0.01, %v2695_v15  ;;  %v9010_v2 = vld [vmem:[#allocation2 + $0x30] sm:$0xff] }
 0x2dc   : > { %10399 = vst [vmem:[#allocation7_spill] sm:$0xff] %v9008_v35  ;;  %2879 = vst.msk [vmem:[#allocation2 + $0x61] sm:$0xff] %vm2816_vm5, %v9008_v35  ;;  %v9014_v51 = vsel %vm2724_vm12, %v2692_v3, %v2756_v23  ;;  %vm2725_vm14 = vcmp.gt.f32.partialorder %v2693_v30, 0.0  ;;  %v2757_v46 = vmul.f32 0.01, %v2693_v30  ;;  %v9016_v58 = vld [vmem:[#allocation2 + $0x18] sm:$0xff] }
 0x2dd   : > { %10400 = vst [vmem:[#allocation8_spill] sm:$0xff] %v9014_v51  ;;  %2877 = vst.msk [vmem:[#allocation2 + $0x49] sm:$0xff] %vm2816_vm5, %v9014_v51  ;;  %v9020_v59 = vsel %vm2727_vm13, %v2695_v15, %v2759_v56  ;;  %v3033_v19 = vrot.slane %v9016_v58, 1  ;;  %v9023_v20 = vld [vmem:[#allocation2 + $0x38] sm:$0xff]  ;;  %v9025_v39 = vld [vmem:[#allocation2 + $0x40] sm:$0x3] }
 0x2de   : > { %10401 = vst [vmem:[#allocation9_spill] sm:$0xff] %v9020_v59  ;;  %v3038_v1 = vrot.slane %v9010_v2, 1  ;;  %2880 = vst.msk [vmem:[#allocation2 + $0x69] sm:$0xff] %vm2816_vm5, %v9020_v59  ;;  %v9030_v33 = vsel %vm2725_vm14, %v2693_v30, %v2757_v46  ;;  %v7129_v60 = vpop.f32.mrb[8].mxu0  ;;  %v9032_v24 = vld [vmem:[#allocation2 + $0x20] sm:$0xff]  ;;  %v3039_v12 = vrot.slane %v9023_v20, 1  ;;  %v9040_v16 = vpack.c.bf16 %v9023_v20, %v9010_v2 }
 0x2df   : > { %10402 = vst [vmem:[#allocation10_spill] sm:$0xff] %v9030_v33  ;;  %v9034_v6 = vld [vmem:[#allocation2 + $0x28] sm:$0x3]  ;;  %v3041_v28 = vrot.slane %v9025_v39, 1  ;;  %2878 = vst.msk [vmem:[#allocation2 + $0x51] sm:$0xff] %vm2816_vm5, %v9030_v33  ;;  %v2698_v26 = vadd.f32 %v7129_v60, %v8982_v50  ;;  %v2554_v53 = vpop.f32.mrb[9].mxu0  ;;  %v9049_v32 = vpack.c.bf16 %v9032_v24, %v9016_v58 }
 0x2e0   : > { %v3034_v55 = vrot.slane %v9032_v24, 1  ;;  %v3036_v31 = vrot.slane %v9034_v6, 1  ;;  %v2696_v27 = vadd.f32 %v8982_v50, %v2554_v53  ;;  %v7130_v37 = vpop.f32.mrb[10].mxu0  ;;  %v3040_v38 = vsel %vm450_vm2, %v3038_v1, %v3039_v12  ;;  %v9067_v23 = vld [vmem:[%s10312_s3 + $0x10] sm:$0xff]  }
 0x2e1   : > { %v3042_v9 = vsel %vm450_vm2, %v3039_v12, %v3041_v28  ;;  %vm2730_vm15 = vcmp.gt.f32.partialorder %v2698_v26, 0.0  ;;  %v2762_v48 = vmul.f32 0.01, %v2698_v26  ;;  %v2699_v34 = vadd.f32 %v7130_v37, %v8982_v50  ;;  %v2557_v11 = vpop.f32.mrb[11].mxu0 }
 0x2e2   : > { %v3035_v36 = vsel %vm450_vm2, %v3033_v19, %v3034_v55  ;;  %vm2728_vm0 = vcmp.gt.f32.partialorder %v2696_v27, 0.0  ;;  %v2760_v52 = vmul.f32 0.01, %v2696_v27  ;;  %v2697_v43 = vadd.f32 %v8982_v50, %v2557_v11 }
 0x2e3   : > { %v3037_v3 = vsel %vm450_vm2, %v3034_v55, %v3036_v31  ;;  %v9058_v45 = vsel %vm2730_vm15, %v2698_v26, %v2762_v48  ;;  %vm2731_vm1 = vcmp.gt.f32.partialorder %v2699_v34, 0.0  ;;  %v2763_v14 = vmul.f32 0.01, %v2699_v34  ;;  %v9062_v22 = vld [vmem:[#allocation2 + $0x60] sm:$0xff] }
 0x2e4   : > { %10403 = vst [vmem:[#allocation11_spill] sm:$0xff] %v9058_v45  ;;  %v9060_v15 = vpack.c.bf16 %v3037_v3, %v3035_v36  ;;  %2883 = vst.msk [vmem:[#allocation2 + $0x91] sm:$0xff] %vm2816_vm5, %v9058_v45  ;;  %v9071_v30 = vsel %vm2728_vm0, %v2696_v27, %v2760_v52  ;;  %vm2729_vm3 = vcmp.gt.f32.partialorder %v2697_v43, 0.0  ;;  %v2761_v56 = vmul.f32 0.01, %v2697_v43  ;;  %v9075_v19 = vld [vmem:[#allocation2 + $0x48] sm:$0xff] }
 0x2e5   : > { %10405 = vst [vmem:[#allocation13_spill] sm:$0xff] %v9071_v30  ;;  %v9073_v46 = vpack.c.bf16 %v3042_v9, %v3040_v38  ;;  %2881 = vst.msk [vmem:[#allocation2 + $0x79] sm:$0xff] %vm2816_vm5, %v9071_v30  ;;  %v9079_v1 = vsel %vm2731_vm1, %v2699_v34, %v2763_v14  ;;  %v3043_v60 = vrot.slane %v9075_v19, 1  ;;  %v9084_v12 = vld [vmem:[#allocation2 + $0x68] sm:$0xff]  ;;  %v9086_v28 = vld [vmem:[#allocation2 + $0x70] sm:$0x3] }
 0x2e6   : > { %10404 = vst [vmem:[#allocation12_spill] sm:$0xff] %v9060_v15  ;;  %10407 = vst [vmem:[#allocation15_spill] sm:$0xff] %v9079_v1  ;;  %7154 = vmatmul.mubr.msk.bf16.vlgmr.msra.gmra.mrb[16].mxu1 %vm2816_vm5, %v9060_v15  ;;  %v3048_v26 = vrot.slane %v9062_v22, 1  ;;  %v9091_v53 = vsel %vm2729_vm3, %v2697_v43, %v2761_v56  ;;  %v7133_v55 = vpop.f32.mrb[12].mxu0  ;;  %v9096_v31 = vld [vmem:[#allocation2 + $0x50] sm:$0xff]  ;;  %v3049_v37 = vrot.slane %v9084_v12, 1  ;;  %v9104_v9 = vpack.c.bf16 %v9084_v12, %v9062_v22 }
 0x2e7   : > { %10406 = vst [vmem:[#allocation14_spill] sm:$0xff] %v9073_v46  ;;  %2884 = vst.msk [vmem:[#allocation2 + $0x99] sm:$0xff] %vm2816_vm5, %v9079_v1  ;;  %7157 = vmatprep.mubr.msk.bf16.mxu1 %vm2816_vm5, %v9073_v46  ;;  %7186 = vmatpush3.bf16.msra.mxu1 %v8944_v41  ;;  %v9098_v27 = vld [vmem:[#allocation2 + $0x58] sm:$0x3]  ;;  %v3051_v38 = vrot.slane %v9086_v28, 1  ;;  %v2702_v48 = vadd.f32 %v7133_v55, %v8982_v50  ;;  %v2570_v34 = vpop.f32.mrb[13].mxu0  ;;  %v9114_v36 = vpack.c.bf16 %v9096_v31, %v9075_v19 }
 0x2e8   : > { %10408 = vst [vmem:[#allocation16_spill] sm:$0xff] %v9091_v53  ;;  %10409 = vst [vmem:[#allocation17_spill] sm:$0xff] %v9104_v9  ;;  %v3044_v41 = vrot.slane %v9096_v31, 1  ;;  %v3046_v11 = vrot.slane %v9098_v27, 1  ;;  %7219 = vmatprep.subr.bf16.mxu1 %v9067_v23  ;;  %v2700_v52 = vadd.f32 %v8982_v50, %v2570_v34  ;;  %v7134_v43 = vpop.f32.mrb[14].mxu0  ;;  %v3050_v3 = vsel %vm450_vm2, %v3048_v26, %v3049_v37 }
 0x2e9   : > { %2882 = vst.msk [vmem:[#allocation2 + $0x81] sm:$0xff] %vm2816_vm5, %v9091_v53  ;;  %10410 = vst [vmem:[#allocation18_spill] sm:$0xff] %v9114_v36  ;;  %v3052_v14 = vsel %vm450_vm2, %v3049_v37, %v3051_v38  ;;  %vm2734_vm6 = vcmp.gt.f32.partialorder %v2702_v48, 0.0  ;;  %v2766_v56 = vmul.f32 0.01, %v2702_v48  ;;  %v2703_v55 = vadd.f32 %v7134_v43, %v8982_v50  ;;  %v2573_v45 = vpop.f32.mrb[15].mxu0 }
 0x2ea   : > { %v3045_v1 = vsel %vm450_vm2, %v3043_v60, %v3044_v41  ;;  %vm2732_vm7 = vcmp.gt.f32.partialorder %v2700_v52, 0.0  ;;  %v2764_v30 = vmul.f32 0.01, %v2700_v52  ;;  %v2701_v53 = vadd.f32 %v8982_v50, %v2573_v45 }
 0x2eb   : > { %v3047_v35 = vsel %vm450_vm2, %v3044_v41, %v3046_v11  ;;  %v9123_v59 = vsel %vm2734_vm6, %v2702_v48, %v2766_v56  ;;  %vm2735_vm8 = vcmp.gt.f32.partialorder %v2703_v55, 0.0  ;;  %v2767_v34 = vmul.f32 0.01, %v2703_v55  ;;  %v9127_v37 = vld [vmem:[#allocation2 + $0x90] sm:$0xff] }
 0x2ec   : > { %10411 = vst [vmem:[#allocation19_spill] sm:$0xff] %v9123_v59  ;;  %v9125_v26 = vpack.c.bf16 %v3047_v35, %v3045_v1  ;;  %2887 = vst.msk [vmem:[#allocation2 + $0xc1] sm:$0xff] %vm2816_vm5, %v9123_v59  ;;  %v9131_v38 = vsel %vm2732_vm7, %v2700_v52, %v2764_v30  ;;  %vm2733_vm9 = vcmp.gt.f32.partialorder %v2701_v53, 0.0  ;;  %v2765_v60 = vmul.f32 0.01, %v2701_v53  ;;  %v9135_v45 = vld [vmem:[#allocation2 + $0x78] sm:$0xff] }
 0x2ed   : > { %10413 = vst [vmem:[#allocation21_spill] sm:$0xff] %v9131_v38  ;;  %v9133_v43 = vpack.c.bf16 %v3052_v14, %v3050_v3  ;;  %2885 = vst.msk [vmem:[#allocation2 + $0xa9] sm:$0xff] %vm2816_vm5, %v9131_v38  ;;  %v9139_v48 = vsel %vm2735_vm8, %v2703_v55, %v2767_v34  ;;  %v3053_v35 = vrot.slane %v9135_v45, 1  ;;  %v3058_v41 = vrot.slane %v9127_v37, 1 }
 0x2ee   : > { %10412 = vst [vmem:[#allocation20_spill] sm:$0xff] %v9125_v26  ;;  %10415 = vst [vmem:[#allocation23_spill] sm:$0xff] %v9139_v48  ;;  %7158 = vmatmul.mubr.msk.bf16.gmra.mrb[20].mxu1 %vm2816_vm5, %v9125_v26  ;;  %v9144_v1 = vld [vmem:[#allocation2 + $0x98] sm:$0xff]  ;;  %v9146_v30 = vld [vmem:[#allocation2 + $0xa0] sm:$0x3]  ;;  %v9153_v52 = vsel %vm2733_vm9, %v2701_v53, %v2765_v60  ;;  %v7137_v3 = vpop.f32.mrb[16].mxu0 }
 0x2ef   : > { %10414 = vst [vmem:[#allocation22_spill] sm:$0xff] %v9133_v43  ;;  %2888 = vst.msk [vmem:[#allocation2 + $0xc9] sm:$0xff] %vm2816_vm5, %v9139_v48  ;;  %7161 = vmatprep.mubr.msk.bf16.mxu1 %vm2816_vm5, %v9133_v43  ;;  %v3059_v55 = vrot.slane %v9144_v1, 1  ;;  %v3061_v34 = vrot.slane %v9146_v30, 1  ;;  %v9165_v11 = vpack.c.bf16 %v9144_v1, %v9127_v37  ;;  %v7515_v53 = vadd.f32 %v7137_v3, %v8947_v18  ;;  %v2586_v60 = vpop.f32.mrb[17].mxu0 }
 0x2f0   : > { %10416 = vst [vmem:[#allocation24_spill] sm:$0xff] %v9153_v52  ;;  %v9157_v14 = vld [vmem:[#allocation2 + $0x80] sm:$0xff]  ;;  %v9159_v56 = vld [vmem:[#allocation2 + $0x88] sm:$0x3]  ;;  %2886 = vst.msk [vmem:[#allocation2 + $0xb1] sm:$0xff] %vm2816_vm5, %v9153_v52  ;;  %v7516_v51 = vadd.f32 %v2586_v60, %v8949_v42  ;;  %v7138_v33 = vpop.f32.mrb[18].mxu0 }
 0x2f1   : > { %10417 = vst [vmem:[#allocation25_spill] sm:$0xff] %v9165_v11  ;;  %v3054_v59 = vrot.slane %v9157_v14, 1  ;;  %v3056_v48 = vrot.slane %v9159_v56, 1  ;;  %v9174_v38 = vpack.c.bf16 %v9157_v14, %v9135_v45  ;;  %v3060_v47 = vsel %vm450_vm2, %v3058_v41, %v3059_v55  ;;  %v2589_v29 = vpop.f32.mrb[19].mxu0 }
 0x2f2   : > { %v3062_v61 = vsel %vm450_vm2, %v3059_v55, %v3061_v34  ;;  %v2706_v18 = vadd.f32 %v7515_v53, %v8982_v50  ;;  %v7517_v3 = vadd.f32 %v7138_v33, %v8951_v8  ;;  %v2704_v26 = vadd.f32 %v7516_v51, %v8982_v50 }
 0x2f3   : > { %10418 = vst [vmem:[#allocation26_spill] sm:$0xff] %v9174_v38  ;;  %v3055_v44 = vsel %vm450_vm2, %v3053_v35, %v3054_v59  ;;  %v3057_v43 = vsel %vm450_vm2, %v3054_v59, %v3056_v48  ;;  %v7518_v42 = vadd.f32 %v2589_v29, %v8953_v21  ;;  %v9190_v53 = vpack.c.bf16 %v3062_v61, %v3060_v47  ;;  %v9192_v8 = vld [vmem:[#allocation2 + $0xc0] sm:$0xff] }
 0x2f4   : > { %v9186_v60 = vpack.c.bf16 %v3057_v43, %v3055_v44  ;;  %vm2738_vm10 = vcmp.gt.f32.partialorder %v2706_v18, 0.0  ;;  %v2770_v55 = vmul.f32 0.01, %v2706_v18  ;;  %v2707_v34 = vadd.f32 %v7517_v3, %v8982_v50  ;;  %v9195_v48 = vld [vmem:[#allocation2 + $0xa8] sm:$0xff] }
 0x2f5   : > { %10420 = vst [vmem:[#allocation28_spill] sm:$0xff] %v9190_v53  ;;  %vm2736_vm11 = vcmp.gt.f32.partialorder %v2704_v26, 0.0  ;;  %v2768_v33 = vmul.f32 0.01, %v2704_v26  ;;  %v2705_v59 = vadd.f32 %v7518_v42, %v8982_v50  ;;  %v3068_v21 = vrot.slane %v9192_v8, 1 }
 0x2f6   : > { %10419 = vst [vmem:[#allocation27_spill] sm:$0xff] %v9186_v60  ;;  %v9198_v44 = vsel %vm2738_vm10, %v2706_v18, %v2770_v55  ;;  %vm2739_vm12 = vcmp.gt.f32.partialorder %v2707_v34, 0.0  ;;  %v2771_v29 = vmul.f32 0.01, %v2707_v34  ;;  %7162 = vmatmul.mubr.msk.bf16.gmra.mrb[24].mxu1 %vm2816_vm5, %v9186_v60  ;;  %v3063_v47 = vrot.slane %v9195_v48, 1  ;;  %v9203_v61 = vld [vmem:[#allocation2 + $0xc8] sm:$0xff] }
 0x2f7   : > { %10421 = vst [vmem:[#allocation29_spill] sm:$0xff] %v9198_v44  ;;  %2891 = vst.msk [vmem:[#allocation2 + $0xf1] sm:$0xff] %vm2816_vm5, %v9198_v44  ;;  %v9207_v51 = vsel %vm2736_vm11, %v2704_v26, %v2768_v33  ;;  %vm2737_vm13 = vcmp.gt.f32.partialorder %v2705_v59, 0.0  ;;  %v2769_v43 = vmul.f32 0.01, %v2705_v59  ;;  %7165 = vmatprep.mubr.msk.bf16.mxu1 %vm2816_vm5, %v9190_v53  ;;  %v7141_v35 = vpop.f32.mrb[20].mxu0 }
 0x2f8   : > { %10422 = vst [vmem:[#allocation30_spill] sm:$0xff] %v9207_v51  ;;  %v9211_v18 = vld [vmem:[#allocation2 + $0xb0] sm:$0xff]  ;;  %v3069_v3 = vrot.slane %v9203_v61, 1  ;;  %2889 = vst.msk [vmem:[#allocation2 + $0xd9] sm:$0xff] %vm2816_vm5, %v9207_v51  ;;  %v9216_v42 = vsel %vm2739_vm12, %v2707_v34, %v2771_v29  ;;  %v7519_v55 = vadd.f32 %v7141_v35, %v8955_v25  ;;  %v2602_v41 = vpop.f32.mrb[21].mxu0 }
 0x2f9   : > { %10423 = vst [vmem:[#allocation31_spill] sm:$0xff] %v9216_v42  ;;  %v9219_v26 = vld [vmem:[#allocation2 + $0xb8] sm:$0x3]  ;;  %v3064_v33 = vrot.slane %v9211_v18, 1  ;;  %v9222_v52 = vld [vmem:[#allocation2 + $0xd0] sm:$0x3]  ;;  %v9226_v44 = vpack.c.bf16 %v9211_v18, %v9195_v48  ;;  %v9230_v53 = vsel %vm2737_vm13, %v2705_v59, %v2769_v43  ;;  %v7520_v34 = vadd.f32 %v2602_v41, %v8957_v4 }
 0x2fa   : > { %2892 = vst.msk [vmem:[#allocation2 + $0xf9] sm:$0xff] %vm2816_vm5, %v9216_v42  ;;  %10425 = vst [vmem:[#allocation33_spill] sm:$0xff] %v9230_v53  ;;  %v7142_v29 = vpop.f32.mrb[22].mxu0  ;;  %v3066_v25 = vrot.slane %v9219_v26, 1  ;;  %v3070_v35 = vsel %vm450_vm2, %v3068_v21, %v3069_v3  ;;  %v2710_v51 = vadd.f32 %v7519_v55, %v8982_v50  ;;  %v3071_v59 = vrot.slane %v9222_v52, 1 }
 0x2fb   : > { %10424 = vst [vmem:[#allocation32_spill] sm:$0xff] %v9226_v44  ;;  %2890 = vst.msk [vmem:[#allocation2 + $0xe1] sm:$0xff] %vm2816_vm5, %v9230_v53  ;;  %v7521_v60 = vadd.f32 %v7142_v29, %v8959_v54  ;;  %v2605_v46 = vpop.f32.mrb[23].mxu0  ;;  %v3065_v15 = vsel %vm450_vm2, %v3063_v47, %v3064_v33  ;;  %v2708_v43 = vadd.f32 %v7520_v34, %v8982_v50 }
 0x2fc   : > { %v7522_v4 = vadd.f32 %v2605_v46, %v8961_v10  ;;  %v3067_v41 = vsel %vm450_vm2, %v3064_v33, %v3066_v25  ;;  %v9246_v21 = vpack.c.bf16 %v9203_v61, %v9192_v8  ;;  %vm2742_vm14 = vcmp.gt.f32.partialorder %v2710_v51, 0.0 }
 0x2fd   : > { %v2774_v42 = vmul.f32 0.01, %v2710_v51  ;;  %v2711_v55 = vadd.f32 %v7521_v60, %v8982_v50  ;;  %v9249_v54 = vpack.c.bf16 %v3067_v41, %v3065_v15  ;;  %vm2740_vm15 = vcmp.gt.f32.partialorder %v2708_v43, 0.0 }
 0x2fe   : > { %10426 = vst [vmem:[#allocation34_spill] sm:$0xff] %v9246_v21  ;;  %v2772_v47 = vmul.f32 0.01, %v2708_v43  ;;  %v2709_v29 = vadd.f32 %v7522_v4, %v8982_v50  ;;  %v3072_v34 = vsel %vm450_vm2, %v3069_v3, %v3071_v59  ;;  %v9259_v33 = vld [vmem:[#allocation2 + $0xf0] sm:$0xff]  ;;  %v7145_v25 = vpop.f32.mrb[24].mxu0 }
 0x2ff   : > { %10427 = vst [vmem:[#allocation35_spill] sm:$0xff] %v9249_v54  ;;  %v9253_v53 = vsel %vm2742_vm14, %v2710_v51, %v2774_v42  ;;  %vm2743_vm0 = vcmp.gt.f32.partialorder %v2711_v55, 0.0  ;;  %v2775_v10 = vmul.f32 0.01, %v2711_v55  ;;  %7166 = vmatmul.mubr.msk.bf16.gmra.mrb[28].mxu1 %vm2816_vm5, %v9249_v54  ;;  %v9257_v46 = vpack.c.bf16 %v3072_v34, %v3070_v35  ;;  %v9265_v3 = vld [vmem:[#allocation2 + $0xd8] sm:$0xff]  ;;  %v2618_v59 = vpop.f32.mrb[25].mxu0 }
 0x300   : > { %10428 = vst [vmem:[#allocation36_spill] sm:$0xff] %v9253_v53  ;;  %2895 = vst.msk [vmem:[#allocation2 + $0x121] sm:$0xff] %vm2816_vm5, %v9253_v53  ;;  %v9263_v15 = vsel %vm2740_vm15, %v2708_v43, %v2772_v47  ;;  %vm2741_vm1 = vcmp.gt.f32.partialorder %v2709_v29, 0.0  ;;  %v2773_v60 = vmul.f32 0.01, %v2709_v29  ;;  %v3078_v51 = vrot.slane %v9259_v33, 1 }
 0x301   : > { %10429 = vst [vmem:[#allocation37_spill] sm:$0xff] %v9257_v46  ;;  %10430 = vst [vmem:[#allocation38_spill] sm:$0xff] %v9263_v15  ;;  %v9270_v42 = vsel %vm2743_vm0, %v2711_v55, %v2775_v10  ;;  %7169 = vmatprep.mubr.msk.bf16.mxu1 %vm2816_vm5, %v9257_v46  ;;  %v7523_v35 = vadd.f32 %v7145_v25, %v8963_v57  ;;  %v3073_v43 = vrot.slane %v9265_v3, 1  ;;  %v9276_v4 = vld [vmem:[#allocation2 + $0xf8] sm:$0xff]  ;;  %v9278_v41 = vld [vmem:[#allocation2 + $0x100] sm:$0x3] }
 0x302   : > { %2893 = vst.msk [vmem:[#allocation2 + $0x109] sm:$0xff] %vm2816_vm5, %v9263_v15  ;;  %10431 = vst [vmem:[#allocation39_spill] sm:$0xff] %v9270_v42  ;;  %v9283_v34 = vsel %vm2741_vm1, %v2709_v29, %v2773_v60  ;;  %v7524_v55 = vadd.f32 %v2618_v59, %v8965_v5  ;;  %v7146_v10 = vpop.f32.mrb[26].mxu0  ;;  %v9286_v53 = vld [vmem:[#allocation2 + $0xe0] sm:$0xff]  ;;  %v9288_v57 = vld [vmem:[#allocation2 + $0xe8] sm:$0x3] }
 0x303   : > { %2896 = vst.msk [vmem:[#allocation2 + $0x129] sm:$0xff] %vm2816_vm5, %v9270_v42  ;;  %10432 = vst [vmem:[#allocation40_spill] sm:$0xff] %v9283_v34  ;;  %v3079_v25 = vrot.slane %v9276_v4, 1  ;;  %v3081_v15 = vrot.slane %v9278_v41, 1  ;;  %v2714_v47 = vadd.f32 %v7523_v35, %v8982_v50  ;;  %v7525_v42 = vadd.f32 %v7146_v10, %v8967_v62  ;;  %v2621_v29 = vpop.f32.mrb[27].mxu0 }
 0x304   : > { %2894 = vst.msk [vmem:[#allocation2 + $0x111] sm:$0xff] %vm2816_vm5, %v9283_v34  ;;  %v3074_v60 = vrot.slane %v9286_v53, 1  ;;  %v3076_v5 = vrot.slane %v9288_v57, 1  ;;  %v2712_v59 = vadd.f32 %v7524_v55, %v8982_v50  ;;  %v7526_v46 = vadd.f32 %v2621_v29, %v8969_v40 }
 0x305   : > { %v3080_v54 = vsel %vm450_vm2, %v3078_v51, %v3079_v25  ;;  %v3082_v21 = vsel %vm450_vm2, %v3079_v25, %v3081_v15  ;;  %vm2746_vm3 = vcmp.gt.f32.partialorder %v2714_v47, 0.0  ;;  %v2778_v44 = vmul.f32 0.01, %v2714_v47 }
 0x306   : > { %v2715_v34 = vadd.f32 %v7525_v42, %v8982_v50  ;;  %v3075_v35 = vsel %vm450_vm2, %v3073_v43, %v3074_v60  ;;  %vm2744_vm6 = vcmp.gt.f32.partialorder %v2712_v59, 0.0  ;;  %v2776_v62 = vmul.f32 0.01, %v2712_v59  ;;  %v7149_v43 = vpop.f32.mrb[28].mxu0 }
 0x307   : > { %v2713_v10 = vadd.f32 %v7526_v46, %v8982_v50  ;;  %v3077_v11 = vsel %vm450_vm2, %v3074_v60, %v3076_v5  ;;  %v9306_v38 = vsel %vm2746_vm3, %v2714_v47, %v2778_v44  ;;  %v9310_v51 = vld [vmem:[#allocation2 + $0x120] sm:$0xff]  ;;  %v9316_v25 = vpack.c.bf16 %v3082_v21, %v3080_v54  ;;  %v2634_v47 = vpop.f32.mrb[29].mxu0 }
 0x308   : > { %10433 = vst [vmem:[#allocation41_spill] sm:$0xff] %v9306_v38  ;;  %vm2747_vm7 = vcmp.gt.f32.partialorder %v2715_v34, 0.0  ;;  %v2779_v40 = vmul.f32 0.01, %v2715_v34  ;;  %v9308_v55 = vpack.c.bf16 %v3077_v11, %v3075_v35  ;;  %2899 = vst.msk [vmem:[#allocation2 + $0x151] sm:$0xff] %vm2816_vm5, %v9306_v38  ;;  %v9314_v15 = vsel %vm2744_vm6, %v2712_v59, %v2776_v62 }
 0x309   : > { %10435 = vst [vmem:[#allocation43_spill] sm:$0xff] %v9314_v15  ;;  %vm2745_vm8 = vcmp.gt.f32.partialorder %v2713_v10, 0.0  ;;  %v2777_v42 = vmul.f32 0.01, %v2713_v10  ;;  %10436 = vst [vmem:[#allocation44_spill] sm:$0xff] %v9316_v25  ;;  %v9318_v46 = vld [vmem:[#allocation2 + $0x108] sm:$0xff]  ;;  %v7527_v11 = vadd.f32 %v7149_v43, %v8971_v13 }
 0x30a   : > { %10434 = vst [vmem:[#allocation42_spill] sm:$0xff] %v9308_v55  ;;  %2897 = vst.msk [vmem:[#allocation2 + $0x139] sm:$0xff] %vm2816_vm5, %v9314_v15  ;;  %v9322_v44 = vsel %vm2747_vm7, %v2715_v34, %v2779_v40  ;;  %7170 = vmatmul.mubr.msk.bf16.gmra.mrb[32].mxu1 %vm2816_vm5, %v9308_v55  ;;  %v3083_v29 = vrot.slane %v9318_v46, 1  ;;  %v9328_v60 = vld [vmem:[#allocation2 + $0x128] sm:$0xff]  ;;  %v9330_v5 = vld [vmem:[#allocation2 + $0x130] sm:$0x3]  ;;  %v7528_v34 = vadd.f32 %v2634_v47, %v8973_v49 }
 0x30b   : > { %10437 = vst [vmem:[#allocation45_spill] sm:$0xff] %v9322_v44  ;;  %v3088_v21 = vrot.slane %v9310_v51, 1  ;;  %2900 = vst.msk [vmem:[#allocation2 + $0x159] sm:$0xff] %vm2816_vm5, %v9322_v44  ;;  %v9335_v54 = vsel %vm2745_vm8, %v2713_v10, %v2777_v42  ;;  %7173 = vmatprep.mubr.msk.bf16.mxu1 %vm2816_vm5, %v9316_v25  ;;  %v7150_v13 = vpop.f32.mrb[30].mxu0  ;;  %v9340_v59 = vld [vmem:[#allocation2 + $0x110] sm:$0xff]  ;;  %v3089_v62 = vrot.slane %v9328_v60, 1  ;;  %v2718_v10 = vadd.f32 %v7527_v11, %v8982_v50 }
 0x30c   : > { %10438 = vst [vmem:[#allocation46_spill] sm:$0xff] %v9335_v54  ;;  %v9342_v35 = vld [vmem:[#allocation2 + $0x118] sm:$0x3]  ;;  %v3091_v40 = vrot.slane %v9330_v5, 1  ;;  %2898 = vst.msk [vmem:[#allocation2 + $0x141] sm:$0xff] %vm2816_vm5, %v9335_v54  ;;  %v7529_v42 = vadd.f32 %v7150_v13, %v8975_v63  ;;  %v2637_v49 = vpop.f32.mrb[31].mxu0  ;;  %v2716_v38 = vadd.f32 %v7528_v34, %v8982_v50 }
 0x30d   : > { %v3084_v43 = vrot.slane %v9340_v59, 1  ;;  %v3086_v47 = vrot.slane %v9342_v35, 1  ;;  %v7530_v44 = vadd.f32 %v2637_v49, %v8977_v0  ;;  %v3090_v15 = vsel %vm450_vm2, %v3088_v21, %v3089_v62 }
 0x30e   : > { %v3092_v25 = vsel %vm450_vm2, %v3089_v62, %v3091_v40  ;;  %vm2750_vm9 = vcmp.gt.f32.partialorder %v2718_v10, 0.0  ;;  %v2782_v55 = vmul.f32 0.01, %v2718_v10  ;;  %v2719_v54 = vadd.f32 %v7529_v42, %v8982_v50 }
 0x30f   : > { %v3085_v11 = vsel %vm450_vm2, %v3083_v29, %v3084_v43  ;;  %vm2748_vm10 = vcmp.gt.f32.partialorder %v2716_v38, 0.0  ;;  %v2780_v63 = vmul.f32 0.01, %v2716_v38  ;;  %v2717_v13 = vadd.f32 %v7530_v44, %v8982_v50  ;;  %v9364_v21 = vld [vmem:[#allocation2 + $0x150] sm:$0xff] }
 0x310   : > { %v3087_v9 = vsel %vm450_vm2, %v3084_v43, %v3086_v47  ;;  %v9360_v36 = vsel %vm2750_vm9, %v2718_v10, %v2782_v55  ;;  %vm2751_vm11 = vcmp.gt.f32.partialorder %v2719_v54, 0.0  ;;  %v2783_v0 = vmul.f32 0.01, %v2719_v54 }
 0x311   : > { %10439 = vst [vmem:[#allocation47_spill] sm:$0xff] %v9360_v36  ;;  %v9362_v34 = vpack.c.bf16 %v3087_v9, %v3085_v11  ;;  %2903 = vst.msk [vmem:[#allocation2 + $0x181] sm:$0xff] %vm2816_vm5, %v9360_v36  ;;  %v9368_v62 = vsel %vm2748_vm10, %v2716_v38, %v2780_v63  ;;  %vm2749_vm12 = vcmp.gt.f32.partialorder %v2717_v13, 0.0  ;;  %v2781_v29 = vmul.f32 0.01, %v2717_v13  ;;  %v9372_v50 = vld [vmem:[#allocation2 + $0x138] sm:$0xff] }
 0x312   : > { %10441 = vst [vmem:[#allocation49_spill] sm:$0xff] %v9368_v62  ;;  %v9370_v40 = vpack.c.bf16 %v3092_v25, %v3090_v15  ;;  %2901 = vst.msk [vmem:[#allocation2 + $0x169] sm:$0xff] %vm2816_vm5, %v9368_v62  ;;  %v9376_v55 = vsel %vm2751_vm11, %v2719_v54, %v2783_v0  ;;  %v3093_v9 = vrot.slane %v9372_v50, 1  ;;  %v9381_v44 = vld [vmem:[#allocation2 + $0x158] sm:$0xff]  ;;  %v9383_v38 = vld [vmem:[#allocation2 + $0x160] sm:$0x3]  ;;  %v9388_v15 = vpack.c.bf16 %v9286_v53, %v9265_v3 }
 0x313   : > { %10440 = vst [vmem:[#allocation48_spill] sm:$0xff] %v9362_v34  ;;  %10443 = vst [vmem:[#allocation51_spill] sm:$0xff] %v9376_v55  ;;  %7174 = vmatmul.mubr.msk.bf16.gmra.mrb[36].mxu1 %vm2816_vm5, %v9362_v34  ;;  %v3098_v10 = vrot.slane %v9364_v21, 1  ;;  %v9392_v25 = vsel %vm2749_vm12, %v2717_v13, %v2781_v29  ;;  %v9396_v54 = vld [vmem:[#allocation2 + $0x140] sm:$0xff]  ;;  %v9398_v42 = vld [vmem:[#allocation2 + $0x148] sm:$0x3]  ;;  %v9404_v47 = vpack.c.bf16 %v9276_v4, %v9259_v33 }
 0x314   : > { %10442 = vst [vmem:[#allocation50_spill] sm:$0xff] %v9370_v40  ;;  %2904 = vst.msk [vmem:[#allocation2 + $0x189] sm:$0xff] %vm2816_vm5, %v9376_v55  ;;  %7177 = vmatprep.mubr.msk.bf16.mxu1 %vm2816_vm5, %v9370_v40  ;;  %v3099_v49 = vrot.slane %v9381_v44, 1  ;;  %v3101_v43 = vrot.slane %v9383_v38, 1  ;;  %v3094_v11 = vrot.slane %v9396_v54, 1  ;;  %v3096_v63 = vrot.slane %v9398_v42, 1 }
 0x315   : > { %10444 = vst [vmem:[#allocation52_spill] sm:$0xff] %v9392_v25  ;;  %2902 = vst.msk [vmem:[#allocation2 + $0x171] sm:$0xff] %vm2816_vm5, %v9392_v25  ;;  %v9412_v13 = vpack.c.bf16 %v9340_v59, %v9318_v46  ;;  %v9416_v0 = vpack.c.bf16 %v9328_v60, %v9310_v51  ;;  %v9422_v36 = vpack.c.bf16 %v9396_v54, %v9372_v50 }
 0x316   : > { %v3100_v29 = vsel %vm450_vm2, %v3098_v10, %v3099_v49  ;;  %v3102_v55 = vsel %vm450_vm2, %v3099_v49, %v3101_v43  ;;  %v9426_v62 = vpack.c.bf16 %v9381_v44, %v9364_v21  ;;  %v3095_v25 = vsel %vm450_vm2, %v3093_v9, %v3094_v11 }
 0x317   : > { %10445 = vst [vmem:[#allocation53_spill] sm:$0xff] %v9412_v13  ;;  %10446 = vst [vmem:[#allocation54_spill] sm:$0xff] %v9416_v0  ;;  %v3097_v40 = vsel %vm450_vm2, %v3094_v11, %v3096_v63  ;;  %v9430_v34 = vpack.c.bf16 %v3102_v55, %v3100_v29  ;;  %v10449_v0 = vrot.slane %v9032_v24, 2  ;;  %v10450_v10 = vrot.slane %v9016_v58, 2 }
 0x318   : > { %10447 = vst [vmem:[#allocation55_spill] sm:$0xff] %v9422_v36  ;;  %10448 = vst [vmem:[#allocation56_spill] sm:$0xff] %v9426_v62  ;;  %v9437_v43 = vpack.c.bf16 %v3097_v40, %v3095_v25  ;;  %v3597_v36 = vrot.slane %v9034_v6, 2  ;;  %v3600_v13 = vrot.slane %v9023_v20, 2  ;;  %v3602_v62 = vrot.slane %v9025_v39, 2 }
 0x319   : > { %v3596_v49 = vsel %vm1021_vm4, %v10450_v10, %v10449_v0  ;;  %v3604_v9 = vrot.slane %v9075_v19, 2  ;;  %v3605_v11 = vrot.slane %v9096_v31, 2  ;;  %v3607_v55 = vrot.slane %v9098_v27, 2  ;;  %v9446_v29 = vld [vmem:[#allocation2 + $0x168] sm:$0xff] }
 0x31a   : > { %v3609_v63 = vrot.slane %v9062_v22, 2  ;;  %v10451_v58 = vmov %v10449_v0  ;;  %v10452_v6 = vrot.slane %v9010_v2, 2  ;;  %v3603_v39 = vsel %vm1021_vm4, %v3600_v13, %v3602_v62 }
 0x31b   : > { %v3598_v40 = vsel %vm1021_vm4, %v10451_v58, %v3597_v36  ;;  %v3610_v19 = vrot.slane %v9084_v12, 2  ;;  %7178 = vmatmul.mubr.msk.bf16.gmra.mrb[40].mxu1 %vm2816_vm5, %v9437_v43  ;;  %v3103_v31 = vrot.slane %v9446_v29, 1  ;;  %v3606_v24 = vsel %vm1021_vm4, %v3604_v9, %v3605_v11 }
 0x31c   : > { %v3601_v20 = vsel %vm1021_vm4, %v10452_v6, %v3600_v13  ;;  %v9459_v22 = vpack.c.bf16 %v3598_v40, %v3596_v49  ;;  %7181 = vmatprep.mubr.msk.bf16.mxu1 %vm2816_vm5, %v9430_v34  ;;  %v9466_v2 = vld [vmem:[#allocation2 + $0x170] sm:$0xff]  ;;  %v9468_v36 = vld [vmem:[#allocation2 + $0x178] sm:$0x3]  ;;  %v3608_v12 = vsel %vm1021_vm4, %v3605_v11, %v3607_v55  ;;  %v3612_v25 = vrot.slane %v9086_v28, 2 }
 0x31d   : > { %v9461_v27 = vpack.c.bf16 %v3603_v39, %v3601_v20  ;;  %v3611_v62 = vsel %vm1021_vm4, %v3609_v63, %v3610_v19  ;;  %v3614_v13 = vrot.slane %v9135_v45, 2  ;;  %v3104_v0 = vrot.slane %v9466_v2, 1 }
 0x31e   : > { %v3106_v10 = vrot.slane %v9468_v36, 1  ;;  %v9478_v49 = vpack.c.bf16 %v9466_v2, %v9446_v29  ;;  %v9480_v9 = vpack.c.bf16 %v3608_v12, %v3606_v24  ;;  %v3613_v58 = vsel %vm1021_vm4, %v3610_v19, %v3612_v25 }
 0x31f   : > { %v3615_v11 = vrot.slane %v9157_v14, 2  ;;  %v3617_v55 = vrot.slane %v9159_v56, 2  ;;  %v3619_v28 = vrot.slane %v9127_v37, 2  ;;  %v3105_v45 = vsel %vm450_vm2, %v3103_v31, %v3104_v0 }
 0x320   : > { %v3107_v63 = vsel %vm450_vm2, %v3104_v0, %v3106_v10  ;;  %v9488_v40 = vpack.c.bf16 %v3613_v58, %v3611_v62  ;;  %v3620_v6 = vrot.slane %v9144_v1, 2  ;;  %v3622_v14 = vrot.slane %v9146_v30, 2 }
 0x321   : > { %v9491_v20 = vpack.c.bf16 %v3107_v63, %v3105_v45  ;;  %v3616_v39 = vsel %vm1021_vm4, %v3614_v13, %v3615_v11  ;;  %v3618_v19 = vsel %vm1021_vm4, %v3615_v11, %v3617_v55  ;;  %v3624_v56 = vrot.slane %v9195_v48, 2 }
 0x322   : > { %v9496_v24 = vpack.c.bf16 %v3618_v19, %v3616_v39  ;;  %v3621_v37 = vsel %vm1021_vm4, %v3619_v28, %v3620_v6  ;;  %v3625_v31 = vrot.slane %v9211_v18, 2  ;;  %v3623_v12 = vsel %vm1021_vm4, %v3620_v6, %v3622_v14 }
 0x323   : > { %v3627_v1 = vrot.slane %v9219_v26, 2  ;;  %v3629_v62 = vrot.slane %v9192_v8, 2  ;;  %v3630_v25 = vrot.slane %v9203_v61, 2  ;;  %7182 = vmatmul.mubr.msk.bf16.gmra.mrb[44].mxu1 %vm2816_vm5, %v9491_v20  ;;  %v9507_v30 = vpack.c.bf16 %v3623_v12, %v3621_v37 }
 0x324   : > { %v3626_v13 = vsel %vm1021_vm4, %v3624_v56, %v3625_v31  ;;  %v3632_v0 = vrot.slane %v9222_v52, 2  ;;  %v3634_v48 = vrot.slane %v9265_v3, 2  ;;  %v10453_v18 = vpack.c.bf16 %v8934_v17, %v8932_v7 }
 0x325   : > { %v3628_v8 = vsel %vm1021_vm4, %v3625_v31, %v3627_v1  ;;  %v3631_v61 = vsel %vm1021_vm4, %v3629_v62, %v3630_v25  ;;  %v3635_v26 = vrot.slane %v9286_v53, 2  ;;  %v3637_v10 = vrot.slane %v9288_v57, 2 }
 0x326   : > { %7187 = vmatprep.mubr.msk.bf16.mxu1 %vm2816_vm5, %v10453_v18  ;;  %v9520_v58 = vpack.c.bf16 %v3628_v8, %v3626_v13  ;;  %v3633_v11 = vsel %vm1021_vm4, %v3630_v25, %v3632_v0  ;;  %v3639_v52 = vrot.slane %v9259_v33, 2  ;;  %v3640_v3 = vrot.slane %v9276_v4, 2  ;;  %v9574_v25 = vld [vmem:[#allocation2 + $0x180] sm:$0xff]  ;;  %v9576_v13 = vld [vmem:[#allocation2 + $0x188] sm:$0xff]  ;;  %v9578_v0 = vld [vmem:[#allocation2 + $0x190] sm:$0x3] }
 0x327   : > { %v9525_v55 = vpack.c.bf16 %v3633_v11, %v3631_v61  ;;  %v3636_v7 = vsel %vm1021_vm4, %v3634_v48, %v3635_v26  ;;  %v3638_v17 = vsel %vm1021_vm4, %v3635_v26, %v3637_v10  ;;  %v3642_v28 = vrot.slane %v9278_v41, 2  ;;  %v9542_v41 = vld [vmem:[%s10312_s3 + $0x18] sm:$0xff]  }
 0x328   : > { %v9530_v45 = vpack.c.bf16 %v3638_v17, %v3636_v7  ;;  %v3641_v53 = vsel %vm1021_vm4, %v3639_v52, %v3640_v3  ;;  %v3644_v57 = vrot.slane %v9318_v46, 2  ;;  %v3645_v63 = vrot.slane %v9340_v59, 2  ;;  %v10455_v7 = vld [vmem:[#allocation17_spill] sm:$0xff]  ;;  %v10456_v17 = vld [vmem:[#allocation26_spill] sm:$0xff] }
 0x329   : > { %v3643_v33 = vsel %vm1021_vm4, %v3640_v3, %v3642_v28  ;;  %v3647_v4 = vrot.slane %v9342_v35, 2  ;;  %v3649_v6 = vrot.slane %v9310_v51, 2  ;;  %v3650_v39 = vrot.slane %v9328_v60, 2  ;;  %v10454_v3 = vld [vmem:[#allocation18_spill] sm:$0xff]  ;;  %v10457_v28 = vld [vmem:[#allocation25_spill] sm:$0xff] }
 0x32a   : > { %v9544_v19 = vpack.c.bf16 %v3643_v33, %v3641_v53  ;;  %v3646_v14 = vsel %vm1021_vm4, %v3644_v57, %v3645_v63  ;;  %v3652_v46 = vrot.slane %v9330_v5, 2  ;;  %v3654_v59 = vrot.slane %v9372_v50, 2  ;;  %v10458_v53 = vld [vmem:[#allocation32_spill] sm:$0xff]  ;;  %v10459_v57 = vld [vmem:[#allocation34_spill] sm:$0xff] }
 0x32b   : > { %v3648_v37 = vsel %vm1021_vm4, %v3645_v63, %v3647_v4  ;;  %v3651_v35 = vsel %vm1021_vm4, %v3649_v6, %v3650_v39  ;;  %v3655_v51 = vrot.slane %v9396_v54, 2  ;;  %v3657_v60 = vrot.slane %v9398_v42, 2  ;;  %7188 = vmatmul.mubr.msk.bf16.vlgmr.msra.gmra.mrb[16].mxu1 %vm2816_vm5, %v9049_v32  ;;  %v10460_v63 = vld [vmem:[#allocation53_spill] sm:$0xff]  ;;  %v10461_v33 = vld [vmem:[#allocation54_spill] sm:$0xff] }
 0x32c   : > { %v9555_v56 = vpack.c.bf16 %v3648_v37, %v3646_v14  ;;  %v3653_v31 = vsel %vm1021_vm4, %v3650_v39, %v3652_v46  ;;  %v3659_v12 = vrot.slane %v9364_v21, 2  ;;  %v3660_v5 = vrot.slane %v9381_v44, 2  ;;  %7220 = vmatpush3.bf16.msra.mxu1 %v9067_v23  ;;  %7191 = vmatprep.mubr.msk.bf16.mxu1 %vm2816_vm5, %v9040_v16  ;;  %v8058_v4 = vld [vmem:[#allocation2] sm:$0xff]  ;;  %v8059_v39 = vld [vmem:[#allocation2 + $0x8] sm:$0xff]  ;;  %v8060_v46 = vld [vmem:[#allocation2 + $0x10] sm:$0x3] }
 0x32d   : > { %v9563_v50 = vpack.c.bf16 %v3653_v31, %v3651_v35  ;;  %v3656_v54 = vsel %vm1021_vm4, %v3654_v59, %v3655_v51  ;;  %v3658_v42 = vsel %vm1021_vm4, %v3655_v51, %v3657_v60  ;;  %v3662_v1 = vrot.slane %v9383_v38, 2  ;;  %7253 = vmatprep.subr.bf16.mxu1 %v9542_v41  ;;  %v10462_v37 = vld [vmem:[#allocation55_spill] sm:$0xff]  ;;  %v10463_v35 = vld [vmem:[#allocation56_spill] sm:$0xff] }
 0x32e   : > { %v9569_v62 = vpack.c.bf16 %v3658_v42, %v3656_v54  ;;  %v3661_v21 = vsel %vm1021_vm4, %v3659_v12, %v3660_v5  ;;  %v3664_v44 = vrot.slane %v9446_v29, 2  ;;  %v3665_v23 = vrot.slane %v9466_v2, 2  ;;  %v8053_v12 = vld [vmem:[%s10312_s3 + $0x20] sm:$0xff]   ;;  %v8055_v54 = vld [vmem:[%s10312_s3 + $0x30] sm:$0xff]   ;;  %v10465_v42 = vld [vmem:[#allocation14_spill] sm:$0xff] }
 0x32f   : > { %v3663_v48 = vsel %vm1021_vm4, %v3660_v5, %v3662_v1  ;;  %v3667_v38 = vrot.slane %v9468_v36, 2  ;;  %v4389_v29 = vrot.slane %v9574_v25, 2  ;;  %v4390_v2 = vrot.slane %v9576_v13, 2  ;;  %v10464_v5 = vld [vmem:[#allocation12_spill] sm:$0xff] }
 0x330   : > { %v9582_v18 = vpack.c.bf16 %v3663_v48, %v3661_v21  ;;  %v3666_v8 = vsel %vm1021_vm4, %v3664_v44, %v3665_v23  ;;  %v4392_v26 = vrot.slane %v9578_v0, 2  ;;  %v3589_v6 = vrot.slane %v8058_v4, 2  ;;  %v10466_v1 = vld [vmem:[#allocation20_spill] sm:$0xff]  ;;  %v10467_v21 = vld [vmem:[#allocation22_spill] sm:$0xff]  ;;  %v10468_v44 = vld [vmem:[#allocation27_spill] sm:$0xff] }
 0x331   : > { %v3668_v61 = vsel %vm1021_vm4, %v3665_v23, %v3667_v38  ;;  %v4391_v11 = vsel %vm1021_vm4, %v4389_v29, %v4390_v2  ;;  %v3590_v14 = vrot.slane %v8059_v39, 2  ;;  %v3592_v59 = vrot.slane %v8060_v46, 2  ;;  %v10469_v23 = vld [vmem:[#allocation28_spill] sm:$0xff]  ;;  %v10470_v48 = vld [vmem:[#allocation35_spill] sm:$0xff]  ;;  %v10471_v38 = vld [vmem:[#allocation37_spill] sm:$0xff] }
 0x332   : > { %v9589_v10 = vpack.c.bf16 %v3668_v61, %v3666_v8  ;;  %v4393_v52 = vsel %vm1021_vm4, %v4390_v2, %v4392_v26  ;;  %v10472_v8 = vld [vmem:[#allocation42_spill] sm:$0xff]  ;;  %v10473_v61 = vld [vmem:[#allocation44_spill] sm:$0xff]  ;;  %v4177_v26 = vrot.slane %v9576_v13, 1  ;;  %v5439_v46 = vld [vmem:[%s9835_s12 + $0x30] sm:$0xff] }
 0x333   : > { %7192 = vmatmul.mubr.msk.bf16.gmra.mrb[20].mxu1 %vm2816_vm5, %v10454_v3  ;;  %v9595_v36 = vpack.c.bf16 %v4393_v52, %v4391_v11  ;;  %v3591_v51 = vsel %vm1021_vm4, %v3589_v6, %v3590_v14  ;;  %v3593_v60 = vsel %vm1021_vm4, %v3590_v14, %v3592_v59  ;;  %v10474_v29 = vld [vmem:[#allocation48_spill] sm:$0xff]  ;;  %v10475_v2 = vld [vmem:[#allocation50_spill] sm:$0xff]  ;;  %v4179_v11 = vrot.slane %v9578_v0, 1 }
 0x334   : > { %7195 = vmatprep.mubr.msk.bf16.mxu1 %vm2816_vm5, %v10455_v7  ;;  %v3701_v31 = vpack.c.bf16 %v3593_v60, %v3591_v51  ;;  %v4176_v52 = vrot.slane %v9574_v25, 1  ;;  %v9811_v0 = vld [vmem:[#allocation2 + $0x1a8] sm:$0x3]  ;;  %v5436_v14 = vld [vmem:[%s9835_s12 + $0x18] sm:$0xff]  ;;  %v5443_v51 = vld [vmem:[%s9835_s12 + $0x50] sm:$0xff] }
 0x335   : > { %v4180_v6 = vsel %vm450_vm2, %v4177_v26, %v4179_v11  ;;  %v5438_v59 = vld [vmem:[%s9835_s12 + $0x28] sm:$0xff] }
 0x336   : > { %v4178_v4 = vsel %vm450_vm2, %v4176_v52, %v4177_v26  ;;  %v5442_v60 = vld [vmem:[%s9835_s12 + $0x48] sm:$0xff]  ;;  %v4814_v52 = vrot.slane %v9811_v0, 1 }
 0x337   : > { %v9735_v39 = vpack.c.bf16 %v4180_v6, %v4178_v4 }
 0x33b   : > { %7196 = vmatmul.mubr.msk.bf16.gmra.mrb[24].mxu1 %vm2816_vm5, %v10456_v17 }
 0x33c   : > { %7199 = vmatprep.mubr.msk.bf16.mxu1 %vm2816_vm5, %v10457_v28 }
 0x343   : > { %7200 = vmatmul.mubr.msk.bf16.gmra.mrb[28].mxu1 %vm2816_vm5, %v10458_v53 }
 0x344   : > { %7203 = vmatprep.mubr.msk.bf16.mxu1 %vm2816_vm5, %v10459_v57 }
 0x34b   : > { %7204 = vmatmul.mubr.msk.bf16.gmra.mrb[32].mxu1 %vm2816_vm5, %v9388_v15 }
 0x34c   : > { %7207 = vmatprep.mubr.msk.bf16.mxu1 %vm2816_vm5, %v9404_v47 }
 0x353   : > { %7208 = vmatmul.mubr.msk.bf16.gmra.mrb[36].mxu1 %vm2816_vm5, %v10460_v63 }
 0x354   : > { %7211 = vmatprep.mubr.msk.bf16.mxu1 %vm2816_vm5, %v10461_v33 }
 0x35b   : > { %7212 = vmatmul.mubr.msk.bf16.gmra.mrb[40].mxu1 %vm2816_vm5, %v10462_v37 }
 0x35c   : > { %7215 = vmatprep.mubr.msk.bf16.mxu1 %vm2816_vm5, %v10463_v35 }
 0x363   : > { %7216 = vmatmul.mubr.msk.bf16.gmra.mrb[44].mxu1 %vm2816_vm5, %v9478_v49 }
 0x364   : > { %7221 = vmatprep.mubr.msk.bf16.mxu1 %vm2816_vm5, %v3701_v31  ;;  %v5445_v31 = vld [vmem:[%s9835_s12 + $0x60] sm:$0xff] }
 0x36b   : > { %7222 = vmatmul.mubr.msk.bf16.vlgmr.msra.gmra.mrb[16].mxu1 %vm2816_vm5, %v9459_v22 }
 0x36c   : > { %7254 = vmatpush3.bf16.msra.mxu1 %v9542_v41  ;;  %7225 = vmatprep.mubr.msk.bf16.mxu1 %vm2816_vm5, %v9461_v27  ;;  %v8054_v41 = vld [vmem:[%s10312_s3 + $0x28] sm:$0xff]  }
 0x36d   : > { %7287 = vmatprep.subr.bf16.mxu1 %v8053_v12 }
 0x373   : > { %7226 = vmatmul.mubr.msk.bf16.gmra.mrb[20].mxu1 %vm2816_vm5, %v9480_v9 }
 0x374   : > { %7229 = vmatprep.mubr.msk.bf16.mxu1 %vm2816_vm5, %v9488_v40 }
 0x37b   : > { %7230 = vmatmul.mubr.msk.bf16.gmra.mrb[24].mxu1 %vm2816_vm5, %v9496_v24 }
 0x37c   : > { %7233 = vmatprep.mubr.msk.bf16.mxu1 %vm2816_vm5, %v9507_v30 }
 0x383   : > { %7234 = vmatmul.mubr.msk.bf16.gmra.mrb[28].mxu1 %vm2816_vm5, %v9520_v58 }
 0x384   : > { %7237 = vmatprep.mubr.msk.bf16.mxu1 %vm2816_vm5, %v9525_v55 }
 0x38b   : > { %7238 = vmatmul.mubr.msk.bf16.gmra.mrb[32].mxu1 %vm2816_vm5, %v9530_v45 }
 0x38c   : > { %7241 = vmatprep.mubr.msk.bf16.mxu1 %vm2816_vm5, %v9544_v19 }
 0x393   : > { %7242 = vmatmul.mubr.msk.bf16.gmra.mrb[36].mxu1 %vm2816_vm5, %v9555_v56 }
 0x394   : > { %7245 = vmatprep.mubr.msk.bf16.mxu1 %vm2816_vm5, %v9563_v50 }
 0x39b   : > { %7246 = vmatmul.mubr.msk.bf16.gmra.mrb[40].mxu1 %vm2816_vm5, %v9569_v62 }
 0x39c   : > { %7249 = vmatprep.mubr.msk.bf16.mxu1 %vm2816_vm5, %v9582_v18 }
 0x3a3   : > { %7250 = vmatmul.mubr.msk.bf16.gmra.mrb[44].mxu1 %vm2816_vm5, %v9589_v10 }
 0x3a4   : > { %7255 = vmatprep.mubr.msk.bf16.mxu1 %vm2816_vm5, %v9049_v32  ;;  %v9693_v32 = vpack.c.bf16 %v9576_v13, %v9574_v25  ;;  %v8056_v13 = vld [vmem:[%s10312_s3 + $0x38] sm:$0xff]  }
 0x3ab   : > { %7256 = vmatmul.mubr.msk.bf16.vlgmr.msra.gmra.mrb[16].mxu1 %vm2816_vm5, %v9040_v16 }
 0x3ac   : > { %7288 = vmatpush3.bf16.msra.mxu1 %v8053_v12  ;;  %7259 = vmatprep.mubr.msk.bf16.mxu1 %vm2816_vm5, %v10454_v3  ;;  %v5444_v12 = vld [vmem:[%s9835_s12 + $0x58] sm:$0xff] }
 0x3ad   : > { %7321 = vmatprep.subr.bf16.mxu1 %v8054_v41 }
 0x3b3   : > { %7260 = vmatmul.mubr.msk.bf16.gmra.mrb[20].mxu1 %vm2816_vm5, %v10455_v7 }
 0x3b4   : > { %7263 = vmatprep.mubr.msk.bf16.mxu1 %vm2816_vm5, %v10456_v17 }
 0x3bb   : > { %7264 = vmatmul.mubr.msk.bf16.gmra.mrb[24].mxu1 %vm2816_vm5, %v10457_v28 }
 0x3bc   : > { %7267 = vmatprep.mubr.msk.bf16.mxu1 %vm2816_vm5, %v10458_v53 }
 0x3c3   : > { %7268 = vmatmul.mubr.msk.bf16.gmra.mrb[28].mxu1 %vm2816_vm5, %v10459_v57 }
 0x3c4   : > { %7271 = vmatprep.mubr.msk.bf16.mxu1 %vm2816_vm5, %v9388_v15 }
 0x3cb   : > { %7272 = vmatmul.mubr.msk.bf16.gmra.mrb[32].mxu1 %vm2816_vm5, %v9404_v47 }
 0x3cc   : > { %7275 = vmatprep.mubr.msk.bf16.mxu1 %vm2816_vm5, %v10460_v63 }
 0x3d3   : > { %7276 = vmatmul.mubr.msk.bf16.gmra.mrb[36].mxu1 %vm2816_vm5, %v10461_v33 }
 0x3d4   : > { %7279 = vmatprep.mubr.msk.bf16.mxu1 %vm2816_vm5, %v10462_v37 }
 0x3db   : > { %7280 = vmatmul.mubr.msk.bf16.gmra.mrb[40].mxu1 %vm2816_vm5, %v10463_v35 }
 0x3dc   : > { %7283 = vmatprep.mubr.msk.bf16.mxu1 %vm2816_vm5, %v9478_v49 }
 0x3e3   : > { %7284 = vmatmul.mubr.msk.bf16.gmra.mrb[44].mxu1 %vm2816_vm5, %v9693_v32 }
 0x3e4   : > { %7289 = vmatprep.mubr.msk.bf16.mxu1 %vm2816_vm5, %v10464_v5  ;;  %v5449_v5 = vld [vmem:[%s9835_s12 + $0x80] sm:$0xff] }
 0x3eb   : > { %7290 = vmatmul.mubr.msk.bf16.vlgmr.msra.gmra.mrb[16].mxu1 %vm2816_vm5, %v10465_v42 }
 0x3ec   : > { %7322 = vmatpush3.bf16.msra.mxu1 %v8054_v41  ;;  %7293 = vmatprep.mubr.msk.bf16.mxu1 %vm2816_vm5, %v10466_v1  ;;  %v5447_v41 = vld [vmem:[%s9835_s12 + $0x70] sm:$0xff] }
 0x3ed   : > { %7355 = vmatprep.subr.bf16.mxu1 %v8055_v54 }
 0x3f3   : > { %7294 = vmatmul.mubr.msk.bf16.gmra.mrb[20].mxu1 %vm2816_vm5, %v10467_v21 }
 0x3f4   : > { %7297 = vmatprep.mubr.msk.bf16.mxu1 %vm2816_vm5, %v10468_v44 }
 0x3fb   : > { %7298 = vmatmul.mubr.msk.bf16.gmra.mrb[24].mxu1 %vm2816_vm5, %v10469_v23 }
 0x3fc   : > { %7301 = vmatprep.mubr.msk.bf16.mxu1 %vm2816_vm5, %v10470_v48 }
 0x403   : > { %7302 = vmatmul.mubr.msk.bf16.gmra.mrb[28].mxu1 %vm2816_vm5, %v10471_v38 }
 0x404   : > { %7305 = vmatprep.mubr.msk.bf16.mxu1 %vm2816_vm5, %v10472_v8 }
 0x40b   : > { %7306 = vmatmul.mubr.msk.bf16.gmra.mrb[32].mxu1 %vm2816_vm5, %v10473_v61 }
 0x40c   : > { %7309 = vmatprep.mubr.msk.bf16.mxu1 %vm2816_vm5, %v10474_v29 }
 0x413   : > { %7310 = vmatmul.mubr.msk.bf16.gmra.mrb[36].mxu1 %vm2816_vm5, %v10475_v2 }
 0x414   : > { %7313 = vmatprep.mubr.msk.bf16.mxu1 %vm2816_vm5, %v9437_v43 }
 0x41b   : > { %7314 = vmatmul.mubr.msk.bf16.gmra.mrb[40].mxu1 %vm2816_vm5, %v9430_v34 }
 0x41c   : > { %7317 = vmatprep.mubr.msk.bf16.mxu1 %vm2816_vm5, %v9491_v20 }
 0x423   : > { %7318 = vmatmul.mubr.msk.bf16.gmra.mrb[44].mxu1 %vm2816_vm5, %v9735_v39 }
 0x424   : > { %7323 = vmatprep.mubr.msk.bf16.mxu1 %vm2816_vm5, %v9459_v22  ;;  %v8057_v22 = vld [vmem:[%s10312_s3 + $0x40] sm:$0xff]  }
 0x42b   : > { %7324 = vmatmul.mubr.msk.bf16.vlgmr.msra.gmra.mrb[16].mxu1 %vm2816_vm5, %v9461_v27 }
 0x42c   : > { %7356 = vmatpush3.bf16.msra.mxu1 %v8055_v54  ;;  %7327 = vmatprep.mubr.msk.bf16.mxu1 %vm2816_vm5, %v9480_v9  ;;  %v5448_v54 = vld [vmem:[%s9835_s12 + $0x78] sm:$0xff] }
 0x42d   : > { %7389 = vmatprep.subr.bf16.mxu1 %v8056_v13 }
 0x433   : > { %7328 = vmatmul.mubr.msk.bf16.gmra.mrb[20].mxu1 %vm2816_vm5, %v9488_v40 }
 0x434   : > { %7331 = vmatprep.mubr.msk.bf16.mxu1 %vm2816_vm5, %v9496_v24 }
 0x43b   : > { %7332 = vmatmul.mubr.msk.bf16.gmra.mrb[24].mxu1 %vm2816_vm5, %v9507_v30 }
 0x43c   : > { %7335 = vmatprep.mubr.msk.bf16.mxu1 %vm2816_vm5, %v9520_v58 }
 0x443   : > { %7336 = vmatmul.mubr.msk.bf16.gmra.mrb[28].mxu1 %vm2816_vm5, %v9525_v55 }
 0x444   : > { %7339 = vmatprep.mubr.msk.bf16.mxu1 %vm2816_vm5, %v9530_v45 }
 0x44b   : > { %7340 = vmatmul.mubr.msk.bf16.gmra.mrb[32].mxu1 %vm2816_vm5, %v9544_v19 }
 0x44c   : > { %7343 = vmatprep.mubr.msk.bf16.mxu1 %vm2816_vm5, %v9555_v56 }
 0x453   : > { %7344 = vmatmul.mubr.msk.bf16.gmra.mrb[36].mxu1 %vm2816_vm5, %v9563_v50 }
 0x454   : > { %7347 = vmatprep.mubr.msk.bf16.mxu1 %vm2816_vm5, %v9569_v62 }
 0x45b   : > { %7348 = vmatmul.mubr.msk.bf16.gmra.mrb[40].mxu1 %vm2816_vm5, %v9582_v18 }
 0x45c   : > { %7351 = vmatprep.mubr.msk.bf16.mxu1 %vm2816_vm5, %v9589_v10 }
 0x463   : > { %7352 = vmatmul.mubr.msk.bf16.gmra.mrb[44].mxu1 %vm2816_vm5, %v9595_v36 }
 0x464   : > { %7357 = vmatprep.mubr.msk.bf16.mxu1 %vm2816_vm5, %v9040_v16  ;;  %v9803_v16 = vld [vmem:[#allocation2 + $0x198] sm:$0xff] }
 0x465   : > { %v4811_v26 = vrot.slane %v9803_v16, 1 }
 0x46b   : > { %7358 = vmatmul.mubr.msk.bf16.vlgmr.msra.gmra.mrb[16].mxu1 %vm2816_vm5, %v10454_v3 }
 0x46c   : > { %7390 = vmatpush3.bf16.msra.mxu1 %v8056_v13  ;;  %7361 = vmatprep.mubr.msk.bf16.mxu1 %vm2816_vm5, %v10455_v7  ;;  %v5027_v7 = vrot.slane %v9811_v0, 2 }
 0x46d   : > { %7423 = vmatprep.subr.bf16.mxu1 %v8057_v22 }
 0x473   : > { %7362 = vmatmul.mubr.msk.bf16.gmra.mrb[20].mxu1 %vm2816_vm5, %v10456_v17 }
 0x474   : > { %7365 = vmatprep.mubr.msk.bf16.mxu1 %vm2816_vm5, %v10457_v28 }
 0x47b   : > { %7366 = vmatmul.mubr.msk.bf16.gmra.mrb[24].mxu1 %vm2816_vm5, %v10458_v53 }
 0x47c   : > { %7369 = vmatprep.mubr.msk.bf16.mxu1 %vm2816_vm5, %v10459_v57  ;;  %v5435_v57 = vld [vmem:[%s9835_s12 + $0x10] sm:$0xff] }
 0x47d   : > { %5501 = vrot.lane.b32.xlu0 %v5435_v57, %s8071_s13 }
 0x483   : > { %7370 = vmatmul.mubr.msk.bf16.gmra.mrb[28].mxu1 %vm2816_vm5, %v9388_v15  ;;  %v9805_v15 = vld [vmem:[#allocation2 + $0x1a0] sm:$0xff] }
 0x484   : > { %7373 = vmatprep.mubr.msk.bf16.mxu1 %vm2816_vm5, %v9404_v47  ;;  %v5024_v47 = vrot.slane %v9803_v16, 2  ;;  %v5025_v25 = vrot.slane %v9805_v15, 2  ;;  %v4602_v28 = vpack.c.bf16 %v9805_v15, %v9803_v16  ;;  %v4812_v11 = vrot.slane %v9805_v15, 1 }
 0x486   : > { %v9816_v3 = vsel %vm1021_vm4, %v5024_v47, %v5025_v25  ;;  %v9820_v17 = vsel %vm1021_vm4, %v5025_v25, %v5027_v7  ;;  %v4815_v4 = vsel %vm450_vm2, %v4812_v11, %v4814_v52 }
 0x487   : > { %v5031_v53 = vpack.c.bf16 %v9820_v17, %v9816_v3 }
 0x48b   : > { %7374 = vmatmul.mubr.msk.bf16.gmra.mrb[32].mxu1 %vm2816_vm5, %v10460_v63  ;;  %v5434_v63 = vld [vmem:[%s9835_s12 + $0x8] sm:$0xff] }
 0x48c   : > { %7377 = vmatprep.mubr.msk.bf16.mxu1 %vm2816_vm5, %v10461_v33  ;;  %v5437_v33 = vld [vmem:[%s9835_s12 + $0x20] sm:$0xff] }
 0x48d   : > { %5505 = vrot.lane.b32.xlu0 %v5437_v33, %s8071_s13 }
 0x491   : > { %5509 = vrot.lane.b32.xlu0 %v5439_v46, %s8071_s13 }
 0x493   : > { %7378 = vmatmul.mubr.msk.bf16.gmra.mrb[36].mxu1 %vm2816_vm5, %v10462_v37  ;;  %v5441_v37 = vld [vmem:[%s9835_s12 + $0x40] sm:$0xff] }
 0x494   : > { %7381 = vmatprep.mubr.msk.bf16.mxu1 %vm2816_vm5, %v10463_v35  ;;  %v5440_v35 = vld [vmem:[%s9835_s12 + $0x38] sm:$0xff] }
 0x495   : > { %5513 = vrot.lane.b32.xlu0 %v5441_v37, %s8071_s13 }
 0x499   : > { %5517 = vrot.lane.b32.xlu0 %v5443_v51, %s8071_s13 }
 0x49b   : > { %7382 = vmatmul.mubr.msk.bf16.gmra.mrb[40].mxu1 %vm2816_vm5, %v9478_v49  ;;  %v5433_v49 = vld [vmem:[%s9835_s12] sm:$0xff] }
 0x49c   : > { %7385 = vmatprep.mubr.msk.bf16.mxu1 %vm2816_vm5, %v9693_v32  ;;  %5497 = vrot.lane.b32.xlu1 %v5433_v49, %s8071_s13  ;;  %v5446_v32 = vld [vmem:[%s9835_s12 + $0x68] sm:$0xff] }
 0x49d   : > { %5521 = vrot.lane.b32.xlu0 %v5445_v31, %s8071_s13 }
 0x4a0   : > { %5499 = vrot.lane.b32.xlu1 %v5434_v63, %s8071_s13 }
 0x4a1   : > { %5525 = vrot.lane.b32.xlu0 %v5447_v41, %s8071_s13 }
 0x4a3   : > { %7386 = vmatmul.mubr.msk.bf16.gmra.mrb[44].mxu1 %vm2816_vm5, %v4602_v28 }
 0x4a4   : > { %7391 = vmatprep.mubr.msk.bf16.mxu1 %vm2816_vm5, %v10465_v42  ;;  %5503 = vrot.lane.b32.xlu1 %v5436_v14, %s8071_s13  ;;  %v5451_v42 = vld [vmem:[%s9835_s12 + $0x90] sm:$0xff] }
 0x4a5   : > { %5529 = vrot.lane.b32.xlu0 %v5449_v5, %s8071_s13 }
 0x4a8   : > { %5507 = vrot.lane.b32.xlu1 %v5438_v59, %s8071_s13 }
 0x4a9   : > { %5533 = vrot.lane.b32.xlu0 %v5451_v42, %s8071_s13 }
 0x4ab   : > { %7392 = vmatmul.mubr.msk.bf16.vlgmr.msra.gmra.mrb[16].mxu1 %vm2816_vm5, %v10466_v1  ;;  %v5450_v1 = vld [vmem:[%s9835_s12 + $0x88] sm:$0xff] }
 0x4ac   : > { %7424 = vmatpush3.bf16.msra.mxu1 %v8057_v22  ;;  %7395 = vmatprep.mubr.msk.bf16.mxu1 %vm2816_vm5, %v10467_v21  ;;  %v5453_v21 = vld [vmem:[%s9835_s12 + $0xa0] sm:$0xff] }
 0x4ad   : > { %5511 = vrot.lane.b32.xlu1 %v5440_v35, %s8071_s13  ;;  %5537 = vrot.lane.b32.xlu0 %v5453_v21, %s8071_s13 }
 0x4b1   : > { %5515 = vrot.lane.b32.xlu1 %v5442_v60, %s8071_s13 }
 0x4b3   : > { %7396 = vmatmul.mubr.msk.bf16.gmra.mrb[20].mxu1 %vm2816_vm5, %v10468_v44  ;;  %v5452_v44 = vld [vmem:[%s9835_s12 + $0x98] sm:$0xff] }
 0x4b4   : > { %7399 = vmatprep.mubr.msk.bf16.mxu1 %vm2816_vm5, %v10469_v23  ;;  %v5455_v23 = vld [vmem:[%s9835_s12 + $0xb0] sm:$0xff] }
 0x4b5   : > { %5519 = vrot.lane.b32.xlu1 %v5444_v12, %s8071_s13  ;;  %5541 = vrot.lane.b32.xlu0 %v5455_v23, %s8071_s13 }
 0x4b9   : > { %5523 = vrot.lane.b32.xlu1 %v5446_v32, %s8071_s13 }
 0x4bb   : > { %7400 = vmatmul.mubr.msk.bf16.gmra.mrb[24].mxu1 %vm2816_vm5, %v10470_v48  ;;  %v5454_v48 = vld [vmem:[%s9835_s12 + $0xa8] sm:$0xff] }
 0x4bc   : > { %7403 = vmatprep.mubr.msk.bf16.mxu1 %vm2816_vm5, %v10471_v38  ;;  %v5457_v38 = vld [vmem:[%s9835_s12 + $0xc0] sm:$0xff] }
 0x4bd   : > { %5527 = vrot.lane.b32.xlu1 %v5448_v54, %s8071_s13  ;;  %5545 = vrot.lane.b32.xlu0 %v5457_v38, %s8071_s13 }
 0x4c1   : > { %5531 = vrot.lane.b32.xlu1 %v5450_v1, %s8071_s13 }
 0x4c3   : > { %7404 = vmatmul.mubr.msk.bf16.gmra.mrb[28].mxu1 %vm2816_vm5, %v10472_v8  ;;  %v5456_v8 = vld [vmem:[%s9835_s12 + $0xb8] sm:$0xff] }
 0x4c4   : > { %7407 = vmatprep.mubr.msk.bf16.mxu1 %vm2816_vm5, %v10473_v61  ;;  %v5459_v61 = vld [vmem:[%s9835_s12 + $0xd0] sm:$0xff] }
 0x4c5   : > { %5535 = vrot.lane.b32.xlu1 %v5452_v44, %s8071_s13  ;;  %5549 = vrot.lane.b32.xlu0 %v5459_v61, %s8071_s13 }
 0x4c9   : > { %5539 = vrot.lane.b32.xlu1 %v5454_v48, %s8071_s13 }
 0x4cb   : > { %7408 = vmatmul.mubr.msk.bf16.gmra.mrb[32].mxu1 %vm2816_vm5, %v10474_v29  ;;  %v5458_v29 = vld [vmem:[%s9835_s12 + $0xc8] sm:$0xff] }
 0x4cc   : > { %7411 = vmatprep.mubr.msk.bf16.mxu1 %vm2816_vm5, %v10475_v2  ;;  %v5461_v2 = vld [vmem:[%s9835_s12 + $0xe0] sm:$0xff] }
 0x4cd   : > { %5543 = vrot.lane.b32.xlu1 %v5456_v8, %s8071_s13  ;;  %5553 = vrot.lane.b32.xlu0 %v5461_v2, %s8071_s13 }
 0x4d1   : > { %5547 = vrot.lane.b32.xlu1 %v5458_v29, %s8071_s13 }
 0x4d3   : > { %7412 = vmatmul.mubr.msk.bf16.gmra.mrb[36].mxu1 %vm2816_vm5, %v9437_v43  ;;  %v4813_v43 = vsel %vm450_vm2, %v4811_v26, %v4812_v11 }
 0x4d4   : > { %7415 = vmatprep.mubr.msk.bf16.mxu1 %vm2816_vm5, %v9430_v34  ;;  %v5460_v34 = vld [vmem:[%s9835_s12 + $0xd8] sm:$0xff]  ;;  %v4818_v6 = vpack.c.bf16 %v4815_v4, %v4813_v43 }
 0x4d5   : > { %5551 = vrot.lane.b32.xlu1 %v5460_v34, %s8071_s13 }
 0x4db   : > { %7416 = vmatmul.mubr.msk.bf16.gmra.mrb[40].mxu1 %vm2816_vm5, %v9491_v20 }
 0x4dc   : > { %7419 = vmatprep.mubr.msk.bf16.mxu1 %vm2816_vm5, %v9735_v39 }
 0x4e3   : > { %7420 = vmatmul.mubr.msk.bf16.gmra.mrb[44].mxu1 %vm2816_vm5, %v4818_v6 }
 0x4e4   : > { %7425 = vmatprep.mubr.msk.bf16.mxu1 %vm2816_vm5, %v9461_v27  ;;  %v5462_v27 = vld [vmem:[%s9835_s12 + $0xe8] sm:$0xff] }
 0x4e5   : > { %5555 = vrot.lane.b32.xlu1 %v5462_v27, %s8071_s13 }
 0x4eb   : > { %7426 = vmatmul.mubr.msk.bf16.vlgmr.msra.gmra.mrb[16].mxu1 %vm2816_vm5, %v9480_v9  ;;  %v9968_v9 = vld [vmem:[%s10313_s4] ss:$0 sm:$0xff] }
 0x4ec   : > { %7429 = vmatprep.mubr.msk.bf16.mxu1 %vm2816_vm5, %v9488_v40 }
 0x4ef   : > { %v10005_v51 = vpop.permute.xlu0 %5501 }
 0x4f3   : > { %7430 = vmatmul.mubr.msk.bf16.gmra.mrb[20].mxu1 %vm2816_vm5, %v9496_v24 }
 0x4f4   : > { %7433 = vmatprep.mubr.msk.bf16.mxu1 %vm2816_vm5, %v9507_v30 }
 0x4fb   : > { %7434 = vmatmul.mubr.msk.bf16.gmra.mrb[24].mxu1 %vm2816_vm5, %v9520_v58 }
 0x4fc   : > { %7437 = vmatprep.mubr.msk.bf16.mxu1 %vm2816_vm5, %v9525_v55 }
 0x4ff   : > { %v10015_v54 = vpop.permute.xlu0 %5505 }
 0x503   : > { %7438 = vmatmul.mubr.msk.bf16.gmra.mrb[28].mxu1 %vm2816_vm5, %v9530_v45  ;;  %v10025_v61 = vpop.permute.xlu0 %5509 }
 0x504   : > { %7441 = vmatprep.mubr.msk.bf16.mxu1 %vm2816_vm5, %v9544_v19 }
 0x507   : > { %v10035_v6 = vpop.permute.xlu0 %5513 }
 0x50b   : > { %7442 = vmatmul.mubr.msk.bf16.gmra.mrb[32].mxu1 %vm2816_vm5, %v9555_v56 }
 0x50c   : > { %7445 = vmatprep.mubr.msk.bf16.mxu1 %vm2816_vm5, %v9563_v50 }
 0x50e   : > { %v9993_v49 = vpop.permute.xlu1 %5497 }
 0x512   : > { %v10001_v59 = vpop.permute.xlu1 %5499 }
 0x513   : > { %7446 = vmatmul.mubr.msk.bf16.gmra.mrb[36].mxu1 %vm2816_vm5, %v9569_v62 }
 0x514   : > { %7449 = vmatprep.mubr.msk.bf16.mxu1 %vm2816_vm5, %v9582_v18 }
 0x516   : > { %v10011_v32 = vpop.permute.xlu1 %5503 }
 0x51a   : > { %v10021_v38 = vpop.permute.xlu1 %5507 }
 0x51b   : > { %7450 = vmatmul.mubr.msk.bf16.gmra.mrb[40].mxu1 %vm2816_vm5, %v9589_v10 }
 0x51c   : > { %7453 = vmatprep.mubr.msk.bf16.mxu1 %vm2816_vm5, %v9595_v36 }
 0x51f   : > { %v10031_v34 = vpop.permute.xlu1 %5511 }
 0x523   : > { %7454 = vmatmul.mubr.msk.bf16.gmra.mrb[44].mxu1 %vm2816_vm5, %v5031_v53 }
 0x5be   : > { %v7427_v40 = vpop.f32.mrb[16].mxu1 }
 0x5bf   : > { %v5243_v20 = vadd.f32 %v7427_v40, %v9968_v9  ;;  %v5075_v24 = vpop.f32.mrb[17].mxu1 }
 0x5c0   : > { %v7428_v30 = vpop.f32.mrb[18].mxu1  ;;  %v5241_v45 = vadd.f32 %v9968_v9, %v5075_v24  ;;  %v10041_v24 = vpop.permute.xlu1 %5515 }
 0x5c1   : > { %v5244_v58 = vadd.f32 %v7428_v30, %v9968_v9  ;;  %5309 = vrot.lane.b32.xlu0 %v5243_v20, %s8071_s13  ;;  %v5078_v55 = vpop.f32.mrb[19].mxu1  ;;  %v5625_v30 = vld [vmem:[%s10315_s6] sm:$0xff] }
 0x5c2   : > { %v5242_v56 = vadd.f32 %v9968_v9, %v5078_v55 }
 0x5c3   : > { %5311 = vrot.lane.b32.xlu1 %v5244_v58, %s8071_s13  ;;  %v5626_v58 = vld [vmem:[%s10315_s6 + $0x8] sm:$0xff] }
 0x5c5   : > { %5305 = vrot.lane.b32.xlu0 %v5241_v45, %s8071_s13 }
 0x5c6   : > { %v7431_v19 = vpop.f32.mrb[20].mxu1 }
 0x5c7   : > { %v5091_v50 = vpop.f32.mrb[21].mxu1  ;;  %v5247_v36 = vadd.f32 %v7431_v19, %v9968_v9  ;;  %v10051_v19 = vpop.permute.xlu0 %5517 }
 0x5c8   : > { %v7432_v62 = vpop.f32.mrb[22].mxu1  ;;  %v5245_v22 = vadd.f32 %v9968_v9, %v5091_v50 }
 0x5c9   : > { %v5248_v18 = vadd.f32 %v7432_v62, %v9968_v9  ;;  %5307 = vrot.lane.b32.xlu0 %v5242_v56, %s8071_s13  ;;  %v5094_v10 = vpop.f32.mrb[23].mxu1  ;;  %v7509_v56 = vpack.c.bf16 %v5626_v58, %v5625_v30 }
 0x5ca   : > { %v5246_v39 = vadd.f32 %v9968_v9, %v5094_v10 }
 0x5cb   : > { %5319 = vrot.lane.b32.xlu1 %v5248_v18, %s8071_s13  ;;  %7510 = vmatprep.subr.bf16.mxu0 %v7509_v56 }
 0x5cc   : > { %7512 = vmatpush3.bf16.msra.mxu0 %v7509_v56  ;;  %v10483_v56 = vld [vmem:[#allocation7_spill] sm:$0xff] }
 0x5cd   : > { %5317 = vrot.lane.b32.xlu0 %v5247_v36, %s8071_s13 }
 0x5ce   : > { %v7435_v13 = vpop.f32.mrb[24].mxu1 }
 0x5cf   : > { %5315 = vrot.lane.b32.xlu1 %v5246_v39, %s8071_s13  ;;  %v5107_v16 = vpop.f32.mrb[25].mxu1  ;;  %v5251_v0 = vadd.f32 %v7435_v13, %v9968_v9  ;;  %v10060_v13 = vpop.permute.xlu1 %5519 }
 0x5d0   : > { %v7436_v15 = vpop.f32.mrb[26].mxu1  ;;  %v5249_v17 = vadd.f32 %v9968_v9, %v5107_v16  ;;  %v5463_v16 = vld [vmem:[%s9835_s12 + $0xf0] sm:$0xff] }
 0x5d1   : > { %v5252_v47 = vadd.f32 %v7436_v15, %v9968_v9  ;;  %5313 = vrot.lane.b32.xlu0 %v5245_v22, %s8071_s13  ;;  %v5110_v25 = vpop.f32.mrb[27].mxu1  ;;  %v10062_v22 = vpop.permute.xlu0 %5521 }
 0x5d2   : > { %v5250_v3 = vadd.f32 %v9968_v9, %v5110_v25  ;;  %v5464_v25 = vld [vmem:[%s9835_s12 + $0xf8] sm:$0xff] }
 0x5d3   : > { %5327 = vrot.lane.b32.xlu1 %v5252_v47, %s8071_s13  ;;  %v10067_v15 = vpop.permute.xlu1 %5523 }
 0x5d5   : > { %5325 = vrot.lane.b32.xlu0 %v5251_v0, %s8071_s13  ;;  %v10069_v47 = vpop.permute.xlu0 %5525 }
 0x5d6   : > { %v7439_v7 = vpop.f32.mrb[28].mxu1 }
 0x5d7   : > { %5323 = vrot.lane.b32.xlu1 %v5250_v3, %s8071_s13  ;;  %v5123_v28 = vpop.f32.mrb[29].mxu1  ;;  %v5255_v33 = vadd.f32 %v7439_v7, %v9968_v9 }
 0x5d8   : > { %v7440_v53 = vpop.f32.mrb[30].mxu1  ;;  %v5253_v37 = vadd.f32 %v9968_v9, %v5123_v28 }
 0x5d9   : > { %v5256_v57 = vadd.f32 %v7440_v53, %v9968_v9  ;;  %5321 = vrot.lane.b32.xlu0 %v5249_v17, %s8071_s13  ;;  %v5126_v63 = vpop.f32.mrb[31].mxu1  ;;  %v10076_v0 = vpop.permute.xlu0 %5529 }
 0x5da   : > { %v5254_v14 = vadd.f32 %v9968_v9, %v5126_v63 }
 0x5db   : > { %5335 = vrot.lane.b32.xlu1 %v5256_v57, %s8071_s13 }
 0x5dd   : > { %5333 = vrot.lane.b32.xlu0 %v5255_v33, %s8071_s13  ;;  %v10080_v7 = vpop.permute.xlu0 %5533 }
 0x5de   : > { %v7443_v46 = vpop.f32.mrb[32].mxu1 }
 0x5df   : > { %5331 = vrot.lane.b32.xlu1 %v5254_v14, %s8071_s13  ;;  %v5139_v35 = vpop.f32.mrb[33].mxu1  ;;  %v5259_v41 = vadd.f32 %v7443_v46, %v9968_v9 }
 0x5e0   : > { %v7444_v60 = vpop.f32.mrb[34].mxu1  ;;  %v5257_v1 = vadd.f32 %v9968_v9, %v5139_v35 }
 0x5e1   : > { %v5260_v31 = vadd.f32 %v7444_v60, %v9968_v9  ;;  %5329 = vrot.lane.b32.xlu0 %v5253_v37, %s8071_s13  ;;  %v5142_v12 = vpop.f32.mrb[35].mxu1  ;;  %v10084_v28 = vpop.permute.xlu0 %5537 }
 0x5e2   : > { %v5258_v5 = vadd.f32 %v9968_v9, %v5142_v12  ;;  %v10476_v12 = vld [vmem:[#allocation3_spill] sm:$0xff] }
 0x5e3   : > { %5343 = vrot.lane.b32.xlu1 %v5260_v31, %s8071_s13 }
 0x5e5   : > { %5341 = vrot.lane.b32.xlu0 %v5259_v41, %s8071_s13  ;;  %v10088_v57 = vpop.permute.xlu0 %5541 }
 0x5e6   : > { %v7447_v42 = vpop.f32.mrb[36].mxu1 }
 0x5e7   : > { %5339 = vrot.lane.b32.xlu1 %v5258_v5, %s8071_s13  ;;  %v5155_v21 = vpop.f32.mrb[37].mxu1  ;;  %v5263_v8 = vadd.f32 %v7447_v42, %v9968_v9 }
 0x5e8   : > { %v7448_v44 = vpop.f32.mrb[38].mxu1  ;;  %v5261_v26 = vadd.f32 %v9968_v9, %v5155_v21 }
 0x5e9   : > { %v5264_v23 = vadd.f32 %v7448_v44, %v9968_v9  ;;  %5337 = vrot.lane.b32.xlu0 %v5257_v1, %s8071_s13  ;;  %v5158_v48 = vpop.f32.mrb[39].mxu1  ;;  %v10092_v33 = vpop.permute.xlu0 %5545  ;;  %v10477_v1 = vld [vmem:[#allocation4_spill] sm:$0xff] }
 0x5ea   : > { %v5262_v29 = vadd.f32 %v9968_v9, %v5158_v48 }
 0x5eb   : > { %5351 = vrot.lane.b32.xlu1 %v5264_v23, %s8071_s13 }
 0x5ed   : > { %5349 = vrot.lane.b32.xlu0 %v5263_v8, %s8071_s13  ;;  %v10096_v46 = vpop.permute.xlu0 %5549  ;;  %v10478_v8 = vld [vmem:[#allocation6_spill] sm:$0xff] }
 0x5ee   : > { %v7451_v2 = vpop.f32.mrb[40].mxu1 }
 0x5ef   : > { %5347 = vrot.lane.b32.xlu1 %v5262_v29, %s8071_s13  ;;  %v5171_v11 = vpop.f32.mrb[41].mxu1  ;;  %v5267_v27 = vadd.f32 %v7451_v2, %v9968_v9 }
 0x5f0   : > { %v7452_v52 = vpop.f32.mrb[42].mxu1  ;;  %v5265_v55 = vadd.f32 %v9968_v9, %v5171_v11 }
 0x5f1   : > { %v5268_v43 = vadd.f32 %v7452_v52, %v9968_v9  ;;  %5345 = vrot.lane.b32.xlu0 %v5261_v26, %s8071_s13  ;;  %v5174_v4 = vpop.f32.mrb[43].mxu1  ;;  %v10100_v35 = vpop.permute.xlu0 %5553  ;;  %v10479_v26 = vld [vmem:[#allocation5_spill] sm:$0xff] }
 0x5f2   : > { %v5266_v40 = vadd.f32 %v9968_v9, %v5174_v4 }
 0x5f3   : > { %5359 = vrot.lane.b32.xlu1 %v5268_v43, %s8071_s13 }
 0x5f5   : > { %5357 = vrot.lane.b32.xlu0 %v5267_v27, %s8071_s13  ;;  %v10480_v27 = vld [vmem:[#allocation10_spill] sm:$0xff] }
 0x5f6   : > { %v7455_v20 = vpop.f32.mrb[44].mxu1 }
 0x5f7   : > { %5355 = vrot.lane.b32.xlu1 %v5266_v40, %s8071_s13  ;;  %v5187_v45 = vpop.f32.mrb[45].mxu1  ;;  %v5271_v36 = vadd.f32 %v7455_v20, %v9968_v9 }
 0x5f8   : > { %v5269_v50 = vadd.f32 %v9968_v9, %v5187_v45  ;;  %v7456_v62 = vpop.f32.mrb[46].mxu1 }
 0x5f9   : > { %v5272_v18 = vadd.f32 %v7456_v62, %v9968_v9  ;;  %5353 = vrot.lane.b32.xlu0 %v5265_v55, %s8071_s13  ;;  %v5190_v10 = vpop.f32.mrb[47].mxu1  ;;  %v10482_v55 = vld [vmem:[#allocation9_spill] sm:$0xff] }
 0x5fa   : > { %v5270_v39 = vadd.f32 %v9968_v9, %v5190_v10  ;;  %v10074_v9 = vpop.permute.xlu1 %5527 }
 0x5fb   : > { %5367 = vrot.lane.b32.xlu1 %v5272_v18, %s8071_s13 }
 0x5fd   : > { %5365 = vrot.lane.b32.xlu0 %v5271_v36, %s8071_s13 }
 0x5fe   : > { %v10078_v3 = vpop.permute.xlu1 %5531 }
 0x5ff   : > { %5363 = vrot.lane.b32.xlu1 %v5270_v39, %s8071_s13  ;;  %v10484_v39 = vld [vmem:[#allocation16_spill] sm:$0xff] }
 0x601   : > { %5361 = vrot.lane.b32.xlu0 %v5269_v50, %s8071_s13 }
 0x602   : > { %v10082_v17 = vpop.permute.xlu1 %5535 }
 0x605   : > { %5557 = vrot.lane.b32.xlu0 %v5463_v16, %s8071_s13 }
 0x606   : > { %v10086_v53 = vpop.permute.xlu1 %5539 }
 0x609   : > { %5559 = vrot.lane.b32.xlu0 %v5464_v25, %s8071_s13 }
 0x60a   : > { %v10090_v63 = vpop.permute.xlu1 %5543 }
 0x60e   : > { %v10094_v14 = vpop.permute.xlu1 %5547 }
 0x612   : > { %v10098_v37 = vpop.permute.xlu1 %5551 }
 0x616   : > { %v10102_v60 = vpop.permute.xlu1 %5555 }
 0x633   : > { %v5310_v31 = vpop.permute.xlu0 %5309 }
 0x634   : > { %v5403_v41 = vadd.f32 %v5310_v31, %v10476_v12  ;;  %v10485_v31 = vld [vmem:[#allocation13_spill] sm:$0xff] }
 0x635   : > { %v5312_v44 = vpop.permute.xlu1 %5311 }
 0x636   : > { %v5595_v5 = vadd.f32 %v10005_v51, %v5403_v41  ;;  %v5404_v11 = vadd.f32 %v5312_v44, %v10479_v26 }
 0x637   : > { %v5306_v42 = vpop.permute.xlu0 %5305 }
 0x638   : > { %v5401_v21 = vadd.f32 %v5306_v42, %v10477_v1  ;;  %5670 = vrot.lane.b32.xlu0 %v5595_v5, %s8072_s20  ;;  %v5596_v4 = vadd.f32 %v10011_v32, %v5404_v11  ;;  %v10487_v5 = vld [vmem:[#allocation11_spill] sm:$0xff] }
 0x63a   : > { %v5593_v23 = vadd.f32 %v9993_v49, %v5401_v21  ;;  %v10481_v49 = vld [vmem:[#allocation8_spill] sm:$0xff] }
 0x63b   : > { %v5308_v48 = vpop.permute.xlu0 %5307 }
 0x63c   : > { %v5402_v29 = vadd.f32 %v5308_v48, %v10478_v8  ;;  %5666 = vrot.lane.b32.xlu1 %v5593_v23, %s8072_s20  ;;  %v10488_v48 = vld [vmem:[#allocation24_spill] sm:$0xff] }
 0x63d   : > { %v5320_v2 = vpop.permute.xlu1 %5319 }
 0x63e   : > { %v5594_v52 = vadd.f32 %v10001_v59, %v5402_v29  ;;  %v5408_v45 = vadd.f32 %v5320_v2, %v10482_v55  ;;  %v10489_v2 = vld [vmem:[#allocation21_spill] sm:$0xff] }
 0x63f   : > { %v5318_v51 = vpop.permute.xlu0 %5317 }
 0x640   : > { %5668 = vrot.lane.b32.xlu1 %v5594_v52, %s8072_s20  ;;  %v5407_v50 = vadd.f32 %v5318_v51, %v10483_v56  ;;  %v5600_v10 = vadd.f32 %v10031_v34, %v5408_v45  ;;  %v10491_v52 = vld [vmem:[#allocation19_spill] sm:$0xff]  ;;  %v10495_v56 = vld [vmem:[#allocation29_spill] sm:$0xff] }
 0x641   : > { %v5316_v43 = vpop.permute.xlu1 %5315 }
 0x642   : > { %v5406_v40 = vadd.f32 %v5316_v43, %v10480_v27  ;;  %v5599_v36 = vadd.f32 %v10025_v61, %v5407_v50 }
 0x643   : > { %v5314_v20 = vpop.permute.xlu0 %5313 }
 0x644   : > { %v5405_v30 = vadd.f32 %v5314_v20, %v10481_v49  ;;  %5672 = vrot.lane.b32.xlu1 %v5596_v4, %s8072_s20  ;;  %v5598_v59 = vadd.f32 %v10021_v38, %v5406_v40  ;;  %v10486_v38 = vld [vmem:[#allocation15_spill] sm:$0xff]  ;;  %v10492_v20 = vld [vmem:[#allocation33_spill] sm:$0xff] }
 0x645   : > { %v5328_v58 = vpop.permute.xlu1 %5327 }
 0x646   : > { %v5597_v62 = vadd.f32 %v10015_v54, %v5405_v30  ;;  %v5412_v41 = vadd.f32 %v5328_v58, %v10486_v38  ;;  %v10493_v58 = vld [vmem:[#allocation30_spill] sm:$0xff] }
 0x647   : > { %v5326_v18 = vpop.permute.xlu0 %5325 }
 0x648   : > { %5674 = vrot.lane.b32.xlu0 %v5597_v62, %s8072_s20  ;;  %5676 = vrot.lane.b32.xlu1 %v5598_v59, %s8072_s20  ;;  %v5411_v42 = vadd.f32 %v5326_v18, %v10487_v5  ;;  %v5604_v44 = vadd.f32 %v10060_v13, %v5412_v41 }
 0x649   : > { %v5324_v32 = vpop.permute.xlu1 %5323 }
 0x64a   : > { %v5410_v16 = vadd.f32 %v5324_v32, %v10484_v39  ;;  %v5603_v23 = vadd.f32 %v10051_v19, %v5411_v42 }
 0x64b   : > { %v5322_v25 = vpop.permute.xlu0 %5321 }
 0x64c   : > { %v5409_v12 = vadd.f32 %v5322_v25, %v10485_v31  ;;  %5678 = vrot.lane.b32.xlu0 %v5599_v36, %s8072_s20  ;;  %5680 = vrot.lane.b32.xlu1 %v5600_v10, %s8072_s20  ;;  %v5602_v1 = vadd.f32 %v10041_v24, %v5410_v16  ;;  %v10490_v24 = vld [vmem:[#allocation23_spill] sm:$0xff]  ;;  %v10496_v10 = vld [vmem:[#allocation40_spill] sm:$0xff]  ;;  %v10497_v16 = vld [vmem:[#allocation38_spill] sm:$0xff] }
 0x64d   : > { %v5336_v54 = vpop.permute.xlu1 %5335 }
 0x64e   : > { %v5601_v34 = vadd.f32 %v10035_v6, %v5409_v12  ;;  %v5416_v11 = vadd.f32 %v5336_v54, %v10490_v24  ;;  %v10499_v12 = vld [vmem:[#allocation36_spill] sm:$0xff] }
 0x64f   : > { %v5334_v21 = vpop.permute.xlu0 %5333  ;;  %v10504_v24 = vld [vmem:[#allocation52_spill] sm:$0xff] }
 0x650   : > { %5682 = vrot.lane.b32.xlu0 %v5601_v34, %s8072_s20  ;;  %5684 = vrot.lane.b32.xlu1 %v5602_v1, %s8072_s20  ;;  %v5415_v51 = vadd.f32 %v5334_v21, %v10491_v52  ;;  %v5608_v27 = vadd.f32 %v10074_v9, %v5416_v11  ;;  %v10500_v1 = vld [vmem:[#allocation46_spill] sm:$0xff] }
 0x651   : > { %v5332_v61 = vpop.permute.xlu1 %5331 }
 0x652   : > { %v5414_v8 = vadd.f32 %v5332_v61, %v10488_v48  ;;  %v5607_v40 = vadd.f32 %v10069_v47, %v5415_v51  ;;  %v10501_v61 = vld [vmem:[#allocation43_spill] sm:$0xff]  ;;  %v10503_v48 = vld [vmem:[#allocation41_spill] sm:$0xff] }
 0x653   : > { %v5330_v29 = vpop.permute.xlu0 %5329  ;;  %v10505_v51 = vld [vmem:[#allocation49_spill] sm:$0xff] }
 0x654   : > { %v5413_v26 = vadd.f32 %v5330_v29, %v10489_v2  ;;  %5686 = vrot.lane.b32.xlu0 %v5603_v23, %s8072_s20  ;;  %5688 = vrot.lane.b32.xlu1 %v5604_v44, %s8072_s20  ;;  %v5606_v43 = vadd.f32 %v10067_v15, %v5414_v8  ;;  %v10494_v15 = vld [vmem:[#allocation31_spill] sm:$0xff] }
 0x655   : > { %v5344_v6 = vpop.permute.xlu1 %5343 }
 0x656   : > { %v5605_v13 = vadd.f32 %v10062_v22, %v5413_v26  ;;  %v5420_v45 = vadd.f32 %v5344_v6, %v10494_v15 }
 0x657   : > { %v5342_v4 = vpop.permute.xlu0 %5341 }
 0x658   : > { %5690 = vrot.lane.b32.xlu0 %v5605_v13, %s8072_s20  ;;  %5692 = vrot.lane.b32.xlu1 %v5606_v43, %s8072_s20  ;;  %v5419_v50 = vadd.f32 %v5342_v4, %v10495_v56  ;;  %v5612_v18 = vadd.f32 %v10082_v17, %v5420_v45  ;;  %v10506_v4 = vld [vmem:[#allocation47_spill] sm:$0xff] }
 0x659   : > { %v5340_v19 = vpop.permute.xlu1 %5339 }
 0x65a   : > { %v5418_v49 = vadd.f32 %v5340_v19, %v10492_v20  ;;  %v5611_v32 = vadd.f32 %v10080_v7, %v5419_v50 }
 0x65b   : > { %v5338_v30 = vpop.permute.xlu0 %5337 }
 0x65c   : > { %v5417_v55 = vadd.f32 %v5338_v30, %v10493_v58  ;;  %5694 = vrot.lane.b32.xlu0 %v5607_v40, %s8072_s20  ;;  %5696 = vrot.lane.b32.xlu1 %v5608_v27, %s8072_s20  ;;  %v5610_v59 = vadd.f32 %v10078_v3, %v5418_v49  ;;  %v10498_v3 = vld [vmem:[#allocation39_spill] sm:$0xff] }
 0x65d   : > { %v5352_v22 = vpop.permute.xlu1 %5351 }
 0x65e   : > { %v5609_v9 = vadd.f32 %v10076_v0, %v5417_v55  ;;  %v5424_v31 = vadd.f32 %v5352_v22, %v10498_v3 }
 0x65f   : > { %v5350_v62 = vpop.permute.xlu0 %5349 }
 0x660   : > { %5698 = vrot.lane.b32.xlu0 %v5609_v9, %s8072_s20  ;;  %5700 = vrot.lane.b32.xlu1 %v5610_v59, %s8072_s20  ;;  %v5423_v54 = vadd.f32 %v5350_v62, %v10499_v12  ;;  %v5616_v5 = vadd.f32 %v10090_v63, %v5424_v31 }
 0x661   : > { %v5348_v47 = vpop.permute.xlu1 %5347 }
 0x662   : > { %v5422_v36 = vadd.f32 %v5348_v47, %v10496_v10  ;;  %v5615_v42 = vadd.f32 %v10088_v57, %v5423_v54 }
 0x663   : > { %v5346_v39 = vpop.permute.xlu0 %5345 }
 0x664   : > { %v5421_v25 = vadd.f32 %v5346_v39, %v10497_v16  ;;  %5702 = vrot.lane.b32.xlu0 %v5611_v32, %s8072_s20  ;;  %5704 = vrot.lane.b32.xlu1 %v5612_v18, %s8072_s20  ;;  %v5614_v38 = vadd.f32 %v10086_v53, %v5422_v36  ;;  %v10502_v53 = vld [vmem:[#allocation45_spill] sm:$0xff] }
 0x665   : > { %v5360_v0 = vpop.permute.xlu1 %5359 }
 0x666   : > { %v5613_v17 = vadd.f32 %v10084_v28, %v5421_v25  ;;  %v5428_v23 = vadd.f32 %v5360_v0, %v10502_v53 }
 0x667   : > { %v5358_v41 = vpop.permute.xlu0 %5357 }
 0x668   : > { %5706 = vrot.lane.b32.xlu0 %v5613_v17, %s8072_s20  ;;  %5708 = vrot.lane.b32.xlu1 %v5614_v38, %s8072_s20  ;;  %v5427_v8 = vadd.f32 %v5358_v41, %v10503_v48  ;;  %v5620_v26 = vadd.f32 %v10098_v37, %v5428_v23 }
 0x669   : > { %v5356_v7 = vpop.permute.xlu1 %5355 }
 0x66a   : > { %v5426_v34 = vadd.f32 %v5356_v7, %v10500_v1  ;;  %v5619_v6 = vadd.f32 %v10096_v46, %v5427_v8  ;;  %v10507_v46 = vld [vmem:[#allocation51_spill] sm:$0xff] }
 0x66b   : > { %v5354_v21 = vpop.permute.xlu0 %5353 }
 0x66c   : > { %v5425_v44 = vadd.f32 %v5354_v21, %v10501_v61  ;;  %5710 = vrot.lane.b32.xlu0 %v5615_v42, %s8072_s20  ;;  %5712 = vrot.lane.b32.xlu1 %v5616_v5, %s8072_s20  ;;  %v5618_v29 = vadd.f32 %v10094_v14, %v5426_v34  ;;  %v10233_v42 = vld [vmem:[%s10316_s7] ss:$0 sm:$0xff] }
 0x66d   : > { %v5368_v28 = vpop.permute.xlu1 %5367 }
 0x66e   : > { %v5617_v63 = vadd.f32 %v10092_v33, %v5425_v44  ;;  %v5432_v37 = vadd.f32 %v5368_v28, %v10507_v46 }
 0x66f   : > { %v5366_v2 = vpop.permute.xlu0 %5365 }
 0x670   : > { %5714 = vrot.lane.b32.xlu0 %v5617_v63, %s8072_s20  ;;  %5716 = vrot.lane.b32.xlu1 %v5618_v29, %s8072_s20  ;;  %v5431_v19 = vadd.f32 %v5366_v2, %v10506_v4 }
 0x671   : > { %v5364_v57 = vpop.permute.xlu1 %5363 }
 0x672   : > { %v5430_v11 = vadd.f32 %v5364_v57, %v10504_v24 }
 0x673   : > { %v5362_v52 = vpop.permute.xlu0 %5361 }
 0x674   : > { %v5429_v43 = vadd.f32 %v5362_v52, %v10505_v51  ;;  %5718 = vrot.lane.b32.xlu0 %v5619_v6, %s8072_s20  ;;  %5720 = vrot.lane.b32.xlu1 %v5620_v26, %s8072_s20  ;;  %v5622_v33 = vadd.f32 %v10102_v60, %v5430_v11 }
 0x676   : > { %v5621_v14 = vadd.f32 %v10100_v35, %v5429_v43 }
 0x677   : > { %v5558_v13 = vpop.permute.xlu0 %5557 }
 0x678   : > { %5722 = vrot.lane.b32.xlu0 %v5621_v14, %s8072_s20  ;;  %5724 = vrot.lane.b32.xlu1 %v5622_v33, %s8072_s20  ;;  %v5623_v27 = vadd.f32 %v5558_v13, %v5431_v19 }
 0x67b   : > { %v5560_v40 = vpop.permute.xlu0 %5559 }
 0x67c   : > { %v5624_v20 = vadd.f32 %v5560_v40, %v5432_v37  ;;  %5726 = vrot.lane.b32.xlu0 %v5623_v27, %s8072_s20 }
 0x67e   : > { %5728 = vrot.lane.b32.xlu1 %v5624_v20, %s8072_s20 }
 0x6aa   : > { %v5671_v60 = vpop.permute.xlu0 %5670 }
 0x6ae   : > { %v5667_v49 = vpop.permute.xlu1 %5666 }
 0x6af   : > { %7461 = vmatprep.mubr.msk.f32.mxu0 %vm2816_vm5, %v5667_v49 }
 0x6b2   : > { %v5669_v35 = vpop.permute.xlu1 %5668 }
 0x6b3   : > { %7462 = vmatmul.mubr.msk.f32.vlgmr.msra.gmra.mrb[32].mxu0 %vm2816_vm5, %v5669_v35 }
 0x6b4   : > { %7464 = vmatprep.mubr.msk.f32.mxu0 %vm2816_vm5, %v5671_v60 }
 0x6b6   : > { %v5673_v30 = vpop.permute.xlu1 %5672 }
 0x6b7   : > { %7465 = vmatmul.mubr.msk.f32.gmra.mrb[34].mxu0 %vm2816_vm5, %v5673_v30 }
 0x6ba   : > { %v5675_v58 = vpop.permute.xlu0 %5674  ;;  %v5677_v55 = vpop.permute.xlu1 %5676 }
 0x6bb   : > { %7467 = vmatprep.mubr.msk.f32.mxu0 %vm2816_vm5, %v5675_v58 }
 0x6bc   : > { %7468 = vmatmul.mubr.msk.f32.gmra.mrb[36].mxu0 %vm2816_vm5, %v5677_v55 }
 0x6be   : > { %v5679_v22 = vpop.permute.xlu0 %5678  ;;  %v5681_v15 = vpop.permute.xlu1 %5680 }
 0x6bf   : > { %7470 = vmatprep.mubr.msk.f32.mxu0 %vm2816_vm5, %v5679_v22 }
 0x6c0   : > { %7471 = vmatmul.mubr.msk.f32.gmra.mrb[38].mxu0 %vm2816_vm5, %v5681_v15 }
 0x6c2   : > { %v5683_v45 = vpop.permute.xlu0 %5682  ;;  %v5685_v56 = vpop.permute.xlu1 %5684 }
 0x6c3   : > { %7473 = vmatprep.mubr.msk.f32.mxu0 %vm2816_vm5, %v5683_v45 }
 0x6c4   : > { %7474 = vmatmul.mubr.msk.f32.gmra.mrb[40].mxu0 %vm2816_vm5, %v5685_v56 }
 0x6c6   : > { %v5687_v50 = vpop.permute.xlu0 %5686  ;;  %v5689_v59 = vpop.permute.xlu1 %5688 }
 0x6c7   : > { %7476 = vmatprep.mubr.msk.f32.mxu0 %vm2816_vm5, %v5687_v50 }
 0x6c8   : > { %7477 = vmatmul.mubr.msk.f32.gmra.mrb[42].mxu0 %vm2816_vm5, %v5689_v59 }
 0x6ca   : > { %v5691_v9 = vpop.permute.xlu0 %5690  ;;  %v5693_v62 = vpop.permute.xlu1 %5692 }
 0x6cb   : > { %7479 = vmatprep.mubr.msk.f32.mxu0 %vm2816_vm5, %v5691_v9 }
 0x6cc   : > { %7480 = vmatmul.mubr.msk.f32.gmra.mrb[44].mxu0 %vm2816_vm5, %v5693_v62 }
 0x6ce   : > { %v5695_v47 = vpop.permute.xlu0 %5694  ;;  %v5697_v18 = vpop.permute.xlu1 %5696 }
 0x6cf   : > { %7482 = vmatprep.mubr.msk.f32.mxu0 %vm2816_vm5, %v5695_v47 }
 0x6d0   : > { %7483 = vmatmul.mubr.msk.f32.gmra.mrb[46].mxu0 %vm2816_vm5, %v5697_v18 }
 0x6d2   : > { %v5699_v32 = vpop.permute.xlu0 %5698  ;;  %v5701_v10 = vpop.permute.xlu1 %5700 }
 0x6d3   : > { %7485 = vmatprep.mubr.msk.f32.mxu0 %vm2816_vm5, %v5699_v32 }
 0x6d4   : > { %7486 = vmatmul.mubr.msk.f32.gmra.mrb[48].mxu0 %vm2816_vm5, %v5701_v10 }
 0x6d6   : > { %v5703_v36 = vpop.permute.xlu0 %5702  ;;  %v5705_v39 = vpop.permute.xlu1 %5704 }
 0x6d7   : > { %7488 = vmatprep.mubr.msk.f32.mxu0 %vm2816_vm5, %v5703_v36 }
 0x6d8   : > { %7489 = vmatmul.mubr.msk.f32.gmra.mrb[50].mxu0 %vm2816_vm5, %v5705_v39 }
 0x6da   : > { %v5707_v16 = vpop.permute.xlu0 %5706  ;;  %v5709_v25 = vpop.permute.xlu1 %5708 }
 0x6db   : > { %7491 = vmatprep.mubr.msk.f32.mxu0 %vm2816_vm5, %v5707_v16 }
 0x6dc   : > { %7492 = vmatmul.mubr.msk.f32.gmra.mrb[52].mxu0 %vm2816_vm5, %v5709_v25 }
 0x6de   : > { %v5711_v0 = vpop.permute.xlu0 %5710  ;;  %v5713_v3 = vpop.permute.xlu1 %5712 }
 0x6df   : > { %7494 = vmatprep.mubr.msk.f32.mxu0 %vm2816_vm5, %v5711_v0 }
 0x6e0   : > { %7495 = vmatmul.mubr.msk.f32.gmra.mrb[54].mxu0 %vm2816_vm5, %v5713_v3 }
 0x6e2   : > { %v5715_v31 = vpop.permute.xlu0 %5714  ;;  %v5717_v12 = vpop.permute.xlu1 %5716 }
 0x6e3   : > { %7497 = vmatprep.mubr.msk.f32.mxu0 %vm2816_vm5, %v5715_v31 }
 0x6e4   : > { %7498 = vmatmul.mubr.msk.f32.gmra.mrb[56].mxu0 %vm2816_vm5, %v5717_v12 }
 0x6e6   : > { %v5719_v54 = vpop.permute.xlu0 %5718  ;;  %v5721_v38 = vpop.permute.xlu1 %5720 }
 0x6e7   : > { %7500 = vmatprep.mubr.msk.f32.mxu0 %vm2816_vm5, %v5719_v54 }
 0x6e8   : > { %7501 = vmatmul.mubr.msk.f32.gmra.mrb[58].mxu0 %vm2816_vm5, %v5721_v38 }
 0x6ea   : > { %v5723_v17 = vpop.permute.xlu0 %5722  ;;  %v5725_v41 = vpop.permute.xlu1 %5724 }
 0x6eb   : > { %7503 = vmatprep.mubr.msk.f32.mxu0 %vm2816_vm5, %v5723_v17 }
 0x6ec   : > { %7504 = vmatmul.mubr.msk.f32.gmra.mrb[60].mxu0 %vm2816_vm5, %v5725_v41 }
 0x6ee   : > { %v5727_v7 = vpop.permute.xlu0 %5726 }
 0x6ef   : > { %7506 = vmatprep.mubr.msk.f32.mxu0 %vm2816_vm5, %v5727_v7 }
 0x6f0   : > { %v5729_v5 = vpop.permute.xlu1 %5728 }
 0x6f1   : > { %7507 = vmatmul.mubr.msk.f32.gmra.mrb[62].mxu0 %vm2816_vm5, %v5729_v5 }
 0x786   : > { %v7463_v1 = vpop.f32.mrb[32].mxu0 }
 0x787   : > { %v5866_v34 = vadd.f32 %v7463_v1, %v10233_v42  ;;  %v5860_v21 = vpop.f32.mrb[33].mxu0 }
 0x788   : > { %v5861_v61 = vadd.f32 %v10233_v42, %v5860_v21 }
 0x789   : > { %6020 = vst [vmem:[%s10240_s25 + $0x8] sm:$0xff] %v5866_v34 }
 0x78a   : > { %6019 = vst [vmem:[%s10240_s25] sm:$0xff] %v5861_v61  ;;  %v7466_v44 = vpop.f32.mrb[34].mxu0 }
 0x78b   : > { %v5876_v28 = vadd.f32 %v7466_v44, %v10233_v42  ;;  %v5870_v53 = vpop.f32.mrb[35].mxu0 }
 0x78c   : > { %v5871_v23 = vadd.f32 %v10233_v42, %v5870_v53 }
 0x78d   : > { %6022 = vst [vmem:[%s10240_s25 + $0x18] sm:$0xff] %v5876_v28 }
 0x78e   : > { %6021 = vst [vmem:[%s10240_s25 + $0x10] sm:$0xff] %v5871_v23 }
 0x78f   : > { %v7469_v48 = vpop.f32.mrb[36].mxu0 }
 0x790   : > { %v5886_v8 = vadd.f32 %v7469_v48, %v10233_v42  ;;  %v5880_v29 = vpop.f32.mrb[37].mxu0 }
 0x791   : > { %v5881_v63 = vadd.f32 %v10233_v42, %v5880_v29 }
 0x792   : > { %6024 = vst [vmem:[%s10240_s25 + $0x28] sm:$0xff] %v5886_v8 }
 0x793   : > { %6023 = vst [vmem:[%s10240_s25 + $0x20] sm:$0xff] %v5881_v63  ;;  %v7472_v2 = vpop.f32.mrb[38].mxu0 }
 0x794   : > { %v5896_v57 = vadd.f32 %v7472_v2, %v10233_v42  ;;  %v5890_v26 = vpop.f32.mrb[39].mxu0 }
 0x795   : > { %v5891_v6 = vadd.f32 %v10233_v42, %v5890_v26 }
 0x796   : > { %6026 = vst [vmem:[%s10240_s25 + $0x38] sm:$0xff] %v5896_v57 }
 0x797   : > { %6025 = vst [vmem:[%s10240_s25 + $0x30] sm:$0xff] %v5891_v6  ;;  %v7475_v24 = vpop.f32.mrb[40].mxu0 }
 0x798   : > { %v5906_v11 = vadd.f32 %v7475_v24, %v10233_v42  ;;  %v5900_v52 = vpop.f32.mrb[41].mxu0 }
 0x799   : > { %v5901_v51 = vadd.f32 %v10233_v42, %v5900_v52 }
 0x79a   : > { %6028 = vst [vmem:[%s10240_s25 + $0x48] sm:$0xff] %v5906_v11 }
 0x79b   : > { %6027 = vst [vmem:[%s10240_s25 + $0x40] sm:$0xff] %v5901_v51  ;;  %v7478_v43 = vpop.f32.mrb[42].mxu0 }
 0x79c   : > { %v5916_v33 = vadd.f32 %v7478_v43, %v10233_v42  ;;  %v5910_v14 = vpop.f32.mrb[43].mxu0 }
 0x79d   : > { %v5911_v13 = vadd.f32 %v10233_v42, %v5910_v14 }
 0x79e   : > { %6030 = vst [vmem:[%s10240_s25 + $0x58] sm:$0xff] %v5916_v33 }
 0x79f   : > { %6029 = vst [vmem:[%s10240_s25 + $0x50] sm:$0xff] %v5911_v13  ;;  %v7481_v4 = vpop.f32.mrb[44].mxu0 }
 0x7a0   : > { %v5926_v19 = vadd.f32 %v7481_v4, %v10233_v42  ;;  %v5920_v46 = vpop.f32.mrb[45].mxu0 }
 0x7a1   : > { %v5921_v37 = vadd.f32 %v10233_v42, %v5920_v46 }
 0x7a2   : > { %6032 = vst [vmem:[%s10240_s25 + $0x68] sm:$0xff] %v5926_v19 }
 0x7a3   : > { %6031 = vst [vmem:[%s10240_s25 + $0x60] sm:$0xff] %v5921_v37  ;;  %v7484_v27 = vpop.f32.mrb[46].mxu0 }
 0x7a4   : > { %v5936_v40 = vadd.f32 %v7484_v27, %v10233_v42  ;;  %v5930_v20 = vpop.f32.mrb[47].mxu0 }
 0x7a5   : > { %v5931_v49 = vadd.f32 %v10233_v42, %v5930_v20 }
 0x7a6   : > { %6034 = vst [vmem:[%s10240_s25 + $0x78] sm:$0xff] %v5936_v40 }
 0x7a7   : > { %6033 = vst [vmem:[%s10240_s25 + $0x70] sm:$0xff] %v5931_v49  ;;  %v7487_v35 = vpop.f32.mrb[48].mxu0 }
 0x7a8   : > { %v5946_v60 = vadd.f32 %v7487_v35, %v10233_v42  ;;  %v5940_v30 = vpop.f32.mrb[49].mxu0 }
 0x7a9   : > { %v5941_v58 = vadd.f32 %v10233_v42, %v5940_v30 }
 0x7aa   : > { %6036 = vst [vmem:[%s10240_s25 + $0x88] sm:$0xff] %v5946_v60 }
 0x7ab   : > { %6035 = vst [vmem:[%s10240_s25 + $0x80] sm:$0xff] %v5941_v58  ;;  %v7490_v55 = vpop.f32.mrb[50].mxu0 }
 0x7ac   : > { %v5956_v22 = vadd.f32 %v7490_v55, %v10233_v42  ;;  %v5950_v15 = vpop.f32.mrb[51].mxu0 }
 0x7ad   : > { %v5951_v45 = vadd.f32 %v10233_v42, %v5950_v15 }
 0x7ae   : > { %6038 = vst [vmem:[%s10240_s25 + $0x98] sm:$0xff] %v5956_v22 }
 0x7af   : > { %6037 = vst [vmem:[%s10240_s25 + $0x90] sm:$0xff] %v5951_v45  ;;  %v7493_v56 = vpop.f32.mrb[52].mxu0 }
 0x7b0   : > { %v5966_v50 = vadd.f32 %v7493_v56, %v10233_v42  ;;  %v5960_v59 = vpop.f32.mrb[53].mxu0 }
 0x7b1   : > { %v5961_v9 = vadd.f32 %v10233_v42, %v5960_v59 }
 0x7b2   : > { %6040 = vst [vmem:[%s10240_s25 + $0xa8] sm:$0xff] %v5966_v50 }
 0x7b3   : > { %6039 = vst [vmem:[%s10240_s25 + $0xa0] sm:$0xff] %v5961_v9  ;;  %v7496_v62 = vpop.f32.mrb[54].mxu0 }
 0x7b4   : > { %v5976_v47 = vadd.f32 %v7496_v62, %v10233_v42  ;;  %v5970_v18 = vpop.f32.mrb[55].mxu0 }
 0x7b5   : > { %v5971_v32 = vadd.f32 %v10233_v42, %v5970_v18 }
 0x7b6   : > { %6042 = vst [vmem:[%s10240_s25 + $0xb8] sm:$0xff] %v5976_v47 }
 0x7b7   : > { %6041 = vst [vmem:[%s10240_s25 + $0xb0] sm:$0xff] %v5971_v32  ;;  %v7499_v10 = vpop.f32.mrb[56].mxu0 }
 0x7b8   : > { %v5986_v36 = vadd.f32 %v7499_v10, %v10233_v42  ;;  %v5980_v39 = vpop.f32.mrb[57].mxu0 }
 0x7b9   : > { %v5981_v16 = vadd.f32 %v10233_v42, %v5980_v39 }
 0x7ba   : > { %6044 = vst [vmem:[%s10240_s25 + $0xc8] sm:$0xff] %v5986_v36 }
 0x7bb   : > { %6043 = vst [vmem:[%s10240_s25 + $0xc0] sm:$0xff] %v5981_v16  ;;  %v7502_v25 = vpop.f32.mrb[58].mxu0 }
 0x7bc   : > { %v5996_v0 = vadd.f32 %v7502_v25, %v10233_v42  ;;  %v5990_v3 = vpop.f32.mrb[59].mxu0 }
 0x7bd   : > { %v5991_v31 = vadd.f32 %v10233_v42, %v5990_v3 }
 0x7be   : > { %6046 = vst [vmem:[%s10240_s25 + $0xd8] sm:$0xff] %v5996_v0 }
 0x7bf   : > { %6045 = vst [vmem:[%s10240_s25 + $0xd0] sm:$0xff] %v5991_v31  ;;  %v7505_v12 = vpop.f32.mrb[60].mxu0 }
 0x7c0   : > { %v6006_v54 = vadd.f32 %v7505_v12, %v10233_v42  ;;  %v6000_v38 = vpop.f32.mrb[61].mxu0 }
 0x7c1   : > { %v6001_v17 = vadd.f32 %v10233_v42, %v6000_v38 }
 0x7c2   : > { %6048 = vst [vmem:[%s10240_s25 + $0xe8] sm:$0xff] %v6006_v54 }
 0x7c3   : > { %6047 = vst [vmem:[%s10240_s25 + $0xe0] sm:$0xff] %v6001_v17 }
 0x7c4   : > { %v7508_v41 = vpop.f32.mrb[62].mxu0 }
 0x7c5   : > { %v6016_v7 = vadd.f32 %v7508_v41, %v10233_v42  ;;  %v6010_v5 = vpop.f32.mrb[63].mxu0 }
 0x7c6   : > { %v6011_v1 = vadd.f32 %v10233_v42, %v6010_v5 }
 0x7c7   : > { %6050 = vst [vmem:[%s10240_s25 + $0xf8] sm:$0xff] %v6016_v7 }
 0x7c8   : > { %6049 = vst [vmem:[%s10240_s25 + $0xf0] sm:$0xff] %v6011_v1 }
 0x7c9 PF: > { %s18_s27 = sadd.s32 1, %s8067_s27  }
 0x7ca   : > { %p15_p4 = scmp.ge.s32.totalorder %s18_s27, 4  }
 0x7cc   :  { %17 = sbr.rel (!%p15_p4) target bundleno = 1 (0x1), region = 102 }

</bundles_post_ra>
